<compile_context>
chip_gen: v7x
topology: tpu7x:2x2x1
jax: 0.10.0
libtpu: 0.0.40
codegen_flags: <defaults>
</compile_context>

<pallas_src>
import functools

import jax
import jax.numpy as jnp
from jax.experimental import pallas as pl
from jax.experimental.pallas import tpu as pltpu

_EPS = 1e-5      # BatchNorm2d default eps
_LANE = 128


def _rup(x, m):
    return (x + m - 1) // m * m


# ---------------------------------------------------------------------------
# Kernel A: ConvTranspose2d(kernel=(2,2), stride=2) == one matmul per input pixel
#   x: (TM, Ci) bf16    w: (Ci, 4*Co) bf16    b: (1, 4*Co) f32
#   o: (TM, 4*Co) bf16  (columns ordered (dy, dx, cout))
# ---------------------------------------------------------------------------
def _upconv_kernel(x_ref, w_ref, b_ref, o_ref):
    acc = jnp.dot(x_ref[...], w_ref[...], preferred_element_type=jnp.float32)
    o_ref[...] = (acc + b_ref[...]).astype(o_ref.dtype)


def conv_transpose_up(x_nhwc, w, b):
    """x_nhwc: (N,h,w,Cin) f32; w: torch layout (Cin,Cout,2,2); b: (Cout,).
    Returns (N, 2h, 2w, Cout_pad) bf16 with real channels at [0, Cout)."""
    N, h, w_, Cin = x_nhwc.shape
    Cout = w.shape[1]
    Ci = _rup(Cin, _LANE)
    Co = _rup(Cout, _LANE)

    # weight -> (Ci, 4*Co), column order (dy, dx, cout); zero rows/cols for padded chans
    wt = jnp.transpose(w, (2, 3, 0, 1))                               # (2,2,Cin,Cout)
    wfull = jnp.zeros((2, 2, Ci, Co), jnp.float32).at[:, :, :Cin, :Cout].set(wt)
    w_mat = jnp.transpose(wfull, (2, 0, 1, 3)).reshape(Ci, 4 * Co).astype(jnp.bfloat16)
    b_pad = jnp.zeros((Co,), jnp.float32).at[:Cout].set(b)
    b_mat = jnp.tile(b_pad, (4,)).reshape(1, 4 * Co)

    xpad = jnp.pad(x_nhwc, ((0, 0), (0, 0), (0, 0), (0, Ci - Cin))).astype(jnp.bfloat16)
    M = N * h * w_
    x_flat = xpad.reshape(M, Ci)
    TM = 512 if M > 512 else _rup(M, 16)
    Mp = _rup(M, TM)
    if Mp > M:
        x_flat = jnp.pad(x_flat, ((0, Mp - M), (0, 0)))

    y = pl.pallas_call(
        _upconv_kernel,
        out_shape=jax.ShapeDtypeStruct((Mp, 4 * Co), jnp.bfloat16),
        grid=(Mp // TM,),
        in_specs=[
            pl.BlockSpec((TM, Ci), lambda i: (i, 0)),
            pl.BlockSpec((Ci, 4 * Co), lambda i: (0, 0)),   # resident weights
            pl.BlockSpec((1, 4 * Co), lambda i: (0, 0)),
        ],
        out_specs=pl.BlockSpec((TM, 4 * Co), lambda i: (i, 0)),
        compiler_params=pltpu.CompilerParams(dimension_semantics=("parallel",)),
        cost_estimate=pl.CostEstimate(
            flops=2 * Mp * Ci * 4 * Co,
            transcendentals=0,
            bytes_accessed=Mp * Ci * 2 + Ci * 4 * Co * 2 + Mp * 4 * Co * 2,
        ),
    )(x_flat, w_mat, b_mat)

    # sub-pixel interleave back to the 2x spatial grid (cheap XLA shuffle; it is fused
    # with the following pad/concat copy).
    y = y[:M].reshape(N, h, w_, 2, 2, Co)
    y = jnp.transpose(y, (0, 1, 3, 2, 4, 5)).reshape(N, 2 * h, 2 * w_, Co)
    return y


# ---------------------------------------------------------------------------
# Kernel B: [optional fused BN(scale/shift)+ReLU on the input] -> Conv3x3(pad=1),
# haloed H-tiles, single K=9*Cin matmul, per-tile BN partial sums for the output.
# ---------------------------------------------------------------------------
def _conv_stats_kernel(xm_ref, xh_ref, w_ref, sc_ref, sh_ref, y_ref, ps_ref, xw_ref,
                       *, h_real, th, apply_bn):
    wp2 = xm_ref.shape[2]          # padded width (W + 2)
    ci = xm_ref.shape[3]
    wid = wp2 - 2
    co = y_ref.shape[3]
    t = pl.program_id(1)

    # assemble the (th+2)-row haloed window in VMEM scratch
    xw_ref[0:th] = xm_ref[0]
    xw_ref[th:th + 2] = xh_ref[0]

    if apply_bn:
        # Fused BatchNorm (previous layer's precomputed scale/shift) + ReLU, applied to
        # the raw conv output of the previous layer in VMEM.  Conv zero-padding and
        # tile-alignment positions must stay exactly 0 after the affine, so mask them.
        prow = t * th + jax.lax.broadcasted_iota(jnp.int32, (th + 2, 1, 1), 0)
        qcol = jax.lax.broadcasted_iota(jnp.int32, (1, wp2, 1), 1)
        valid = (prow >= 1) & (prow <= h_real) & (qcol >= 1) & (qcol <= wid)
        sc = sc_ref[...].reshape(1, 1, ci)
        sh = sh_ref[...].reshape(1, 1, ci)
        act = jnp.maximum(xw_ref[...].astype(jnp.float32) * sc + sh, 0.0)
        xw_ref[...] = jnp.where(valid, act, 0.0).astype(xw_ref.dtype)

    # 9 shifted taps -> one lane-concat patch matrix -> one MXU contraction (K = 9*ci)
    taps = [xw_ref[dy:dy + th, dx:dx + wid, :] for dy in range(3) for dx in range(3)]
    patch = jnp.concatenate(taps, axis=-1).reshape(th * wid, 9 * ci)      # bf16
    acc = jnp.dot(patch, w_ref[...], preferred_element_type=jnp.float32)  # (th*wid, co)

    y3 = acc.reshape(th, wid, co)
    # zero rows past the true image height so they pollute neither the BN statistics
    # nor the final output (only matters when th does not divide H)
    hloc = jax.lax.broadcasted_iota(jnp.int32, (th, 1, 1), 0)
    y3 = jnp.where(t * th + hloc < h_real, y3, 0.0)
    y_ref[0] = y3.astype(y_ref.dtype)

    # per-tile partial sums for training-mode BatchNorm (finalized in the wrapper)
    ps_ref[0, 0, 0:1, :] = jnp.sum(y3, axis=(0, 1), keepdims=True)[0]
    ps_ref[0, 0, 1:2, :] = jnp.sum(y3 * y3, axis=(0, 1), keepdims=True)[0]


def conv3x3_bn_stats(x_nhwc, w_col, co_pad, th, h_real, scale_in, shift_in,
                     apply_bn, out_dtype):
    """x_nhwc: (N,Hin,W,Ci) bf16 (channels lane-padded; rows >= h_real, if any, are 0);
    w_col: (9*Ci, co_pad) bf16; scale_in/shift_in: (Ci,) f32 affine applied (with ReLU)
    to the input inside the kernel when apply_bn=True.
    Returns conv output (N, hp, W, co_pad) out_dtype (rows >= h_real zeroed) and
    per-tile (sum, sumsq) partials (N, n_tiles, 2, co_pad) f32."""
    N, Hin, W, Ci = x_nhwc.shape
    assert th % 2 == 0, "H-tile must be even (halo block size is 2 rows)"
    assert W % 8 == 0, "kernel assumes width is a multiple of 8"  # true for 2x-upsampled widths
    n_t = -(-h_real // th)
    hp = n_t * th
    ht = hp + th
    # zero-pad: 1 col left/right, 1 row on top, rest at the bottom (conv pad + tile
    # alignment + halo rows of the last tile); all padding is exactly zero.
    xtall = jnp.pad(x_nhwc, ((0, 0), (1, ht - Hin - 1), (1, 1), (0, 0)))

    kernel = functools.partial(_conv_stats_kernel, h_real=h_real, th=th,
                               apply_bn=apply_bn)
    y, ps = pl.pallas_call(
        kernel,
        out_shape=(
            jax.ShapeDtypeStruct((N, hp, W, co_pad), out_dtype),
            jax.ShapeDtypeStruct((N, n_t, 2, co_pad), jnp.float32),
        ),
        grid=(N, n_t),
        in_specs=[
            # main tile: th rows of the padded image
            pl.BlockSpec((1, th, W + 2, Ci), lambda n, t: (n, t, 0, 0)),
            # 2-row halo: same array, next 2 rows (block size 2 along H)
            pl.BlockSpec((1, 2, W + 2, Ci), lambda n, t: (n, (t + 1) * (th // 2), 0, 0)),
            # resident weights + per-channel affine of the previous layer
            pl.BlockSpec((9 * Ci, co_pad), lambda n, t: (0, 0)),
            pl.BlockSpec((1, Ci), lambda n, t: (0, 0)),
            pl.BlockSpec((1, Ci), lambda n, t: (0, 0)),
        ],
        out_specs=(
            pl.BlockSpec((1, th, W, co_pad), lambda n, t: (n, t, 0, 0)),
            pl.BlockSpec((1, 1, 2, co_pad), lambda n, t: (n, t, 0, 0)),
        ),
        scratch_shapes=[pltpu.VMEM((th + 2, W + 2, Ci), jnp.bfloat16)],
        compiler_params=pltpu.CompilerParams(
            dimension_semantics=("parallel", "parallel")),
        cost_estimate=pl.CostEstimate(
            flops=2 * N * hp * W * 9 * Ci * co_pad,
            transcendentals=0,
            bytes_accessed=(xtall.size * 2 + w_col.size * 2
                            + N * hp * W * co_pad * jnp.dtype(out_dtype).itemsize),
        ),
    )(xtall, xtall, w_col,
      scale_in.reshape(1, Ci).astype(jnp.float32),
      shift_in.reshape(1, Ci).astype(jnp.float32))
    return y, ps


# ---------------------------------------------------------------------------
# Kernel C: BatchNorm affine (precomputed scale/shift) + ReLU, pointwise, tiled
# (used only for the final layer; inner layers are fused into Kernel B)
# ---------------------------------------------------------------------------
def _bn_relu_kernel(y_ref, sc_ref, sh_ref, o_ref):
    o_ref[...] = jnp.maximum(
        y_ref[...].astype(jnp.float32) * sc_ref[...] + sh_ref[...], 0.0
    ).astype(o_ref.dtype)


def bn_relu_apply(y, scale, shift, th, out_dtype):
    N, hp, W, Co = y.shape
    n_t = hp // th
    out_bytes = jnp.dtype(out_dtype).itemsize
    return pl.pallas_call(
        _bn_relu_kernel,
        out_shape=jax.ShapeDtypeStruct((N, hp, W, Co), out_dtype),
        grid=(N, n_t),
        in_specs=[
            pl.BlockSpec((1, th, W, Co), lambda n, t: (n, t, 0, 0)),
            pl.BlockSpec((1, 1, 1, Co), lambda n, t: (0, 0, 0, 0)),
            pl.BlockSpec((1, 1, 1, Co), lambda n, t: (0, 0, 0, 0)),
        ],
        out_specs=pl.BlockSpec((1, th, W, Co), lambda n, t: (n, t, 0, 0)),
        compiler_params=pltpu.CompilerParams(
            dimension_semantics=("parallel", "parallel")),
        cost_estimate=pl.CostEstimate(
            flops=3 * y.size,
            transcendentals=0,
            bytes_accessed=y.size * y.dtype.itemsize + y.size * out_bytes,
        ),
    )(y, scale.reshape(1, 1, 1, Co), shift.reshape(1, 1, 1, Co))


# ---------------------------------------------------------------------------
# Weight packing and forward pass
# ---------------------------------------------------------------------------
def _make_wcol(w, segments, ci_pad, co_pad):
    """torch (Cout, Cin, 3, 3) conv weight -> (9*ci_pad, co_pad) bf16 matrix.
    `segments` = [(dst_offset, src_offset, length), ...] maps torch input-channel
    ranges into the (channel-padded / concatenated) kernel input layout."""
    cout = w.shape[0]
    wt = jnp.transpose(w, (2, 3, 1, 0))                    # (3, 3, Cin, Cout)
    wc = jnp.zeros((3, 3, ci_pad, co_pad), jnp.float32)
    for dst, src, ln in segments:
        wc = wc.at[:, :, dst:dst + ln, :cout].set(wt[:, :, src:src + ln, :])
    return wc.reshape(9 * ci_pad, co_pad).astype(jnp.bfloat16)


def upblock_forward(x_nchw, skip_nchw, params, th=8):
    # NCHW (PyTorch) -> NHWC (kernel layout)
    x = jnp.transpose(x_nchw, (0, 2, 3, 1))
    skip = jnp.transpose(skip_nchw, (0, 2, 3, 1))

    up = conv_transpose_up(x, params["up_w"], params["up_b"])   # (N, H, W, c_up_pad) bf16
    c_up = params["up_w"].shape[1]
    c_up_pad = up.shape[-1]

    c_skip = skip.shape[-1]
    c_skip_pad = _rup(c_skip, _LANE)
    skip_p = jnp.pad(
        skip, ((0, 0), (0, 0), (0, 0), (0, c_skip_pad - c_skip))).astype(jnp.bfloat16)

    # channel concat, same ordering as torch.cat([up, skip], dim=1) but lane-padded.
    h0 = jnp.concatenate([up, skip_p], axis=-1)
    N, H, W, _ = h0.shape
    m_true = N * H * W

    x_cur = h0                                   # kernel-B input of the current layer
    scale_prev = jnp.ones((h0.shape[-1],), jnp.float32)   # identity affine for layer 0
    shift_prev = jnp.zeros((h0.shape[-1],), jnp.float32)
    apply_bn = False                             # layer 0 input is already the activation

    cout = None
    h_out = None
    nconvs = len(params["convs"])
    for i, layer in enumerate(params["convs"]):
        w = layer["w"]                           # (Cout, Cin, 3, 3)
        cout, cin = w.shape[0], w.shape[1]
        co_pad = _rup(cout, _LANE)
        if i == 0:
            segments = [(0, 0, c_up), (c_up_pad, c_up, cin - c_up)]
        else:
            segments = [(0, 0, cin)]
        w_col = _make_wcol(w, segments, x_cur.shape[-1], co_pad)

        last = i == nconvs - 1
        out_dtype = jnp.float32 if last else jnp.bfloat16

        # NOTE: conv bias is not added -- training-mode BatchNorm's mean subtraction
        # cancels a per-channel constant exactly.
        y, ps = conv3x3_bn_stats(x_cur, w_col, co_pad, th, H,
                                 scale_prev, shift_prev, apply_bn, out_dtype)

        # finalize training-mode BatchNorm stats (biased variance over N*H*W)
        sums = jnp.sum(ps, axis=(0, 1))              # (2, co_pad)
        mean = sums[0] / m_true
        var = jnp.maximum(sums[1] / m_true - mean * mean, 0.0)
        gamma = jnp.zeros((co_pad,), jnp.float32).at[:cout].set(layer["gamma"])
        beta = jnp.zeros((co_pad,), jnp.float32).at[:cout].set(layer["beta"])
        scale = gamma * jax.lax.rsqrt(var + _EPS)
        shift = beta - mean * scale

        if last:
            # final layer: standalone BN + ReLU pass producing the f32 result
            h_out = bn_relu_apply(y, scale, shift, th, jnp.float32)
        else:
            # inner layer: BN + ReLU is fused into the next conv kernel's input path
            x_cur = y
            scale_prev, shift_prev = scale, shift
            apply_bn = True

    out = h_out[:, :H, :, :cout]
    return jnp.transpose(out, (0, 3, 1, 2))          # back to NCHW


def init_params(key, in_channels, out_channels, nb_conv):
    half = in_channels // 2
    keys = jax.random.split(key, 2 + nb_conv)
    params = {
        # ConvTranspose2d weight layout: (in, out, kH, kW)
        "up_w": 0.1 * jax.random.normal(keys[0], (half, half, 2, 2), jnp.float32),
        "up_b": 0.1 * jax.random.normal(keys[1], (half,), jnp.float32),
        "convs": [],
    }
    cin = in_channels
    for i in range(nb_conv):
        cout = out_channels
        params["convs"].append(
            {
                # Conv2d weight layout: (out, in, 3, 3).  The conv bias is omitted
                # from compute (exactly cancelled by training-mode BatchNorm).
                "w": 0.1 * jax.random.normal(keys[2 + i], (cout, cin, 3, 3), jnp.float32),
                "gamma": jnp.ones((cout,), jnp.float32),
                "beta": jnp.zeros((cout,), jnp.float32),
            }
        )
        cin = cout
    return params


if __name__ == "__main__":
    in_channels = 8      # concat channels; upsample path carries in_channels // 2 = 4
    out_channels = 8
    nb_conv = 2
    N, h, w = 2, 8, 8    # x is the low-res feature; skip is 2x larger

    key = jax.random.PRNGKey(0)
    kx, ks, kp = jax.random.split(key, 3)
    x = jax.random.normal(kx, (N, in_channels // 2, h, w), jnp.float32)
    skip_x = jax.random.normal(ks, (N, in_channels // 2, 2 * h, 2 * w), jnp.float32)
    params = init_params(kp, in_channels, out_channels, nb_conv)

    out = jax.jit(upblock_forward)(x, skip_x, params)
    out = jax.block_until_ready(out)

    assert out.shape == (N, out_channels, 2 * h, 2 * w), out.shape
    assert bool(jnp.all(jnp.isfinite(out)))
    print("KERNEL_OK")
</pallas_src>

<mosaic_0001>
module attributes {stable_mosaic.version = 11 : i64} {
  func.func @_upconv_kernel(%arg0: i32, %arg1: memref<128x128xbf16, #tpu.memory_space<vmem>>, %arg2: memref<128x512xbf16, #tpu.memory_space<vmem>>, %arg3: memref<1x512xf32, #tpu.memory_space<vmem>>, %arg4: memref<128x512xbf16, #tpu.memory_space<vmem>>) attributes {dimension_semantics = [#tpu.dimension_semantics<parallel>], iteration_bounds = array<i64: 1>, scalar_prefetch = 0 : i64, scratch_operands = 0 : i64, tpu.core_type = #tpu.core_type<tc>, window_params = [{transform_indices = @transform_0, window_bounds = array<i64: 128, 128>}, {pipeline_mode = #tpu.pipeline_mode<synchronous>, transform_indices = @transform_1, window_bounds = array<i64: 128, 512>}, {pipeline_mode = #tpu.pipeline_mode<synchronous>, transform_indices = @transform_2, window_bounds = array<i64: 1, 512>}, {transform_indices = @transform_3, window_bounds = array<i64: 128, 512>}]} {
    %c0 = arith.constant 0 : index
    %c0_0 = arith.constant 0 : index
    %0 = vector.load %arg1[%c0, %c0_0] : memref<128x128xbf16, #tpu.memory_space<vmem>>, vector<128x128xbf16>
    %c0_1 = arith.constant 0 : index
    %c0_2 = arith.constant 0 : index
    %1 = vector.load %arg2[%c0_1, %c0_2] : memref<128x512xbf16, #tpu.memory_space<vmem>>, vector<128x512xbf16>
    %cst = arith.constant dense<0.000000e+00> : vector<128x512xf32>
    %2 = tpu.matmul %0, %1, %cst {dimension_numbers = #tpu.dot_dimension_numbers<[1], [0], [0], [1], [0, 0, 1, 1], [], []>} : vector<128x128xbf16>, vector<128x512xbf16>, vector<128x512xf32> -> vector<128x512xf32>
    %c0_3 = arith.constant 0 : index
    %c0_4 = arith.constant 0 : index
    %3 = vector.load %arg3[%c0_3, %c0_4] : memref<1x512xf32, #tpu.memory_space<vmem>>, vector<1x512xf32>
    %4 = vector.broadcast %3 : vector<1x512xf32> to vector<128x512xf32>
    %5 = arith.addf %2, %4 : vector<128x512xf32>
    %6 = arith.truncf %5 : vector<128x512xf32> to vector<128x512xbf16>
    %c0_5 = arith.constant 0 : index
    %c0_6 = arith.constant 0 : index
    %7 = vector.load %arg4[%c0_5, %c0_6] : memref<128x512xbf16, #tpu.memory_space<vmem>>, vector<128x512xbf16>
    tpu.vector_store %arg4[%c0_5, %c0_6], %6 {strides = array<i32>} : memref<128x512xbf16, #tpu.memory_space<vmem>>, vector<128x512xbf16>,
    return
  }
  func.func @transform_0(%arg0: i32) -> (i32, i32) {
    %c0_i32 = arith.constant 0 : i32
    %c0_i32_0 = arith.constant 0 : i32
    return %arg0, %c0_i32 : i32, i32
  }
  func.func @transform_1(%arg0: i32) -> (i32, i32) {
    %c0_i32 = arith.constant 0 : i32
    %c0_i32_0 = arith.constant 0 : i32
    %c0_i32_1 = arith.constant 0 : i32
    return %c0_i32, %c0_i32_0 : i32, i32
  }
  func.func @transform_2(%arg0: i32) -> (i32, i32) {
    %c0_i32 = arith.constant 0 : i32
    %c0_i32_0 = arith.constant 0 : i32
    %c0_i32_1 = arith.constant 0 : i32
    return %c0_i32, %c0_i32_0 : i32, i32
  }
  func.func @transform_3(%arg0: i32) -> (i32, i32) {
    %c0_i32 = arith.constant 0 : i32
    %c0_i32_0 = arith.constant 0 : i32
    return %arg0, %c0_i32 : i32, i32
  }
}

module attributes {stable_mosaic.version = 11 : i64} {
  func.func @_conv_stats_kernel(%arg0: i32, %arg1: i32, %arg2: memref<1x8x18x256xbf16, #tpu.memory_space<vmem>>, %arg3: memref<1x2x18x256xbf16, #tpu.memory_space<vmem>>, %arg4: memref<2304x128xbf16, #tpu.memory_space<vmem>>, %arg5: memref<1x256xf32, #tpu.memory_space<vmem>>, %arg6: memref<1x256xf32, #tpu.memory_space<vmem>>, %arg7: memref<1x8x16x128xbf16, #tpu.memory_space<vmem>>, %arg8: memref<1x1x2x128xf32, #tpu.memory_space<vmem>>, %arg9: memref<10x18x256xbf16, #tpu.memory_space<vmem>>) attributes {dimension_semantics = [#tpu.dimension_semantics<parallel>, #tpu.dimension_semantics<parallel>], iteration_bounds = array<i64: 2, 2>, scalar_prefetch = 0 : i64, scratch_operands = 1 : i64, tpu.core_type = #tpu.core_type<tc>, window_params = [{transform_indices = @transform_0, window_bounds = array<i64: 1, 8, 18, 256>}, {transform_indices = @transform_1, window_bounds = array<i64: 1, 2, 18, 256>}, {pipeline_mode = #tpu.pipeline_mode<synchronous>, transform_indices = @transform_2, window_bounds = array<i64: 2304, 128>}, {pipeline_mode = #tpu.pipeline_mode<synchronous>, transform_indices = @transform_3, window_bounds = array<i64: 1, 256>}, {pipeline_mode = #tpu.pipeline_mode<synchronous>, transform_indices = @transform_4, window_bounds = array<i64: 1, 256>}, {transform_indices = @transform_5, window_bounds = array<i64: 1, 8, 16, 128>}, {transform_indices = @transform_6, window_bounds = array<i64: 1, 1, 2, 128>}]} {
    %c0 = arith.constant 0 : index
    %c0_0 = arith.constant 0 : index
    %c0_1 = arith.constant 0 : index
    %c0_2 = arith.constant 0 : index
    %0 = vector.load %arg2[%c0, %c0_0, %c0_1, %c0_2] : memref<1x8x18x256xbf16, #tpu.memory_space<vmem>>, vector<1x8x18x256xbf16>
    %1 = vector.shape_cast %0 : vector<1x8x18x256xbf16> to vector<8x18x256xbf16>
    %c0_3 = arith.constant 0 : index
    %c0_4 = arith.constant 0 : index
    %c0_5 = arith.constant 0 : index
    %2 = vector.load %arg9[%c0_3, %c0_4, %c0_5] : memref<10x18x256xbf16, #tpu.memory_space<vmem>>, vector<8x18x256xbf16>
    tpu.vector_store %arg9[%c0_3, %c0_4, %c0_5], %1 {strides = array<i32>} : memref<10x18x256xbf16, #tpu.memory_space<vmem>>, vector<8x18x256xbf16>,
    %c0_6 = arith.constant 0 : index
    %c0_7 = arith.constant 0 : index
    %c0_8 = arith.constant 0 : index
    %c0_9 = arith.constant 0 : index
    %3 = vector.load %arg3[%c0_6, %c0_7, %c0_8, %c0_9] : memref<1x2x18x256xbf16, #tpu.memory_space<vmem>>, vector<1x2x18x256xbf16>
    %4 = vector.shape_cast %3 : vector<1x2x18x256xbf16> to vector<2x18x256xbf16>
    %c8 = arith.constant 8 : index
    %c0_10 = arith.constant 0 : index
    %c0_11 = arith.constant 0 : index
    %5 = vector.load %arg9[%c8, %c0_10, %c0_11] : memref<10x18x256xbf16, #tpu.memory_space<vmem>>, vector<2x18x256xbf16>
    tpu.vector_store %arg9[%c8, %c0_10, %c0_11], %4 {strides = array<i32>} : memref<10x18x256xbf16, #tpu.memory_space<vmem>>, vector<2x18x256xbf16>,
    %c0_12 = arith.constant 0 : index
    %c0_13 = arith.constant 0 : index
    %c0_14 = arith.constant 0 : index
    %6 = vector.load %arg9[%c0_12, %c0_13, %c0_14] : memref<10x18x256xbf16, #tpu.memory_space<vmem>>, vector<8x16x256xbf16>
    %c0_15 = arith.constant 0 : index
    %c1 = arith.constant 1 : index
    %c0_16 = arith.constant 0 : index
    %7 = vector.load %arg9[%c0_15, %c1, %c0_16] : memref<10x18x256xbf16, #tpu.memory_space<vmem>>, vector<8x16x256xbf16>
    %c0_17 = arith.constant 0 : index
    %c2 = arith.constant 2 : index
    %c0_18 = arith.constant 0 : index
    %8 = vector.load %arg9[%c0_17, %c2, %c0_18] : memref<10x18x256xbf16, #tpu.memory_space<vmem>>, vector<8x16x256xbf16>
    %c1_19 = arith.constant 1 : index
    %c0_20 = arith.constant 0 : index
    %c0_21 = arith.constant 0 : index
    %9 = vector.load %arg9[%c1_19, %c0_20, %c0_21] : memref<10x18x256xbf16, #tpu.memory_space<vmem>>, vector<8x16x256xbf16>
    %c1_22 = arith.constant 1 : index
    %c1_23 = arith.constant 1 : index
    %c0_24 = arith.constant 0 : index
    %10 = vector.load %arg9[%c1_22, %c1_23, %c0_24] : memref<10x18x256xbf16, #tpu.memory_space<vmem>>, vector<8x16x256xbf16>
    %c1_25 = arith.constant 1 : index
    %c2_26 = arith.constant 2 : index
    %c0_27 = arith.constant 0 : index
    %11 = vector.load %arg9[%c1_25, %c2_26, %c0_27] : memref<10x18x256xbf16, #tpu.memory_space<vmem>>, vector<8x16x256xbf16>
    %c2_28 = arith.constant 2 : index
    %c0_29 = arith.constant 0 : index
    %c0_30 = arith.constant 0 : index
    %12 = vector.load %arg9[%c2_28, %c0_29, %c0_30] : memref<10x18x256xbf16, #tpu.memory_space<vmem>>, vector<8x16x256xbf16>
    %c2_31 = arith.constant 2 : index
    %c1_32 = arith.constant 1 : index
    %c0_33 = arith.constant 0 : index
    %13 = vector.load %arg9[%c2_31, %c1_32, %c0_33] : memref<10x18x256xbf16, #tpu.memory_space<vmem>>, vector<8x16x256xbf16>
    %c2_34 = arith.constant 2 : index
    %c2_35 = arith.constant 2 : index
    %c0_36 = arith.constant 0 : index
    %14 = vector.load %arg9[%c2_34, %c2_35, %c0_36] : memref<10x18x256xbf16, #tpu.memory_space<vmem>>, vector<8x16x256xbf16>
    %15 = tpu.concatenate %6, %7, %8, %9, %10, %11, %12, %13, %14 in 2 : vector<8x16x256xbf16>, vector<8x16x256xbf16>, vector<8x16x256xbf16>, vector<8x16x256xbf16>, vector<8x16x256xbf16>, vector<8x16x256xbf16>, vector<8x16x256xbf16>, vector<8x16x256xbf16>, vector<8x16x256xbf16> -> vector<8x16x2304xbf16>
    %16 = vector.shape_cast %15 : vector<8x16x2304xbf16> to vector<128x2304xbf16>
    %c0_37 = arith.constant 0 : index
    %c0_38 = arith.constant 0 : index
    %17 = vector.load %arg4[%c0_37, %c0_38] : memref<2304x128xbf16, #tpu.memory_space<vmem>>, vector<2304x128xbf16>
    %cst = arith.constant dense<0.000000e+00> : vector<128x128xf32>
    %18 = tpu.matmul %16, %17, %cst {dimension_numbers = #tpu.dot_dimension_numbers<[1], [0], [0], [1], [0, 0, 1, 1], [], []>} : vector<128x2304xbf16>, vector<2304x128xbf16>, vector<128x128xf32> -> vector<128x128xf32>
    %19 = vector.shape_cast %18 : vector<128x128xf32> to vector<8x16x128xf32>
    %20 = tpu.iota {dimensions = array<i32: 0>} : vector<8x1x1xi32>
    %c8_i32 = arith.constant 8 : i32
    %21 = arith.muli %arg1, %c8_i32 : i32
    %22 = vector.broadcast %21 : i32 to vector<8x1x1xi32>
    %23 = arith.addi %22, %20 : vector<8x1x1xi32>
    %c16_i32 = arith.constant 16 : i32
    %24 = vector.broadcast %c16_i32 : i32 to vector<8x1x1xi32>
    %25 = arith.cmpi slt, %23, %24 : vector<8x1x1xi32>
    %cst_39 = arith.constant 0.000000e+00 : f32
    %26 = vector.shape_cast %25 : vector<8x1x1xi1> to vector<8x1x1xi1>
    %27 = vector.broadcast %26 : vector<8x1x1xi1> to vector<8x16x128xi1>
    %28 = vector.broadcast %cst_39 : f32 to vector<8x16x128xf32>
    %29 = arith.select %27, %19, %28 : vector<8x16x128xi1>, vector<8x16x128xf32>
    %30 = arith.truncf %29 : vector<8x16x128xf32> to vector<8x16x128xbf16>
    %c0_40 = arith.constant 0 : index
    %c0_41 = arith.constant 0 : index
    %c0_42 = arith.constant 0 : index
    %c0_43 = arith.constant 0 : index
    %31 = vector.load %arg7[%c0_40, %c0_41, %c0_42, %c0_43] : memref<1x8x16x128xbf16, #tpu.memory_space<vmem>>, vector<1x8x16x128xbf16>
    %32 = vector.shape_cast %31 : vector<1x8x16x128xbf16> to vector<8x16x128xbf16>
    %33 = vector.shape_cast %30 : vector<8x16x128xbf16> to vector<1x8x16x128xbf16>
    tpu.vector_store %arg7[%c0_40, %c0_41, %c0_42, %c0_43], %33 {strides = array<i32>} : memref<1x8x16x128xbf16, #tpu.memory_space<vmem>>, vector<1x8x16x128xbf16>,
    %cst_44 = arith.constant dense<0.000000e+00> : vector<128xf32>
    %34 = vector.multi_reduction <add>, %29, %cst_44 [0, 1] : vector<8x16x128xf32> to vector<128xf32>
    %35 = vector.shape_cast %34 : vector<128xf32> to vector<1x1x128xf32>
    %36 = vector.shape_cast %35 : vector<1x1x128xf32> to vector<1x128xf32>
    %c0_45 = arith.constant 0 : index
    %c0_46 = arith.constant 0 : index
    %c0_47 = arith.constant 0 : index
    %c0_48 = arith.constant 0 : index
    %37 = vector.load %arg8[%c0_45, %c0_46, %c0_47, %c0_48] : memref<1x1x2x128xf32, #tpu.memory_space<vmem>>, vector<1x1x1x128xf32>
    %38 = vector.shape_cast %37 : vector<1x1x1x128xf32> to vector<1x128xf32>
    %39 = vector.shape_cast %36 : vector<1x128xf32> to vector<1x1x1x128xf32>
    tpu.vector_store %arg8[%c0_45, %c0_46, %c0_47, %c0_48], %39 {strides = array<i32>} : memref<1x1x2x128xf32, #tpu.memory_space<vmem>>, vector<1x1x1x128xf32>,
    %40 = arith.mulf %29, %29 : vector<8x16x128xf32>
    %cst_49 = arith.constant dense<0.000000e+00> : vector<128xf32>
    %41 = vector.multi_reduction <add>, %40, %cst_49 [0, 1] : vector<8x16x128xf32> to vector<128xf32>
    %42 = vector.shape_cast %41 : vector<128xf32> to vector<1x1x128xf32>
    %43 = vector.shape_cast %42 : vector<1x1x128xf32> to vector<1x128xf32>
    %c0_50 = arith.constant 0 : index
    %c0_51 = arith.constant 0 : index
    %c1_52 = arith.constant 1 : index
    %c0_53 = arith.constant 0 : index
    %44 = vector.load %arg8[%c0_50, %c0_51, %c1_52, %c0_53] : memref<1x1x2x128xf32, #tpu.memory_space<vmem>>, vector<1x1x1x128xf32>
    %45 = vector.shape_cast %44 : vector<1x1x1x128xf32> to vector<1x128xf32>
    %46 = vector.shape_cast %43 : vector<1x128xf32> to vector<1x1x1x128xf32>
    tpu.vector_store %arg8[%c0_50, %c0_51, %c1_52, %c0_53], %46 {strides = array<i32>} : memref<1x1x2x128xf32, #tpu.memory_space<vmem>>, vector<1x1x1x128xf32>,
    return
  }
  func.func @transform_0(%arg0: i32, %arg1: i32) -> (i32, i32, i32, i32) {
    %c0_i32 = arith.constant 0 : i32
    %c0_i32_0 = arith.constant 0 : i32
    %c0_i32_1 = arith.constant 0 : i32
    return %arg0, %arg1, %c0_i32, %c0_i32_0 : i32, i32, i32, i32
  }
  func.func @transform_1(%arg0: i32, %arg1: i32) -> (i32, i32, i32, i32) {
    %c1_i32 = arith.constant 1 : i32
    %0 = arith.addi %arg1, %c1_i32 : i32
    %c4_i32 = arith.constant 4 : i32
    %1 = arith.muli %0, %c4_i32 : i32
    %c0_i32 = arith.constant 0 : i32
    %c0_i32_0 = arith.constant 0 : i32
    %c0_i32_1 = arith.constant 0 : i32
    return %arg0, %1, %c0_i32, %c0_i32_0 : i32, i32, i32, i32
  }
  func.func @transform_2(%arg0: i32, %arg1: i32) -> (i32, i32) {
    %c0_i32 = arith.constant 0 : i32
    %c0_i32_0 = arith.constant 0 : i32
    %c0_i32_1 = arith.constant 0 : i32
    return %c0_i32, %c0_i32_0 : i32, i32
  }
  func.func @transform_3(%arg0: i32, %arg1: i32) -> (i32, i32) {
    %c0_i32 = arith.constant 0 : i32
    %c0_i32_0 = arith.constant 0 : i32
    %c0_i32_1 = arith.constant 0 : i32
    return %c0_i32, %c0_i32_0 : i32, i32
  }
  func.func @transform_4(%arg0: i32, %arg1: i32) -> (i32, i32) {
    %c0_i32 = arith.constant 0 : i32
    %c0_i32_0 = arith.constant 0 : i32
    %c0_i32_1 = arith.constant 0 : i32
    return %c0_i32, %c0_i32_0 : i32, i32
  }
  func.func @transform_5(%arg0: i32, %arg1: i32) -> (i32, i32, i32, i32) {
    %c0_i32 = arith.constant 0 : i32
    %c0_i32_0 = arith.constant 0 : i32
    %c0_i32_1 = arith.constant 0 : i32
    return %arg0, %arg1, %c0_i32, %c0_i32_0 : i32, i32, i32, i32
  }
  func.func @transform_6(%arg0: i32, %arg1: i32) -> (i32, i32, i32, i32) {
    %c0_i32 = arith.constant 0 : i32
    %c0_i32_0 = arith.constant 0 : i32
    %c0_i32_1 = arith.constant 0 : i32
    return %arg0, %arg1, %c0_i32, %c0_i32_0 : i32, i32, i32, i32
  }
}

module attributes {stable_mosaic.version = 11 : i64} {
  func.func @_bn_relu_kernel(%arg0: i32, %arg1: i32, %arg2: memref<1x8x16x128xf32, #tpu.memory_space<vmem>>, %arg3: memref<1x1x1x128xf32, #tpu.memory_space<vmem>>, %arg4: memref<1x1x1x128xf32, #tpu.memory_space<vmem>>, %arg5: memref<1x8x16x128xf32, #tpu.memory_space<vmem>>) attributes {dimension_semantics = [#tpu.dimension_semantics<parallel>, #tpu.dimension_semantics<parallel>], iteration_bounds = array<i64: 2, 2>, scalar_prefetch = 0 : i64, scratch_operands = 0 : i64, tpu.core_type = #tpu.core_type<tc>, window_params = [{transform_indices = @transform_0, window_bounds = array<i64: 1, 8, 16, 128>}, {pipeline_mode = #tpu.pipeline_mode<synchronous>, transform_indices = @transform_1, window_bounds = array<i64: 1, 1, 1, 128>}, {pipeline_mode = #tpu.pipeline_mode<synchronous>, transform_indices = @transform_2, window_bounds = array<i64: 1, 1, 1, 128>}, {transform_indices = @transform_3, window_bounds = array<i64: 1, 8, 16, 128>}]} {
    %c0 = arith.constant 0 : index
    %c0_0 = arith.constant 0 : index
    %c0_1 = arith.constant 0 : index
    %c0_2 = arith.constant 0 : index
    %0 = vector.load %arg2[%c0, %c0_0, %c0_1, %c0_2] : memref<1x8x16x128xf32, #tpu.memory_space<vmem>>, vector<1x8x16x128xf32>
    %c0_3 = arith.constant 0 : index
    %c0_4 = arith.constant 0 : index
    %c0_5 = arith.constant 0 : index
    %c0_6 = arith.constant 0 : index
    %1 = vector.load %arg3[%c0_3, %c0_4, %c0_5, %c0_6] : memref<1x1x1x128xf32, #tpu.memory_space<vmem>>, vector<1x1x1x128xf32>
    %2 = vector.broadcast %1 : vector<1x1x1x128xf32> to vector<1x8x16x128xf32>
    %3 = arith.mulf %0, %2 : vector<1x8x16x128xf32>
    %c0_7 = arith.constant 0 : index
    %c0_8 = arith.constant 0 : index
    %c0_9 = arith.constant 0 : index
    %c0_10 = arith.constant 0 : index
    %4 = vector.load %arg4[%c0_7, %c0_8, %c0_9, %c0_10] : memref<1x1x1x128xf32, #tpu.memory_space<vmem>>, vector<1x1x1x128xf32>
    %5 = vector.broadcast %4 : vector<1x1x1x128xf32> to vector<1x8x16x128xf32>
    %6 = arith.addf %3, %5 : vector<1x8x16x128xf32>
    %cst = arith.constant 0.000000e+00 : f32
    %7 = vector.broadcast %cst : f32 to vector<1x8x16x128xf32>
    %8 = arith.maximumf %6, %7 : vector<1x8x16x128xf32>
    %c0_11 = arith.constant 0 : index
    %c0_12 = arith.constant 0 : index
    %c0_13 = arith.constant 0 : index
    %c0_14 = arith.constant 0 : index
    %9 = vector.load %arg5[%c0_11, %c0_12, %c0_13, %c0_14] : memref<1x8x16x128xf32, #tpu.memory_space<vmem>>, vector<1x8x16x128xf32>
    tpu.vector_store %arg5[%c0_11, %c0_12, %c0_13, %c0_14], %8 {strides = array<i32>} : memref<1x8x16x128xf32, #tpu.memory_space<vmem>>, vector<1x8x16x128xf32>,
    return
  }
  func.func @transform_0(%arg0: i32, %arg1: i32) -> (i32, i32, i32, i32) {
    %c0_i32 = arith.constant 0 : i32
    %c0_i32_0 = arith.constant 0 : i32
    %c0_i32_1 = arith.constant 0 : i32
    return %arg0, %arg1, %c0_i32, %c0_i32_0 : i32, i32, i32, i32
  }
  func.func @transform_1(%arg0: i32, %arg1: i32) -> (i32, i32, i32, i32) {
    %c0_i32 = arith.constant 0 : i32
    %c0_i32_0 = arith.constant 0 : i32
    %c0_i32_1 = arith.constant 0 : i32
    %c0_i32_2 = arith.constant 0 : i32
    %c0_i32_3 = arith.constant 0 : i32
    return %c0_i32, %c0_i32_0, %c0_i32_1, %c0_i32_2 : i32, i32, i32, i32
  }
  func.func @transform_2(%arg0: i32, %arg1: i32) -> (i32, i32, i32, i32) {
    %c0_i32 = arith.constant 0 : i32
    %c0_i32_0 = arith.constant 0 : i32
    %c0_i32_1 = arith.constant 0 : i32
    %c0_i32_2 = arith.constant 0 : i32
    %c0_i32_3 = arith.constant 0 : i32
    return %c0_i32, %c0_i32_0, %c0_i32_1, %c0_i32_2 : i32, i32, i32, i32
  }
  func.func @transform_3(%arg0: i32, %arg1: i32) -> (i32, i32, i32, i32) {
    %c0_i32 = arith.constant 0 : i32
    %c0_i32_0 = arith.constant 0 : i32
    %c0_i32_1 = arith.constant 0 : i32
    return %arg0, %arg1, %c0_i32, %c0_i32_0 : i32, i32, i32, i32
  }
}

module attributes {stable_mosaic.version = 11 : i64} {
  func.func @_conv_stats_kernel(%arg0: i32, %arg1: i32, %arg2: memref<1x8x18x128xbf16, #tpu.memory_space<vmem>>, %arg3: memref<1x2x18x128xbf16, #tpu.memory_space<vmem>>, %arg4: memref<1152x128xbf16, #tpu.memory_space<vmem>>, %arg5: memref<1x128xf32, #tpu.memory_space<vmem>>, %arg6: memref<1x128xf32, #tpu.memory_space<vmem>>, %arg7: memref<1x8x16x128xf32, #tpu.memory_space<vmem>>, %arg8: memref<1x1x2x128xf32, #tpu.memory_space<vmem>>, %arg9: memref<10x18x128xbf16, #tpu.memory_space<vmem>>) attributes {dimension_semantics = [#tpu.dimension_semantics<parallel>, #tpu.dimension_semantics<parallel>], iteration_bounds = array<i64: 2, 2>, scalar_prefetch = 0 : i64, scratch_operands = 1 : i64, tpu.core_type = #tpu.core_type<tc>, window_params = [{transform_indices = @transform_0, window_bounds = array<i64: 1, 8, 18, 128>}, {transform_indices = @transform_1, window_bounds = array<i64: 1, 2, 18, 128>}, {pipeline_mode = #tpu.pipeline_mode<synchronous>, transform_indices = @transform_2, window_bounds = array<i64: 1152, 128>}, {pipeline_mode = #tpu.pipeline_mode<synchronous>, transform_indices = @transform_3, window_bounds = array<i64: 1, 128>}, {pipeline_mode = #tpu.pipeline_mode<synchronous>, transform_indices = @transform_4, window_bounds = array<i64: 1, 128>}, {transform_indices = @transform_5, window_bounds = array<i64: 1, 8, 16, 128>}, {transform_indices = @transform_6, window_bounds = array<i64: 1, 1, 2, 128>}]} {
    %c0 = arith.constant 0 : index
    %c0_0 = arith.constant 0 : index
    %c0_1 = arith.constant 0 : index
    %c0_2 = arith.constant 0 : index
    %0 = vector.load %arg2[%c0, %c0_0, %c0_1, %c0_2] : memref<1x8x18x128xbf16, #tpu.memory_space<vmem>>, vector<1x8x18x128xbf16>
    %1 = vector.shape_cast %0 : vector<1x8x18x128xbf16> to vector<8x18x128xbf16>
    %c0_3 = arith.constant 0 : index
    %c0_4 = arith.constant 0 : index
    %c0_5 = arith.constant 0 : index
    %2 = vector.load %arg9[%c0_3, %c0_4, %c0_5] : memref<10x18x128xbf16, #tpu.memory_space<vmem>>, vector<8x18x128xbf16>
    tpu.vector_store %arg9[%c0_3, %c0_4, %c0_5], %1 {strides = array<i32>} : memref<10x18x128xbf16, #tpu.memory_space<vmem>>, vector<8x18x128xbf16>,
    %c0_6 = arith.constant 0 : index
    %c0_7 = arith.constant 0 : index
    %c0_8 = arith.constant 0 : index
    %c0_9 = arith.constant 0 : index
    %3 = vector.load %arg3[%c0_6, %c0_7, %c0_8, %c0_9] : memref<1x2x18x128xbf16, #tpu.memory_space<vmem>>, vector<1x2x18x128xbf16>
    %4 = vector.shape_cast %3 : vector<1x2x18x128xbf16> to vector<2x18x128xbf16>
    %c8 = arith.constant 8 : index
    %c0_10 = arith.constant 0 : index
    %c0_11 = arith.constant 0 : index
    %5 = vector.load %arg9[%c8, %c0_10, %c0_11] : memref<10x18x128xbf16, #tpu.memory_space<vmem>>, vector<2x18x128xbf16>
    tpu.vector_store %arg9[%c8, %c0_10, %c0_11], %4 {strides = array<i32>} : memref<10x18x128xbf16, #tpu.memory_space<vmem>>, vector<2x18x128xbf16>,
    %c8_i32 = arith.constant 8 : i32
    %6 = arith.muli %arg1, %c8_i32 : i32
    %7 = tpu.iota {dimensions = array<i32: 0>} : vector<10x1x1xi32>
    %8 = vector.broadcast %6 : i32 to vector<10x1x1xi32>
    %9 = arith.addi %8, %7 : vector<10x1x1xi32>
    %10 = tpu.iota {dimensions = array<i32: 1>} : vector<1x18x1xi32>
    %c1_i32 = arith.constant 1 : i32
    %11 = vector.broadcast %c1_i32 : i32 to vector<10x1x1xi32>
    %12 = arith.cmpi sge, %9, %11 : vector<10x1x1xi32>
    %c16_i32 = arith.constant 16 : i32
    %13 = vector.broadcast %c16_i32 : i32 to vector<10x1x1xi32>
    %14 = arith.cmpi sle, %9, %13 : vector<10x1x1xi32>
    %15 = arith.andi %12, %14 : vector<10x1x1xi1>
    %c1_i32_12 = arith.constant 1 : i32
    %16 = vector.broadcast %c1_i32_12 : i32 to vector<1x18x1xi32>
    %17 = arith.cmpi sge, %10, %16 : vector<1x18x1xi32>
    %18 = vector.broadcast %15 : vector<10x1x1xi1> to vector<10x18x1xi1>
    %19 = vector.broadcast %17 : vector<1x18x1xi1> to vector<10x18x1xi1>
    %20 = arith.andi %18, %19 : vector<10x18x1xi1>
    %c16_i32_13 = arith.constant 16 : i32
    %21 = vector.broadcast %c16_i32_13 : i32 to vector<1x18x1xi32>
    %22 = arith.cmpi sle, %10, %21 : vector<1x18x1xi32>
    %23 = vector.broadcast %22 : vector<1x18x1xi1> to vector<10x18x1xi1>
    %24 = arith.andi %20, %23 : vector<10x18x1xi1>
    %c0_14 = arith.constant 0 : index
    %c0_15 = arith.constant 0 : index
    %25 = vector.load %arg5[%c0_14, %c0_15] : memref<1x128xf32, #tpu.memory_space<vmem>>, vector<1x128xf32>
    %26 = vector.shape_cast %25 : vector<1x128xf32> to vector<1x1x128xf32>
    %c0_16 = arith.constant 0 : index
    %c0_17 = arith.constant 0 : index
    %27 = vector.load %arg6[%c0_16, %c0_17] : memref<1x128xf32, #tpu.memory_space<vmem>>, vector<1x128xf32>
    %28 = vector.shape_cast %27 : vector<1x128xf32> to vector<1x1x128xf32>
    %c0_18 = arith.constant 0 : index
    %c0_19 = arith.constant 0 : index
    %c0_20 = arith.constant 0 : index
    %29 = vector.load %arg9[%c0_18, %c0_19, %c0_20] : memref<10x18x128xbf16, #tpu.memory_space<vmem>>, vector<10x18x128xbf16>
    %30 = arith.extf %29 : vector<10x18x128xbf16> to vector<10x18x128xf32>
    %31 = vector.broadcast %26 : vector<1x1x128xf32> to vector<10x18x128xf32>
    %32 = arith.mulf %30, %31 : vector<10x18x128xf32>
    %33 = vector.broadcast %28 : vector<1x1x128xf32> to vector<10x18x128xf32>
    %34 = arith.addf %32, %33 : vector<10x18x128xf32>
    %cst = arith.constant 0.000000e+00 : f32
    %35 = vector.broadcast %cst : f32 to vector<10x18x128xf32>
    %36 = arith.maximumf %34, %35 : vector<10x18x128xf32>
    %cst_21 = arith.constant 0.000000e+00 : f32
    %37 = vector.shape_cast %24 : vector<10x18x1xi1> to vector<10x18x1xi1>
    %38 = vector.broadcast %37 : vector<10x18x1xi1> to vector<10x18x128xi1>
    %39 = vector.broadcast %cst_21 : f32 to vector<10x18x128xf32>
    %40 = arith.select %38, %36, %39 : vector<10x18x128xi1>, vector<10x18x128xf32>
    %41 = arith.truncf %40 : vector<10x18x128xf32> to vector<10x18x128xbf16>
    %c0_22 = arith.constant 0 : index
    %c0_23 = arith.constant 0 : index
    %c0_24 = arith.constant 0 : index
    %42 = vector.load %arg9[%c0_22, %c0_23, %c0_24] : memref<10x18x128xbf16, #tpu.memory_space<vmem>>, vector<10x18x128xbf16>
    tpu.vector_store %arg9[%c0_22, %c0_23, %c0_24], %41 {strides = array<i32>} : memref<10x18x128xbf16, #tpu.memory_space<vmem>>, vector<10x18x128xbf16>,
    %c0_25 = arith.constant 0 : index
    %c0_26 = arith.constant 0 : index
    %c0_27 = arith.constant 0 : index
    %43 = vector.load %arg9[%c0_25, %c0_26, %c0_27] : memref<10x18x128xbf16, #tpu.memory_space<vmem>>, vector<8x16x128xbf16>
    %c0_28 = arith.constant 0 : index
    %c1 = arith.constant 1 : index
    %c0_29 = arith.constant 0 : index
    %44 = vector.load %arg9[%c0_28, %c1, %c0_29] : memref<10x18x128xbf16, #tpu.memory_space<vmem>>, vector<8x16x128xbf16>
    %c0_30 = arith.constant 0 : index
    %c2 = arith.constant 2 : index
    %c0_31 = arith.constant 0 : index
    %45 = vector.load %arg9[%c0_30, %c2, %c0_31] : memref<10x18x128xbf16, #tpu.memory_space<vmem>>, vector<8x16x128xbf16>
    %c1_32 = arith.constant 1 : index
    %c0_33 = arith.constant 0 : index
    %c0_34 = arith.constant 0 : index
    %46 = vector.load %arg9[%c1_32, %c0_33, %c0_34] : memref<10x18x128xbf16, #tpu.memory_space<vmem>>, vector<8x16x128xbf16>
    %c1_35 = arith.constant 1 : index
    %c1_36 = arith.constant 1 : index
    %c0_37 = arith.constant 0 : index
    %47 = vector.load %arg9[%c1_35, %c1_36, %c0_37] : memref<10x18x128xbf16, #tpu.memory_space<vmem>>, vector<8x16x128xbf16>
    %c1_38 = arith.constant 1 : index
    %c2_39 = arith.constant 2 : index
    %c0_40 = arith.constant 0 : index
    %48 = vector.load %arg9[%c1_38, %c2_39, %c0_40] : memref<10x18x128xbf16, #tpu.memory_space<vmem>>, vector<8x16x128xbf16>
    %c2_41 = arith.constant 2 : index
    %c0_42 = arith.constant 0 : index
    %c0_43 = arith.constant 0 : index
    %49 = vector.load %arg9[%c2_41, %c0_42, %c0_43] : memref<10x18x128xbf16, #tpu.memory_space<vmem>>, vector<8x16x128xbf16>
    %c2_44 = arith.constant 2 : index
    %c1_45 = arith.constant 1 : index
    %c0_46 = arith.constant 0 : index
    %50 = vector.load %arg9[%c2_44, %c1_45, %c0_46] : memref<10x18x128xbf16, #tpu.memory_space<vmem>>, vector<8x16x128xbf16>
    %c2_47 = arith.constant 2 : index
    %c2_48 = arith.constant 2 : index
    %c0_49 = arith.constant 0 : index
    %51 = vector.load %arg9[%c2_47, %c2_48, %c0_49] : memref<10x18x128xbf16, #tpu.memory_space<vmem>>, vector<8x16x128xbf16>
    %52 = tpu.concatenate %43, %44, %45, %46, %47, %48, %49, %50, %51 in 2 : vector<8x16x128xbf16>, vector<8x16x128xbf16>, vector<8x16x128xbf16>, vector<8x16x128xbf16>, vector<8x16x128xbf16>, vector<8x16x128xbf16>, vector<8x16x128xbf16>, vector<8x16x128xbf16>, vector<8x16x128xbf16> -> vector<8x16x1152xbf16>
    %53 = vector.shape_cast %52 : vector<8x16x1152xbf16> to vector<128x1152xbf16>
    %c0_50 = arith.constant 0 : index
    %c0_51 = arith.constant 0 : index
    %54 = vector.load %arg4[%c0_50, %c0_51] : memref<1152x128xbf16, #tpu.memory_space<vmem>>, vector<1152x128xbf16>
    %cst_52 = arith.constant dense<0.000000e+00> : vector<128x128xf32>
    %55 = tpu.matmul %53, %54, %cst_52 {dimension_numbers = #tpu.dot_dimension_numbers<[1], [0], [0], [1], [0, 0, 1, 1], [], []>} : vector<128x1152xbf16>, vector<1152x128xbf16>, vector<128x128xf32> -> vector<128x128xf32>
    %56 = vector.shape_cast %55 : vector<128x128xf32> to vector<8x16x128xf32>
    %57 = tpu.iota {dimensions = array<i32: 0>} : vector<8x1x1xi32>
    %c8_i32_53 = arith.constant 8 : i32
    %58 = arith.muli %arg1, %c8_i32_53 : i32
    %59 = vector.broadcast %58 : i32 to vector<8x1x1xi32>
    %60 = arith.addi %59, %57 : vector<8x1x1xi32>
    %c16_i32_54 = arith.constant 16 : i32
    %61 = vector.broadcast %c16_i32_54 : i32 to vector<8x1x1xi32>
    %62 = arith.cmpi slt, %60, %61 : vector<8x1x1xi32>
    %cst_55 = arith.constant 0.000000e+00 : f32
    %63 = vector.shape_cast %62 : vector<8x1x1xi1> to vector<8x1x1xi1>
    %64 = vector.broadcast %63 : vector<8x1x1xi1> to vector<8x16x128xi1>
    %65 = vector.broadcast %cst_55 : f32 to vector<8x16x128xf32>
    %66 = arith.select %64, %56, %65 : vector<8x16x128xi1>, vector<8x16x128xf32>
    %c0_56 = arith.constant 0 : index
    %c0_57 = arith.constant 0 : index
    %c0_58 = arith.constant 0 : index
    %c0_59 = arith.constant 0 : index
    %67 = vector.load %arg7[%c0_56, %c0_57, %c0_58, %c0_59] : memref<1x8x16x128xf32, #tpu.memory_space<vmem>>, vector<1x8x16x128xf32>
    %68 = vector.shape_cast %67 : vector<1x8x16x128xf32> to vector<8x16x128xf32>
    %69 = vector.shape_cast %66 : vector<8x16x128xf32> to vector<1x8x16x128xf32>
    tpu.vector_store %arg7[%c0_56, %c0_57, %c0_58, %c0_59], %69 {strides = array<i32>} : memref<1x8x16x128xf32, #tpu.memory_space<vmem>>, vector<1x8x16x128xf32>,
    %cst_60 = arith.constant dense<0.000000e+00> : vector<128xf32>
    %70 = vector.multi_reduction <add>, %66, %cst_60 [0, 1] : vector<8x16x128xf32> to vector<128xf32>
    %71 = vector.shape_cast %70 : vector<128xf32> to vector<1x1x128xf32>
    %72 = vector.shape_cast %71 : vector<1x1x128xf32> to vector<1x128xf32>
    %c0_61 = arith.constant 0 : index
    %c0_62 = arith.constant 0 : index
    %c0_63 = arith.constant 0 : index
    %c0_64 = arith.constant 0 : index
    %73 = vector.load %arg8[%c0_61, %c0_62, %c0_63, %c0_64] : memref<1x1x2x128xf32, #tpu.memory_space<vmem>>, vector<1x1x1x128xf32>
    %74 = vector.shape_cast %73 : vector<1x1x1x128xf32> to vector<1x128xf32>
    %75 = vector.shape_cast %72 : vector<1x128xf32> to vector<1x1x1x128xf32>
    tpu.vector_store %arg8[%c0_61, %c0_62, %c0_63, %c0_64], %75 {strides = array<i32>} : memref<1x1x2x128xf32, #tpu.memory_space<vmem>>, vector<1x1x1x128xf32>,
    %76 = arith.mulf %66, %66 : vector<8x16x128xf32>
    %cst_65 = arith.constant dense<0.000000e+00> : vector<128xf32>
    %77 = vector.multi_reduction <add>, %76, %cst_65 [0, 1] : vector<8x16x128xf32> to vector<128xf32>
    %78 = vector.shape_cast %77 : vector<128xf32> to vector<1x1x128xf32>
    %79 = vector.shape_cast %78 : vector<1x1x128xf32> to vector<1x128xf32>
    %c0_66 = arith.constant 0 : index
    %c0_67 = arith.constant 0 : index
    %c1_68 = arith.constant 1 : index
    %c0_69 = arith.constant 0 : index
    %80 = vector.load %arg8[%c0_66, %c0_67, %c1_68, %c0_69] : memref<1x1x2x128xf32, #tpu.memory_space<vmem>>, vector<1x1x1x128xf32>
    %81 = vector.shape_cast %80 : vector<1x1x1x128xf32> to vector<1x128xf32>
    %82 = vector.shape_cast %79 : vector<1x128xf32> to vector<1x1x1x128xf32>
    tpu.vector_store %arg8[%c0_66, %c0_67, %c1_68, %c0_69], %82 {strides = array<i32>} : memref<1x1x2x128xf32, #tpu.memory_space<vmem>>, vector<1x1x1x128xf32>,
    return
  }
  func.func @transform_0(%arg0: i32, %arg1: i32) -> (i32, i32, i32, i32) {
    %c0_i32 = arith.constant 0 : i32
    %c0_i32_0 = arith.constant 0 : i32
    %c0_i32_1 = arith.constant 0 : i32
    return %arg0, %arg1, %c0_i32, %c0_i32_0 : i32, i32, i32, i32
  }
  func.func @transform_1(%arg0: i32, %arg1: i32) -> (i32, i32, i32, i32) {
    %c1_i32 = arith.constant 1 : i32
    %0 = arith.addi %arg1, %c1_i32 : i32
    %c4_i32 = arith.constant 4 : i32
    %1 = arith.muli %0, %c4_i32 : i32
    %c0_i32 = arith.constant 0 : i32
    %c0_i32_0 = arith.constant 0 : i32
    %c0_i32_1 = arith.constant 0 : i32
    return %arg0, %1, %c0_i32, %c0_i32_0 : i32, i32, i32, i32
  }
  func.func @transform_2(%arg0: i32, %arg1: i32) -> (i32, i32) {
    %c0_i32 = arith.constant 0 : i32
    %c0_i32_0 = arith.constant 0 : i32
    %c0_i32_1 = arith.constant 0 : i32
    return %c0_i32, %c0_i32_0 : i32, i32
  }
  func.func @transform_3(%arg0: i32, %arg1: i32) -> (i32, i32) {
    %c0_i32 = arith.constant 0 : i32
    %c0_i32_0 = arith.constant 0 : i32
    %c0_i32_1 = arith.constant 0 : i32
    return %c0_i32, %c0_i32_0 : i32, i32
  }
  func.func @transform_4(%arg0: i32, %arg1: i32) -> (i32, i32) {
    %c0_i32 = arith.constant 0 : i32
    %c0_i32_0 = arith.constant 0 : i32
    %c0_i32_1 = arith.constant 0 : i32
    return %c0_i32, %c0_i32_0 : i32, i32
  }
  func.func @transform_5(%arg0: i32, %arg1: i32) -> (i32, i32, i32, i32) {
    %c0_i32 = arith.constant 0 : i32
    %c0_i32_0 = arith.constant 0 : i32
    %c0_i32_1 = arith.constant 0 : i32
    return %arg0, %arg1, %c0_i32, %c0_i32_0 : i32, i32, i32, i32
  }
  func.func @transform_6(%arg0: i32, %arg1: i32) -> (i32, i32, i32, i32) {
    %c0_i32 = arith.constant 0 : i32
    %c0_i32_0 = arith.constant 0 : i32
    %c0_i32_1 = arith.constant 0 : i32
    return %arg0, %arg1, %c0_i32, %c0_i32_0 : i32, i32, i32, i32
  }
}

</mosaic_0001>

<bundles_post_ra>
// kernel: tile.8
= control target key start
LH: loop header
LB: loop body
LE: loop exit
PB: predicated region body
PF: predicated region fallthrough
CT: control target
= control target key end

     0   :  { %s22_s0 = inlined_call_operand.vmem [shape: f32[128], index: 0, kind: input, shape index: {}]   ;;  %s23_s1 = inlined_call_operand.vmem [shape: f32[4,128], index: 1, kind: output, shape index: {}]  }
   0x1   :  { %v4_v0 = vld [vmem:[%s22_s0] ss:$0 sm:$0xff] }
   0x2   :  { %5 = vst [vmem:[%s23_s1] sm:$0xf] %v4_v0 }

// kernel: upblock_forward.4
= control target key start
LH: loop header
LB: loop body
LE: loop exit
PB: predicated region body
PF: predicated region fallthrough
CT: control target
= control target key end

     0   :  { %v908_v1 = vmov 0   ;;  %v65_v41 = vlaneseq  ;;  %s1236_s1 = inlined_call_operand.vmem [shape: bf16[128,512], index: 1, kind: input, shape index: {}]   ;;  %s1237_s0 = inlined_call_operand.vmem [shape: bf16[128,128], index: 0, kind: input, shape index: {}]   ;;  %s1238_s2 = inlined_call_operand.vmem [shape: f32[1,512], index: 2, kind: input, shape index: {}]   ;;  %s1239_s3 = inlined_call_operand.vmem [shape: bf16[128,512], index: 3, kind: output, shape index: {}]  }
   0x1   :  { %v852_v0 = vld [vmem:[%s1236_s1 + $0x4] ss:$16 sps:$4 sm:$0xff]   ;;  %325 = vmatprep.mubr.bf16.mxu0 %v908_v1  ;;  %438 = vmatprep.mubr.bf16.mxu1 %v908_v1  ;;  %v854_v2 = vld [vmem:[%s1236_s1 + $0xc] ss:$16 sps:$4 sm:$0xff]   ;;  %v856_v3 = vld [vmem:[%s1236_s1] ss:$16 sps:$4 sm:$0xff]  }
   0x2   :  { %293 = vmatprep.subr.bf16.mxu0 %v852_v0  ;;  %v857_v4 = vld [vmem:[%s1236_s1 + $0x8] ss:$16 sps:$4 sm:$0xff]   ;;  %406 = vmatprep.subr.bf16.mxu1 %v854_v2  ;;  %v858_v5 = vld [vmem:[%s1236_s1 + $0x24] ss:$16 sps:$4 sm:$0xff]   ;;  %v860_v6 = vld [vmem:[%s1236_s1 + $0x2c] ss:$16 sps:$4 sm:$0xff]  }
   0x3   :  { %294 = vmatpush1.bf16.msra.mxu0 %v856_v3  ;;  %407 = vmatpush1.bf16.msra.mxu1 %v857_v4  ;;  %v862_v7 = vld [vmem:[%s1236_s1 + $0x20] ss:$16 sps:$4 sm:$0xff]   ;;  %v863_v8 = vld [vmem:[%s1236_s1 + $0x28] ss:$16 sps:$4 sm:$0xff]   ;;  %v864_v9 = vld [vmem:[%s1236_s1 + $0x44] ss:$16 sps:$4 sm:$0xff]  }
   0x4   :  { %295 = vmatprep.subr.bf16.mxu0 %v858_v5  ;;  %408 = vmatprep.subr.bf16.mxu1 %v860_v6  ;;  %v866_v10 = vld [vmem:[%s1236_s1 + $0x4c] ss:$16 sps:$4 sm:$0xff]   ;;  %v868_v11 = vld [vmem:[%s1236_s1 + $0x40] ss:$16 sps:$4 sm:$0xff]   ;;  %v869_v12 = vld [vmem:[%s1236_s1 + $0x48] ss:$16 sps:$4 sm:$0xff]  }
   0x5   :  { %v870_v13 = vld [vmem:[%s1236_s1 + $0x64] ss:$16 sps:$4 sm:$0xff]   ;;  %v872_v14 = vld [vmem:[%s1236_s1 + $0x6c] ss:$16 sps:$4 sm:$0xff]   ;;  %v874_v15 = vld [vmem:[%s1236_s1 + $0x60] ss:$16 sps:$4 sm:$0xff]  }
   0x6   :  { %v875_v16 = vld [vmem:[%s1236_s1 + $0x68] ss:$16 sps:$4 sm:$0xff]   ;;  %v876_v17 = vld [vmem:[%s1236_s1 + $0x84] ss:$16 sps:$4 sm:$0xff]   ;;  %v878_v18 = vld [vmem:[%s1236_s1 + $0x8c] ss:$16 sps:$4 sm:$0xff]  }
   0x7   :  { %296 = vmatpush1.bf16.msra.mxu0 %v862_v7  ;;  %409 = vmatpush1.bf16.msra.mxu1 %v863_v8  ;;  %v880_v19 = vld [vmem:[%s1236_s1 + $0x80] ss:$16 sps:$4 sm:$0xff]   ;;  %v881_v20 = vld [vmem:[%s1236_s1 + $0x88] ss:$16 sps:$4 sm:$0xff]   ;;  %v882_v21 = vld [vmem:[%s1236_s1 + $0xa4] ss:$16 sps:$4 sm:$0xff]  }
   0x8   :  { %297 = vmatprep.subr.bf16.mxu0 %v864_v9  ;;  %410 = vmatprep.subr.bf16.mxu1 %v866_v10  ;;  %v884_v22 = vld [vmem:[%s1236_s1 + $0xac] ss:$16 sps:$4 sm:$0xff]   ;;  %v886_v23 = vld [vmem:[%s1236_s1 + $0xa0] ss:$16 sps:$4 sm:$0xff]   ;;  %v887_v24 = vld [vmem:[%s1236_s1 + $0xa8] ss:$16 sps:$4 sm:$0xff]  }
   0x9   :  { %v888_v25 = vld [vmem:[%s1236_s1 + $0xc4] ss:$16 sps:$4 sm:$0xff]   ;;  %v890_v26 = vld [vmem:[%s1236_s1 + $0xcc] ss:$16 sps:$4 sm:$0xff]   ;;  %v892_v27 = vld [vmem:[%s1236_s1 + $0xc0] ss:$16 sps:$4 sm:$0xff]  }
   0xa   :  { %v893_v28 = vld [vmem:[%s1236_s1 + $0xc8] ss:$16 sps:$4 sm:$0xff]   ;;  %v894_v29 = vld [vmem:[%s1236_s1 + $0xe4] ss:$16 sps:$4 sm:$0xff]   ;;  %v896_v30 = vld [vmem:[%s1236_s1 + $0xec] ss:$16 sps:$4 sm:$0xff]  }
   0xb   :  { %298 = vmatpush1.bf16.msra.mxu0 %v868_v11  ;;  %411 = vmatpush1.bf16.msra.mxu1 %v869_v12  ;;  %v898_v31 = vld [vmem:[%s1236_s1 + $0xe0] ss:$16 sps:$4 sm:$0xff]   ;;  %v899_v32 = vld [vmem:[%s1236_s1 + $0xe8] ss:$16 sps:$4 sm:$0xff]   ;;  %v66_v42 = vshrl.u32 %v65_v41, 7 }
   0xc   :  { %299 = vmatprep.subr.bf16.mxu0 %v870_v13  ;;  %412 = vmatprep.subr.bf16.mxu1 %v872_v14  ;;  %v900_v33 = vld [vmem:[%s1237_s0] sm:$0xff]   ;;  %v901_v34 = vld [vmem:[%s1237_s0 + $0x8] sm:$0xff]   ;;  %v902_v35 = vld [vmem:[%s1237_s0 + $0x10] sm:$0xff]  }
   0xd   :  { %v903_v36 = vld [vmem:[%s1237_s0 + $0x18] sm:$0xff]   ;;  %v904_v37 = vld [vmem:[%s1237_s0 + $0x20] sm:$0xff]   ;;  %v905_v38 = vld [vmem:[%s1237_s0 + $0x28] sm:$0xff]   ;;  %v67_v43 = vsub.s32 0, %v66_v42  ;;  %v75_v44 = vsub.s32 2, %v66_v42  ;;  %v71_v46 = vsub.s32 1, %v66_v42 }
   0xe   :  { %v906_v39 = vld [vmem:[%s1237_s0 + $0x30] sm:$0xff]   ;;  %v907_v40 = vld [vmem:[%s1237_s0 + $0x38] sm:$0xff]   ;;  %v63_v45 = vld [vmem:[%s1238_s2] sm:$0xf]  ;;  %v79_v47 = vsub.s32 3, %v66_v42 }
   0xf   :  { %300 = vmatpush1.bf16.msra.mxu0 %v874_v15  ;;  %413 = vmatpush1.bf16.msra.mxu1 %v875_v16  ;;  %v1068_v48 = vrot.slane %v63_v45, %v67_v43  ;;  %v1070_v49 = vrot.slane %v63_v45, %v75_v44  ;;  %v1072_v50 = vrot.slane %v63_v45, %v71_v46 }
  0x10   :  { %301 = vmatprep.subr.bf16.mxu0 %v876_v17  ;;  %414 = vmatprep.subr.bf16.mxu1 %v878_v18  ;;  %v1074_v51 = vrot.slane %v63_v45, %v79_v47 }
  0x13   :  { %302 = vmatpush1.bf16.msra.mxu0 %v880_v19  ;;  %415 = vmatpush1.bf16.msra.mxu1 %v881_v20 }
  0x14   :  { %303 = vmatprep.subr.bf16.mxu0 %v882_v21  ;;  %416 = vmatprep.subr.bf16.mxu1 %v884_v22 }
  0x17   :  { %304 = vmatpush1.bf16.msra.mxu0 %v886_v23  ;;  %417 = vmatpush1.bf16.msra.mxu1 %v887_v24 }
  0x18   :  { %305 = vmatprep.subr.bf16.mxu0 %v888_v25  ;;  %418 = vmatprep.subr.bf16.mxu1 %v890_v26 }
  0x1b   :  { %306 = vmatpush1.bf16.msra.mxu0 %v892_v27  ;;  %419 = vmatpush1.bf16.msra.mxu1 %v893_v28 }
  0x1c   :  { %307 = vmatprep.subr.bf16.mxu0 %v894_v29  ;;  %420 = vmatprep.subr.bf16.mxu1 %v896_v30 }
  0x1f   :  { %308 = vmatpush1.bf16.msra.mxu0 %v898_v31  ;;  %421 = vmatpush1.bf16.msra.mxu1 %v899_v32 }
  0x22   :  { %326 = vmatmul.mubr.bf16.vlgmr.msra.gmra.mrb[0].mxu0 %v900_v33  ;;  %439 = vmatmul.mubr.bf16.vlgmr.msra.gmra.mrb[0].mxu1 %v900_v33 }
  0x23   :  { %335 = vmatprep.mubr.bf16.mxu0 %v908_v1  ;;  %448 = vmatprep.mubr.bf16.mxu1 %v908_v1 }
  0x2a   :  { %336 = vmatmul.mubr.bf16.gmra.mrb[4].mxu0 %v901_v34  ;;  %449 = vmatmul.mubr.bf16.gmra.mrb[4].mxu1 %v901_v34 }
  0x2b   :  { %345 = vmatprep.mubr.bf16.mxu0 %v908_v1  ;;  %458 = vmatprep.mubr.bf16.mxu1 %v908_v1 }
  0x32   :  { %346 = vmatmul.mubr.bf16.gmra.mrb[8].mxu0 %v902_v35  ;;  %459 = vmatmul.mubr.bf16.gmra.mrb[8].mxu1 %v902_v35 }
  0x33   :  { %355 = vmatprep.mubr.bf16.mxu0 %v908_v1  ;;  %468 = vmatprep.mubr.bf16.mxu1 %v908_v1 }
  0x3a   :  { %356 = vmatmul.mubr.bf16.gmra.mrb[12].mxu0 %v903_v36  ;;  %469 = vmatmul.mubr.bf16.gmra.mrb[12].mxu1 %v903_v36 }
  0x3b   :  { %365 = vmatprep.mubr.bf16.mxu0 %v908_v1  ;;  %478 = vmatprep.mubr.bf16.mxu1 %v908_v1 }
  0x42   :  { %366 = vmatmul.mubr.bf16.gmra.mrb[16].mxu0 %v904_v37  ;;  %479 = vmatmul.mubr.bf16.gmra.mrb[16].mxu1 %v904_v37 }
  0x43   :  { %375 = vmatprep.mubr.bf16.mxu0 %v908_v1  ;;  %488 = vmatprep.mubr.bf16.mxu1 %v908_v1 }
  0x4a   :  { %376 = vmatmul.mubr.bf16.gmra.mrb[20].mxu0 %v905_v38  ;;  %489 = vmatmul.mubr.bf16.gmra.mrb[20].mxu1 %v905_v38 }
  0x4b   :  { %385 = vmatprep.mubr.bf16.mxu0 %v908_v1  ;;  %498 = vmatprep.mubr.bf16.mxu1 %v908_v1 }
  0x52   :  { %386 = vmatmul.mubr.bf16.gmra.mrb[24].mxu0 %v906_v39  ;;  %499 = vmatmul.mubr.bf16.gmra.mrb[24].mxu1 %v906_v39 }
  0x53   :  { %395 = vmatprep.mubr.bf16.mxu0 %v908_v1  ;;  %508 = vmatprep.mubr.bf16.mxu1 %v908_v1 }
  0x5a   :  { %396 = vmatmul.mubr.bf16.gmra.mrb[28].mxu0 %v907_v40  ;;  %509 = vmatmul.mubr.bf16.gmra.mrb[28].mxu1 %v907_v40 }
  0xf5   :  { %v327_v52 = vpop.f32.mrb[0].mxu0  ;;  %v440_v53 = vpop.f32.mrb[0].mxu1 }
  0xf6   :  { %v328_v54 = vadd.f32 %v327_v52, %v1068_v48  ;;  %v441_v55 = vadd.f32 %v440_v53, %v1070_v49  ;;  %v329_v56 = vpop.f32.mrb[1].mxu0  ;;  %v442_v57 = vpop.f32.mrb[1].mxu1 }
  0xf7   :  { %v330_v58 = vadd.f32 %v329_v56, %v1072_v50  ;;  %v443_v59 = vadd.f32 %v442_v57, %v1074_v51  ;;  %v331_v60 = vpop.f32.mrb[2].mxu0  ;;  %v444_v61 = vpop.f32.mrb[2].mxu1 }
  0xf8   :  { %v332_v62 = vadd.f32 %v331_v60, %v1068_v48  ;;  %v445_v63 = vadd.f32 %v444_v61, %v1070_v49  ;;  %v333_v0 = vpop.f32.mrb[3].mxu0  ;;  %v446_v1 = vpop.f32.mrb[3].mxu1 }
  0xf9   :  { %v819_v2 = vpack.c.bf16 %v330_v58, %v328_v54  ;;  %v820_v3 = vpack.c.bf16 %v443_v59, %v441_v55  ;;  %v334_v4 = vadd.f32 %v333_v0, %v1072_v50  ;;  %v447_v5 = vadd.f32 %v446_v1, %v1074_v51 }
  0xfb   :  { %711 = vst [vmem:[%s1239_s3] sm:$0xff] %v819_v2  ;;  %712 = vst [vmem:[%s1239_s3 + $0x8] sm:$0xff] %v820_v3  ;;  %v821_v6 = vpack.c.bf16 %v334_v4, %v332_v62  ;;  %v822_v7 = vpack.c.bf16 %v447_v5, %v445_v63 }
  0xfd   :  { %713 = vst [vmem:[%s1239_s3 + $0x10] sm:$0xff] %v821_v6  ;;  %714 = vst [vmem:[%s1239_s3 + $0x18] sm:$0xff] %v822_v7  ;;  %v337_v8 = vpop.f32.mrb[4].mxu0  ;;  %v450_v9 = vpop.f32.mrb[4].mxu1 }
  0xfe   :  { %v338_v10 = vadd.f32 %v337_v8, %v1068_v48  ;;  %v451_v11 = vadd.f32 %v450_v9, %v1070_v49  ;;  %v339_v12 = vpop.f32.mrb[5].mxu0  ;;  %v452_v13 = vpop.f32.mrb[5].mxu1 }
  0xff   :  { %v340_v14 = vadd.f32 %v339_v12, %v1072_v50  ;;  %v453_v15 = vadd.f32 %v452_v13, %v1074_v51  ;;  %v341_v16 = vpop.f32.mrb[6].mxu0  ;;  %v454_v17 = vpop.f32.mrb[6].mxu1 }
 0x100   :  { %v342_v18 = vadd.f32 %v341_v16, %v1068_v48  ;;  %v455_v19 = vadd.f32 %v454_v17, %v1070_v49  ;;  %v343_v20 = vpop.f32.mrb[7].mxu0  ;;  %v456_v21 = vpop.f32.mrb[7].mxu1 }
 0x101   :  { %v823_v22 = vpack.c.bf16 %v340_v14, %v338_v10  ;;  %v824_v23 = vpack.c.bf16 %v453_v15, %v451_v11  ;;  %v344_v24 = vadd.f32 %v343_v20, %v1072_v50  ;;  %v457_v25 = vadd.f32 %v456_v21, %v1074_v51 }
 0x103   :  { %715 = vst [vmem:[%s1239_s3 + $0x20] sm:$0xff] %v823_v22  ;;  %716 = vst [vmem:[%s1239_s3 + $0x28] sm:$0xff] %v824_v23  ;;  %v825_v26 = vpack.c.bf16 %v344_v24, %v342_v18  ;;  %v826_v27 = vpack.c.bf16 %v457_v25, %v455_v19 }
 0x105   :  { %717 = vst [vmem:[%s1239_s3 + $0x30] sm:$0xff] %v825_v26  ;;  %718 = vst [vmem:[%s1239_s3 + $0x38] sm:$0xff] %v826_v27  ;;  %v347_v28 = vpop.f32.mrb[8].mxu0  ;;  %v460_v29 = vpop.f32.mrb[8].mxu1 }
 0x106   :  { %v348_v30 = vadd.f32 %v347_v28, %v1068_v48  ;;  %v461_v31 = vadd.f32 %v460_v29, %v1070_v49  ;;  %v349_v32 = vpop.f32.mrb[9].mxu0  ;;  %v462_v33 = vpop.f32.mrb[9].mxu1 }
 0x107   :  { %v350_v34 = vadd.f32 %v349_v32, %v1072_v50  ;;  %v463_v35 = vadd.f32 %v462_v33, %v1074_v51  ;;  %v351_v36 = vpop.f32.mrb[10].mxu0  ;;  %v464_v37 = vpop.f32.mrb[10].mxu1 }
 0x108   :  { %v352_v38 = vadd.f32 %v351_v36, %v1068_v48  ;;  %v465_v39 = vadd.f32 %v464_v37, %v1070_v49  ;;  %v353_v40 = vpop.f32.mrb[11].mxu0  ;;  %v466_v41 = vpop.f32.mrb[11].mxu1 }
 0x109   :  { %v827_v42 = vpack.c.bf16 %v350_v34, %v348_v30  ;;  %v828_v43 = vpack.c.bf16 %v463_v35, %v461_v31  ;;  %v354_v44 = vadd.f32 %v353_v40, %v1072_v50  ;;  %v467_v45 = vadd.f32 %v466_v41, %v1074_v51 }
 0x10b   :  { %719 = vst [vmem:[%s1239_s3 + $0x40] sm:$0xff] %v827_v42  ;;  %720 = vst [vmem:[%s1239_s3 + $0x48] sm:$0xff] %v828_v43  ;;  %v829_v46 = vpack.c.bf16 %v354_v44, %v352_v38  ;;  %v830_v47 = vpack.c.bf16 %v467_v45, %v465_v39 }
 0x10d   :  { %721 = vst [vmem:[%s1239_s3 + $0x50] sm:$0xff] %v829_v46  ;;  %722 = vst [vmem:[%s1239_s3 + $0x58] sm:$0xff] %v830_v47  ;;  %v357_v52 = vpop.f32.mrb[12].mxu0  ;;  %v470_v53 = vpop.f32.mrb[12].mxu1 }
 0x10e   :  { %v358_v54 = vadd.f32 %v357_v52, %v1068_v48  ;;  %v471_v55 = vadd.f32 %v470_v53, %v1070_v49  ;;  %v359_v56 = vpop.f32.mrb[13].mxu0  ;;  %v472_v57 = vpop.f32.mrb[13].mxu1 }
 0x10f   :  { %v360_v58 = vadd.f32 %v359_v56, %v1072_v50  ;;  %v473_v59 = vadd.f32 %v472_v57, %v1074_v51  ;;  %v361_v60 = vpop.f32.mrb[14].mxu0  ;;  %v474_v61 = vpop.f32.mrb[14].mxu1 }
 0x110   :  { %v362_v62 = vadd.f32 %v361_v60, %v1068_v48  ;;  %v475_v63 = vadd.f32 %v474_v61, %v1070_v49  ;;  %v363_v0 = vpop.f32.mrb[15].mxu0  ;;  %v476_v1 = vpop.f32.mrb[15].mxu1 }
 0x111   :  { %v831_v2 = vpack.c.bf16 %v360_v58, %v358_v54  ;;  %v832_v3 = vpack.c.bf16 %v473_v59, %v471_v55  ;;  %v364_v4 = vadd.f32 %v363_v0, %v1072_v50  ;;  %v477_v5 = vadd.f32 %v476_v1, %v1074_v51 }
 0x113   :  { %723 = vst [vmem:[%s1239_s3 + $0x60] sm:$0xff] %v831_v2  ;;  %724 = vst [vmem:[%s1239_s3 + $0x68] sm:$0xff] %v832_v3  ;;  %v833_v6 = vpack.c.bf16 %v364_v4, %v362_v62  ;;  %v834_v7 = vpack.c.bf16 %v477_v5, %v475_v63 }
 0x115   :  { %725 = vst [vmem:[%s1239_s3 + $0x70] sm:$0xff] %v833_v6  ;;  %726 = vst [vmem:[%s1239_s3 + $0x78] sm:$0xff] %v834_v7  ;;  %v367_v8 = vpop.f32.mrb[16].mxu0  ;;  %v480_v9 = vpop.f32.mrb[16].mxu1 }
 0x116   :  { %v368_v10 = vadd.f32 %v367_v8, %v1068_v48  ;;  %v481_v11 = vadd.f32 %v480_v9, %v1070_v49  ;;  %v369_v12 = vpop.f32.mrb[17].mxu0  ;;  %v482_v13 = vpop.f32.mrb[17].mxu1 }
 0x117   :  { %v370_v14 = vadd.f32 %v369_v12, %v1072_v50  ;;  %v483_v15 = vadd.f32 %v482_v13, %v1074_v51  ;;  %v371_v16 = vpop.f32.mrb[18].mxu0  ;;  %v484_v17 = vpop.f32.mrb[18].mxu1 }
 0x118   :  { %v372_v18 = vadd.f32 %v371_v16, %v1068_v48  ;;  %v485_v19 = vadd.f32 %v484_v17, %v1070_v49  ;;  %v373_v20 = vpop.f32.mrb[19].mxu0  ;;  %v486_v21 = vpop.f32.mrb[19].mxu1 }
 0x119   :  { %v835_v22 = vpack.c.bf16 %v370_v14, %v368_v10  ;;  %v836_v23 = vpack.c.bf16 %v483_v15, %v481_v11  ;;  %v374_v24 = vadd.f32 %v373_v20, %v1072_v50  ;;  %v487_v25 = vadd.f32 %v486_v21, %v1074_v51 }
 0x11b   :  { %727 = vst [vmem:[%s1239_s3 + $0x80] sm:$0xff] %v835_v22  ;;  %728 = vst [vmem:[%s1239_s3 + $0x88] sm:$0xff] %v836_v23  ;;  %v837_v26 = vpack.c.bf16 %v374_v24, %v372_v18  ;;  %v838_v27 = vpack.c.bf16 %v487_v25, %v485_v19 }
 0x11d   :  { %729 = vst [vmem:[%s1239_s3 + $0x90] sm:$0xff] %v837_v26  ;;  %730 = vst [vmem:[%s1239_s3 + $0x98] sm:$0xff] %v838_v27  ;;  %v377_v28 = vpop.f32.mrb[20].mxu0  ;;  %v490_v29 = vpop.f32.mrb[20].mxu1 }
 0x11e   :  { %v378_v30 = vadd.f32 %v377_v28, %v1068_v48  ;;  %v491_v31 = vadd.f32 %v490_v29, %v1070_v49  ;;  %v379_v32 = vpop.f32.mrb[21].mxu0  ;;  %v492_v33 = vpop.f32.mrb[21].mxu1 }
 0x11f   :  { %v380_v34 = vadd.f32 %v379_v32, %v1072_v50  ;;  %v493_v35 = vadd.f32 %v492_v33, %v1074_v51  ;;  %v381_v36 = vpop.f32.mrb[22].mxu0  ;;  %v494_v37 = vpop.f32.mrb[22].mxu1 }
 0x120   :  { %v382_v38 = vadd.f32 %v381_v36, %v1068_v48  ;;  %v495_v39 = vadd.f32 %v494_v37, %v1070_v49  ;;  %v383_v40 = vpop.f32.mrb[23].mxu0  ;;  %v496_v41 = vpop.f32.mrb[23].mxu1 }
 0x121   :  { %v839_v42 = vpack.c.bf16 %v380_v34, %v378_v30  ;;  %v840_v43 = vpack.c.bf16 %v493_v35, %v491_v31  ;;  %v384_v44 = vadd.f32 %v383_v40, %v1072_v50  ;;  %v497_v45 = vadd.f32 %v496_v41, %v1074_v51 }
 0x123   :  { %731 = vst [vmem:[%s1239_s3 + $0xa0] sm:$0xff] %v839_v42  ;;  %732 = vst [vmem:[%s1239_s3 + $0xa8] sm:$0xff] %v840_v43  ;;  %v841_v46 = vpack.c.bf16 %v384_v44, %v382_v38  ;;  %v842_v47 = vpack.c.bf16 %v497_v45, %v495_v39 }
 0x125   :  { %733 = vst [vmem:[%s1239_s3 + $0xb0] sm:$0xff] %v841_v46  ;;  %734 = vst [vmem:[%s1239_s3 + $0xb8] sm:$0xff] %v842_v47  ;;  %v387_v52 = vpop.f32.mrb[24].mxu0  ;;  %v500_v53 = vpop.f32.mrb[24].mxu1 }
 0x126   :  { %v388_v54 = vadd.f32 %v387_v52, %v1068_v48  ;;  %v501_v55 = vadd.f32 %v500_v53, %v1070_v49  ;;  %v389_v56 = vpop.f32.mrb[25].mxu0  ;;  %v502_v57 = vpop.f32.mrb[25].mxu1 }
 0x127   :  { %v390_v58 = vadd.f32 %v389_v56, %v1072_v50  ;;  %v503_v59 = vadd.f32 %v502_v57, %v1074_v51  ;;  %v391_v60 = vpop.f32.mrb[26].mxu0  ;;  %v504_v61 = vpop.f32.mrb[26].mxu1 }
 0x128   :  { %v392_v62 = vadd.f32 %v391_v60, %v1068_v48  ;;  %v505_v63 = vadd.f32 %v504_v61, %v1070_v49  ;;  %v393_v0 = vpop.f32.mrb[27].mxu0  ;;  %v506_v1 = vpop.f32.mrb[27].mxu1 }
 0x129   :  { %v843_v2 = vpack.c.bf16 %v390_v58, %v388_v54  ;;  %v844_v3 = vpack.c.bf16 %v503_v59, %v501_v55  ;;  %v394_v4 = vadd.f32 %v393_v0, %v1072_v50  ;;  %v507_v5 = vadd.f32 %v506_v1, %v1074_v51 }
 0x12b   :  { %735 = vst [vmem:[%s1239_s3 + $0xc0] sm:$0xff] %v843_v2  ;;  %736 = vst [vmem:[%s1239_s3 + $0xc8] sm:$0xff] %v844_v3  ;;  %v845_v6 = vpack.c.bf16 %v394_v4, %v392_v62  ;;  %v846_v7 = vpack.c.bf16 %v507_v5, %v505_v63 }
 0x12d   :  { %737 = vst [vmem:[%s1239_s3 + $0xd0] sm:$0xff] %v845_v6  ;;  %738 = vst [vmem:[%s1239_s3 + $0xd8] sm:$0xff] %v846_v7  ;;  %v397_v8 = vpop.f32.mrb[28].mxu0  ;;  %v510_v9 = vpop.f32.mrb[28].mxu1 }
 0x12e   :  { %v398_v10 = vadd.f32 %v397_v8, %v1068_v48  ;;  %v511_v11 = vadd.f32 %v510_v9, %v1070_v49  ;;  %v399_v12 = vpop.f32.mrb[29].mxu0  ;;  %v512_v13 = vpop.f32.mrb[29].mxu1 }
 0x12f   :  { %v400_v14 = vadd.f32 %v399_v12, %v1072_v50  ;;  %v513_v15 = vadd.f32 %v512_v13, %v1074_v51  ;;  %v401_v16 = vpop.f32.mrb[30].mxu0  ;;  %v514_v17 = vpop.f32.mrb[30].mxu1 }
 0x130   :  { %v402_v18 = vadd.f32 %v401_v16, %v1068_v48  ;;  %v515_v19 = vadd.f32 %v514_v17, %v1070_v49  ;;  %v403_v20 = vpop.f32.mrb[31].mxu0  ;;  %v516_v21 = vpop.f32.mrb[31].mxu1 }
 0x131   :  { %v847_v22 = vpack.c.bf16 %v400_v14, %v398_v10  ;;  %v848_v23 = vpack.c.bf16 %v513_v15, %v511_v11  ;;  %v404_v24 = vadd.f32 %v403_v20, %v1072_v50  ;;  %v517_v25 = vadd.f32 %v516_v21, %v1074_v51 }
 0x133   :  { %739 = vst [vmem:[%s1239_s3 + $0xe0] sm:$0xff] %v847_v22  ;;  %740 = vst [vmem:[%s1239_s3 + $0xe8] sm:$0xff] %v848_v23  ;;  %v849_v26 = vpack.c.bf16 %v404_v24, %v402_v18  ;;  %v850_v48 = vpack.c.bf16 %v517_v25, %v515_v19 }
 0x135   :  { %741 = vst [vmem:[%s1239_s3 + $0xf0] sm:$0xff] %v849_v26  ;;  %742 = vst [vmem:[%s1239_s3 + $0xf8] sm:$0xff] %v850_v48 }

// kernel: upblock_forward.7
= control target key start
LH: loop header
LB: loop body
LE: loop exit
PB: predicated region body
PF: predicated region fallthrough
CT: control target
= control target key end

     0   :  { %s525_s12 = smov 0   ;;  %s527_s13 = smov 0   ;;  %s654_s0 = inlined_call_operand.vmem [shape: f32[2,16,16,128], index: 0, kind: input, shape index: {}]   ;;  %s655_s1 = inlined_call_operand.vmem [shape: f32[1,1,1,128], index: 1, kind: input, shape index: {}]   ;;  %s656_s2 = inlined_call_operand.vmem [shape: f32[1,1,1,128], index: 2, kind: input, shape index: {}]   ;;  %s657_s3 = inlined_call_operand.vmem [shape: f32[2,16,16,128], index: 3, kind: output, shape index: {}]  }
   0x1   :  { %s529_s14 = smov 0   ;;  %s531_s15 = smov 0  }
   0x2   :  { %s533_s16 = smov 0  }
   0x3 LB: > { %s22_s17 = sadd.s32 1, %s495_s14  ;;  %s25_s18 = sadd.s32 1, %s499_s15  ;;  %s503_s16 = sphi %s533_s16, %s13_s16   ;;  %s499_s15 = sphi %s531_s15, %s661_s15   ;;  %s495_s14 = sphi %s529_s14, %s660_s14   ;;  %s491_s13 = sphi %s527_s13, %s659_s13   ;;  %s487_s12 = sphi %s525_s12, %s658_s12  }
   0x4   : > { %p23_p0 = scmp.ge.s32.totalorder %s22_s17, 2  ;;  %p412_p1 = scmp.ge.s32.totalorder %s503_s16, 1 }
   0x5   : > { %p159_p2 = scmp.lt.s32.totalorder %s503_s16, 5 }
   0x6   : > { %s663_s17 = smov (%p23_p0, %s22_s17), 0  ;;  %s665_s18 = smov (!%p23_p0, %s25_s18), %s499_s15 }
   0x7   : > { %p160_p3 = pnand %p412_p1, %p159_p2  ;;  %p27_p4 = scmp.ge.s32.totalorder %s665_s18, 2 }
   0x8   : > { %s413_s19 = sshll.u32 (!%p160_p3), %s487_s12, 3  ;;  %p194_p5 = scmp.lt.s32.totalorder (!%p160_p3), %s491_s13, 1  ;;  %v558_v0 = vld [vmem:[%s655_s1] ss:$0 sm:$0xff] (!%p160_p3) }
   0x9   : > { %s667_s18 = smov (%p27_p4, %s665_s18), 0  ;;  %163 = sbr.rel (%p160_p3) target bundleno = 39 (0x27), region = 32 }
   0xa   : > { %p196_p6 = scmp.lt.s32.totalorder (!%p160_p3), %s413_s19, 15  ;;  %v568_v1 = vld [vmem:[%s656_s2] ss:$0 sm:$0xff] (!%p160_p3) }
  0x10   : > { %s669_s13 = smov (!%p194_p5, %s491_s13), 1  ;;  %s671_s19 = smov (!%p196_p6, %s413_s19), 15 }
  0x11   : > { %s415_s20 = sshll.u32 %s669_s13, 5  ;;  %s414_s21 = sshll.u32 %s671_s19, 1 }
  0x12   : > { %s200_s22 = sadd.s32 %s415_s20, %s414_s21 }
  0x13   : > { %s416_s23 = sshll.u32 %s200_s22, 3 }
  0x14   : > { %s563_s28 = scalar_lea.vmem %s654_s0, %s416_s23  ;;  %s591_s6 = scalar_lea.vmem %s657_s3, %s416_s23 }
  0x15   : > { %v215_v2 = vld [vmem:[%s563_s28] sm:$0xff]  ;;  %v216_v3 = vld [vmem:[%s563_s28 + $0x8] sm:$0xff]  ;;  %v217_v4 = vld [vmem:[%s563_s28 + $0x10] sm:$0xff] }
  0x16   : > { %v238_v5 = vmul.f32 %v558_v0, %v215_v2  ;;  %v239_v6 = vmul.f32 %v558_v0, %v216_v3  ;;  %v240_v7 = vmul.f32 %v558_v0, %v217_v4  ;;  %v218_v8 = vld [vmem:[%s563_s28 + $0x18] sm:$0xff]  ;;  %v219_v9 = vld [vmem:[%s563_s28 + $0x20] sm:$0xff]  ;;  %v220_v10 = vld [vmem:[%s563_s28 + $0x28] sm:$0xff] }
  0x17   : > { %v241_v11 = vmul.f32 %v558_v0, %v218_v8  ;;  %v242_v12 = vmul.f32 %v558_v0, %v219_v9  ;;  %v243_v13 = vmul.f32 %v558_v0, %v220_v10  ;;  %v221_v14 = vld [vmem:[%s563_s28 + $0x30] sm:$0xff]  ;;  %v222_v15 = vld [vmem:[%s563_s28 + $0x38] sm:$0xff]  ;;  %v223_v24 = vld [vmem:[%s563_s28 + $0x40] sm:$0xff] }
  0x18   : > { %v261_v16 = vadd.f32 %v568_v1, %v238_v5  ;;  %v262_v17 = vadd.f32 %v568_v1, %v239_v6  ;;  %v263_v18 = vadd.f32 %v568_v1, %v240_v7  ;;  %v244_v19 = vmul.f32 %v558_v0, %v221_v14  ;;  %v224_v25 = vld [vmem:[%s563_s28 + $0x48] sm:$0xff]  ;;  %v225_v26 = vld [vmem:[%s563_s28 + $0x50] sm:$0xff]  ;;  %v226_v31 = vld [vmem:[%s563_s28 + $0x58] sm:$0xff] }
  0x19   : > { %v264_v20 = vadd.f32 %v568_v1, %v241_v11  ;;  %v265_v21 = vadd.f32 %v568_v1, %v242_v12  ;;  %v266_v22 = vadd.f32 %v568_v1, %v243_v13  ;;  %v245_v23 = vmul.f32 %v558_v0, %v222_v15  ;;  %v227_v32 = vld [vmem:[%s563_s28 + $0x60] sm:$0xff]  ;;  %v228_v33 = vld [vmem:[%s563_s28 + $0x68] sm:$0xff]  ;;  %v229_v38 = vld [vmem:[%s563_s28 + $0x70] sm:$0xff] }
  0x1a   : > { %v277_v27 = vmax.f32 %v261_v16, 0.0  ;;  %v278_v28 = vmax.f32 %v262_v17, 0.0  ;;  %v279_v29 = vmax.f32 %v263_v18, 0.0  ;;  %v267_v30 = vadd.f32 %v568_v1, %v244_v19  ;;  %v230_v43 = vld [vmem:[%s563_s28 + $0x78] sm:$0xff] }
  0x1b   : > { %v280_v34 = vmax.f32 %v264_v20, 0.0  ;;  %v281_v35 = vmax.f32 %v265_v21, 0.0  ;;  %v282_v36 = vmax.f32 %v266_v22, 0.0  ;;  %v268_v37 = vadd.f32 %v568_v1, %v245_v23 }
  0x1c   : > { %293 = vst [vmem:[%s591_s6] sm:$0xff] %v277_v27  ;;  %294 = vst [vmem:[%s591_s6 + $0x8] sm:$0xff] %v278_v28  ;;  %v283_v39 = vmax.f32 %v267_v30, 0.0  ;;  %v246_v40 = vmul.f32 %v558_v0, %v223_v24  ;;  %v247_v41 = vmul.f32 %v558_v0, %v224_v25  ;;  %v248_v42 = vmul.f32 %v558_v0, %v225_v26 }
  0x1d   : > { %295 = vst [vmem:[%s591_s6 + $0x10] sm:$0xff] %v279_v29  ;;  %296 = vst [vmem:[%s591_s6 + $0x18] sm:$0xff] %v280_v34  ;;  %v284_v44 = vmax.f32 %v268_v37, 0.0  ;;  %v249_v45 = vmul.f32 %v558_v0, %v226_v31  ;;  %v250_v46 = vmul.f32 %v558_v0, %v227_v32  ;;  %v251_v47 = vmul.f32 %v558_v0, %v228_v33 }
  0x1e   : > { %297 = vst [vmem:[%s591_s6 + $0x20] sm:$0xff] %v281_v35  ;;  %298 = vst [vmem:[%s591_s6 + $0x28] sm:$0xff] %v282_v36  ;;  %v269_v48 = vadd.f32 %v568_v1, %v246_v40  ;;  %v270_v49 = vadd.f32 %v568_v1, %v247_v41  ;;  %v271_v50 = vadd.f32 %v568_v1, %v248_v42 }
  0x1f   : > { %299 = vst [vmem:[%s591_s6 + $0x30] sm:$0xff] %v283_v39  ;;  %v252_v51 = vmul.f32 %v558_v0, %v229_v38  ;;  %300 = vst [vmem:[%s591_s6 + $0x38] sm:$0xff] %v284_v44  ;;  %v272_v52 = vadd.f32 %v568_v1, %v249_v45  ;;  %v273_v53 = vadd.f32 %v568_v1, %v250_v46 }
  0x20   : > { %v274_v54 = vadd.f32 %v568_v1, %v251_v47  ;;  %v253_v55 = vmul.f32 %v558_v0, %v230_v43  ;;  %v285_v56 = vmax.f32 %v269_v48, 0.0  ;;  %v286_v57 = vmax.f32 %v270_v49, 0.0 }
  0x21   : > { %v287_v58 = vmax.f32 %v271_v50, 0.0  ;;  %v275_v59 = vadd.f32 %v568_v1, %v252_v51  ;;  %v288_v60 = vmax.f32 %v272_v52, 0.0  ;;  %v289_v61 = vmax.f32 %v273_v53, 0.0 }
  0x22   : > { %v290_v62 = vmax.f32 %v274_v54, 0.0  ;;  %v276_v63 = vadd.f32 %v568_v1, %v253_v55  ;;  %301 = vst [vmem:[%s591_s6 + $0x40] sm:$0xff] %v285_v56  ;;  %302 = vst [vmem:[%s591_s6 + $0x48] sm:$0xff] %v286_v57 }
  0x23   : > { %303 = vst [vmem:[%s591_s6 + $0x50] sm:$0xff] %v287_v58  ;;  %v291_v2 = vmax.f32 %v275_v59, 0.0  ;;  %304 = vst [vmem:[%s591_s6 + $0x58] sm:$0xff] %v288_v60 }
  0x24   : > { %305 = vst [vmem:[%s591_s6 + $0x60] sm:$0xff] %v289_v61  ;;  %306 = vst [vmem:[%s591_s6 + $0x68] sm:$0xff] %v290_v62  ;;  %v292_v0 = vmax.f32 %v276_v63, 0.0 }
  0x25   : > { %307 = vst [vmem:[%s591_s6 + $0x70] sm:$0xff] %v291_v2 }
  0x26   : > { %308 = vst [vmem:[%s591_s6 + $0x78] sm:$0xff] %v292_v0 }
  0x27 PF: > { %s13_s16 = sadd.s32 1, %s503_s16   ;;  %s658_s12 = smov %s495_s14 }
  0x28   : > { %p10_p7 = scmp.ge.s32.totalorder %s13_s16, 6   ;;  %s659_s13 = smov %s499_s15 }
  0x29   : > { %s660_s14 = smov %s663_s17  ;;  %s661_s15 = smov %s667_s18 }
  0x2a   :  { %12 = sbr.rel (!%p10_p7) target bundleno = 3 (0x3), region = 62 }

// kernel: upblock_forward.6
= control target key start
LH: loop header
LB: loop body
LE: loop exit
PB: predicated region body
PF: predicated region fallthrough
CT: control target
= control target key end

     0   :  { %s4002_s21 = smov 0   ;;  %s4004_s22 = smov 0   ;;  %s5231_s0 = inlined_call_operand.vmem [shape: bf16[2,24,18,128], index: 0, kind: input, shape index: {}, may-alias: {0,1}]   ;;  %s5232_s1 = inlined_call_operand.vmem [shape: bf16[2,24,18,128], index: 1, kind: input, shape index: {}, may-alias: {0,1}]   ;;  %s5233_s2 = inlined_call_operand.vmem [shape: bf16[1152,128], index: 2, kind: input, shape index: {}]   ;;  %s5234_s3 = inlined_call_operand.vmem [shape: f32[1,128], index: 3, kind: input, shape index: {}]   ;;  %s5235_s4 = inlined_call_operand.vmem [shape: f32[1,128], index: 4, kind: input, shape index: {}]   ;;  %s5236_s5 = inlined_call_operand.vmem [shape: f32[2,16,16,128], index: 5, kind: output, shape index: {0}]   ;;  %s5237_s6 = inlined_call_operand.vmem [shape: f32[2,2,2,128], index: 6, kind: output, shape index: {1}]  }
   0x1   :  { %s4006_s23 = smov 0   ;;  %s4008_s24 = smov 0  }
   0x2   :  { %s4010_s25 = smov 0  }
   0x3 LB: > { %s26_s26 = sadd.s32 1, %s3957_s23  ;;  %s29_s27 = sadd.s32 1, %s3961_s24  ;;  %s3965_s25 = sphi %s4010_s25, %s17_s25   ;;  %s3961_s24 = sphi %s4008_s24, %s5291_s24   ;;  %s3957_s23 = sphi %s4006_s23, %s5290_s23   ;;  %s3953_s22 = sphi %s4004_s22, %s5289_s22   ;;  %s3949_s21 = sphi %s4002_s21, %s5288_s21  }
   0x4   : > { %p27_p0 = scmp.ge.s32.totalorder %s26_s26, 2  ;;  %p3135_p1 = scmp.ge.s32.totalorder %s3965_s25, 1 }
   0x5   : > { %p265_p2 = scmp.lt.s32.totalorder %s3965_s25, 5 }
   0x6   : > { %s5293_s26 = smov (%p27_p0, %s26_s26), 0  ;;  %s5295_s27 = smov (!%p27_p0, %s29_s27), %s3961_s24 }
   0x7   : > { %p266_p3 = pnand %p3135_p1, %p265_p2  ;;  %p31_p4 = scmp.ge.s32.totalorder %s5295_s27, 2 }
   0x8   : > { %v3781_v0 = vld [vmem:[%s5233_s2 + $0xc0] sm:$0xff] (!%p266_p3)   ;;  %v3784_v3 = vld [vmem:[%s5233_s2 + $0xc8] sm:$0xff] (!%p266_p3)   ;;  %v3788_v7 = vld [vmem:[%s5233_s2 + $0xd0] sm:$0xff] (!%p266_p3)   ;;  %s4064_s29 = sshll.u32 (!%p266_p3), %s3949_s21, 3  ;;  %p326_p5 = scmp.lt.s32.totalorder (!%p266_p3), %s3953_s22, 1  ;;  %v443_v30 = vlaneseq (!%p266_p3) }
   0x9   : > { %s5297_s27 = smov (%p31_p4, %s5295_s27), 0  ;;  %269 = sbr.rel (%p266_p3) target bundleno = 458 (0x1ca), region = 40 }
   0xa   : > { %v3782_v1 = vld [vmem:[%s5233_s2 + $0x80] sm:$0xff] (!%p266_p3)   ;;  %3482 = vmatprep.subr.bf16.mxu1 (!%p266_p3), %v3781_v0  ;;  %v3786_v5 = vld [vmem:[%s5233_s2 + $0x88] sm:$0xff] (!%p266_p3)   ;;  %v3790_v9 = vld [vmem:[%s5233_s2 + $0x90] sm:$0xff] (!%p266_p3)   ;;  %p328_p6 = scmp.lt.s32.totalorder (!%p266_p3), %s4064_s29, 23  ;;  %v4136_v29 = vstv (!%p266_p3), %s4064_s29  ;;  %v4150_v34 = vshrl.u32 (!%p266_p3), %v443_v30, 7  ;;  %s3409_s7 = sadd.s32 (!%p266_p3), 8, %s4064_s29 }
   0xb   : > { %v3783_v2 = vld [vmem:[%s5233_s2 + $0x40] sm:$0xff] (!%p266_p3)   ;;  %3483 = vmatpush3.bf16.msra.mxu1 (!%p266_p3), %v3782_v1  ;;  %v3787_v6 = vld [vmem:[%s5233_s2 + $0x48] sm:$0xff] (!%p266_p3)   ;;  %v3791_v10 = vld [vmem:[%s5233_s2 + $0x50] sm:$0xff] (!%p266_p3)   ;;  %v4148_v33 = vadd.s32 (!%p266_p3), 1, %v4136_v29  ;;  %vm447_vm2 = vcmp.ge.s32.totalorder (!%p266_p3), %v4136_v29, 1  ;;  %vm457_vm3 = vcmp.le.s32.totalorder (!%p266_p3), %v4136_v29, 16 }
   0xc   : > { %3418 = vmatprep.subr.bf16.mxu0 (!%p266_p3), %v3783_v2  ;;  %v3785_v4 = vld [vmem:[%s5233_s2] sm:$0xff] (!%p266_p3)   ;;  %3484 = vmatprep.subr.bf16.mxu1 (!%p266_p3), %v3784_v3  ;;  %v3789_v8 = vld [vmem:[%s5233_s2 + $0x8] sm:$0xff] (!%p266_p3)   ;;  %v3792_v11 = vld [vmem:[%s5233_s2 + $0xd8] sm:$0xff] (!%p266_p3)   ;;  %v4163_v39 = vadd.s32 (!%p266_p3), 16, %v4150_v34  ;;  %vm477_vm5 = vcmp.ge.s32.totalorder (!%p266_p3), %v4150_v34, 1  ;;  %v4188_v50 = vadd.s32 (!%p266_p3), 2, %v4136_v29 }
   0xd   : > { %3419 = vmatpush3.bf16.msra.mxu0 (!%p266_p3), %v3785_v4  ;;  %v3793_v12 = vld [vmem:[%s5233_s2 + $0x10] sm:$0xff] (!%p266_p3)   ;;  %v3794_v13 = vld [vmem:[%s5233_s2 + $0x98] sm:$0xff] (!%p266_p3)   ;;  %v3796_v15 = vld [vmem:[%s5233_s2 + $0xe0] sm:$0xff] (!%p266_p3)   ;;  %vm448_vm0 = vcmp.ge.s32.totalorder (!%p266_p3), %v4148_v33, 1  ;;  %vm458_vm1 = vcmp.le.s32.totalorder (!%p266_p3), %v4148_v33, 16  ;;  %v4231_v4 = vadd.s32 (!%p266_p3), 3, %v4136_v29 }
   0xe   : > { %3420 = vmatprep.subr.bf16.mxu0 (!%p266_p3), %v3787_v6  ;;  %v3795_v14 = vld [vmem:[%s5233_s2 + $0x58] sm:$0xff] (!%p266_p3)   ;;  %v3798_v17 = vld [vmem:[%s5233_s2 + $0xa0] sm:$0xff] (!%p266_p3)   ;;  %v3800_v19 = vld [vmem:[%s5233_s2 + $0xe8] sm:$0xff] (!%p266_p3)   ;;  %vm538_vm7 = vcmp.le.s32.totalorder (!%p266_p3), %v4163_v39, 16  ;;  %vm449_vm11 = vcmp.ge.s32.totalorder (!%p266_p3), %v4188_v50, 1  ;;  %vm459_vm12 = vcmp.le.s32.totalorder (!%p266_p3), %v4188_v50, 16 }
   0xf   : > { %3485 = vmatpush3.bf16.msra.mxu1 (!%p266_p3), %v3786_v5  ;;  %v3797_v16 = vld [vmem:[%s5233_s2 + $0x18] sm:$0xff] (!%p266_p3)   ;;  %v3799_v18 = vld [vmem:[%s5233_s2 + $0x60] sm:$0xff] (!%p266_p3)   ;;  %v3802_v21 = vld [vmem:[%s5233_s2 + $0xa8] sm:$0xff] (!%p266_p3)   ;;  %v4269_v48 = vadd.s32 (!%p266_p3), 4, %v4136_v29  ;;  %vm450_vm15 = vcmp.ge.s32.totalorder (!%p266_p3), %v4231_v4, 1  ;;  %p4370_p7 = scmp.lt.s32.totalorder (!%p266_p3), %s3409_s7, 23 }
  0x10   : > { %3486 = vmatprep.subr.bf16.mxu1 %v3788_v7  ;;  %s5299_s22 = smov (!%p326_p5, %s3953_s22), 1  ;;  %v3801_v20 = vld [vmem:[%s5233_s2 + $0x20] sm:$0xff]   ;;  %v3803_v22 = vld [vmem:[%s5233_s2 + $0x68] sm:$0xff]   ;;  %v3804_v23 = vld [vmem:[%s5233_s2 + $0xf0] sm:$0xff]   ;;  %p354_p8 = scmp.lt.s32.totalorder %s4064_s29, 15 }
  0x11   : > { %3421 = vmatpush3.bf16.msra.mxu0 %v3789_v8  ;;  %s329_s20 = scalar_select %p328_p6, %s4064_s29, 23  ;;  %v3805_v24 = vld [vmem:[%s5233_s2 + $0x28] sm:$0xff]   ;;  %v3806_v25 = vld [vmem:[%s5233_s2 + $0xb0] sm:$0xff]   ;;  %v3808_v27 = vld [vmem:[%s5233_s2 + $0xf8] sm:$0xff]  }
  0x12   : > { %3422 = vmatprep.subr.bf16.mxu0 %v3791_v10  ;;  %s3739_s11 = smul.u32 72, %s5299_s22  ;;  %v3807_v26 = vld [vmem:[%s5233_s2 + $0x70] sm:$0xff]   ;;  %v3810_v31 = vld [vmem:[%s5233_s2 + $0xb8] sm:$0xff]   ;;  %v3818_v40 = vld [vmem:[%s5233_s2 + $0x140] sm:$0xff]   ;;  %s5301_s7 = smov (!%p4370_p7, %s3409_s7), 23 }
  0x13   : > { %3487 = vmatpush3.bf16.msra.mxu1 %v3790_v9  ;;  %s3738_s14 = smul.u32 3, %s329_s20  ;;  %v3809_v28 = vld [vmem:[%s5233_s2 + $0x30] sm:$0xff]   ;;  %v3813_v35 = vld [vmem:[%s5233_s2 + $0x78] sm:$0xff]   ;;  %vm4171_vm4 = vmand %vm448_vm0, %vm458_vm1  ;;  %vm1288_vm0 = vcmask 1046528   ;;  %vm460_vm1 = vcmp.le.s32.totalorder %v4231_v4, 16  ;;  %s5303_s29 = smov (!%p354_p8, %s4064_s29), 15 }
  0x14   : > { %3488 = vmatprep.subr.bf16.mxu1 %v3792_v11  ;;  %v3817_v38 = vld [vmem:[%s5233_s2 + $0x38] sm:$0xff]   ;;  %v4179_v45 = vld [vmem:[%s5234_s3] ss:$0 sm:$0xff]  ;;  %vm4182_vm6 = vmand %vm447_vm2, %vm457_vm3  ;;  %vm451_vm3 = vcmp.ge.s32.totalorder %v4269_v48, 1  ;;  %s3740_s19 = smul.u32 3, %s5301_s7  ;;  %s3142_s10 = sshll.u32 %s5303_s29, 1 }
  0x15   : > { %3423 = vmatpush3.bf16.msra.mxu0 %v3793_v12  ;;  %s332_s20 = sadd.s32 %s3739_s11, %s3738_s14  ;;  %vm4194_vm8 = vmand %vm4171_vm4, %vm477_vm5  ;;  %v4203_v57 = vld [vmem:[%s5235_s4] ss:$0 sm:$0xff]  ;;  %p364_p9 = scmp.lt.s32.totalorder %s3949_s21, 1 }
  0x16   : > { %3424 = vmatprep.subr.bf16.mxu0 %v3795_v14  ;;  %s3137_s16 = sshll.u32 %s332_s20, 2  ;;  %vm4213_vm9 = vmand %vm4182_vm6, %vm477_vm5  ;;  %v3833_v10 = vld [vmem:[%s5233_s2 + $0x1c0] sm:$0xff]   ;;  %s4598_s18 = sadd.s32 %s3740_s19, %s3739_s11 }
  0x17   : > { %3489 = vmatpush3.bf16.msra.mxu1 %v3794_v13  ;;  %s4144_s8 = scalar_lea.vmem %s5231_s0, %s3137_s16  ;;  %vm4223_vm10 = vmand %vm4182_vm6, %vm538_vm7  ;;  %s3140_s14 = sshll.u32 %s4598_s18, 2 }
  0x18   : > { %3490 = vmatprep.subr.bf16.mxu1 %v3796_v15  ;;  %v374_v32 = vld [vmem:[%s4144_s8 + $0xc] sm:$0xff]   ;;  %v371_v36 = vld [vmem:[%s4144_s8] sm:$0xff]   ;;  %v373_v37 = vld [vmem:[%s4144_s8 + $0x8] sm:$0x1]  ;;  %s4644_s20 = scalar_lea.vmem %s5232_s1, %s3140_s14  ;;  %s5305_s21 = smov (!%p364_p9, %s3949_s21), 1 }
  0x19   : > { %3425 = vmatpush3.bf16.msra.mxu0 %v3797_v16  ;;  %398 = vst [vmem:[#allocation2 + $0xc] sm:$0xff] %v374_v32   ;;  %395 = vst [vmem:[#allocation2] sm:$0xff] %v371_v36   ;;  %v377_v41 = vld [vmem:[%s4144_s8 + $0x18] sm:$0xff]   ;;  %v376_v44 = vld [vmem:[%s4144_s8 + $0x14] sm:$0x1]  ;;  %s3145_s18 = sshll.u32 %s5299_s22, 1 }
  0x1a   : > { %3426 = vmatprep.subr.bf16.mxu0 %v3799_v18  ;;  %397 = vst [vmem:[#allocation2 + $0x8] sm:$0x1] %v373_v37  ;;  %401 = vst [vmem:[#allocation2 + $0x18] sm:$0xff] %v377_v41   ;;  %v380_v59 = vld [vmem:[%s4144_s8 + $0x24] sm:$0xff]   ;;  %v379_v60 = vld [vmem:[%s4144_s8 + $0x20] sm:$0x1]  ;;  %s367_s11 = sadd.s32 %s3145_s18, %s5305_s21 }
  0x1b   : > { %3491 = vmatpush3.bf16.msra.mxu1 %v3798_v17  ;;  %400 = vst [vmem:[#allocation2 + $0x14] sm:$0x1] %v376_v44  ;;  %404 = vst [vmem:[#allocation2 + $0x24] sm:$0xff] %v380_v59   ;;  %v382_v30 = vld [vmem:[%s4144_s8 + $0x2c] sm:$0x1]  ;;  %s3146_s7 = sshll.u32 %s367_s11, 1 }
  0x1c   : > { %3492 = vmatprep.subr.bf16.mxu1 %v3800_v19  ;;  %403 = vst [vmem:[#allocation2 + $0x20] sm:$0x1] %v379_v60  ;;  %vm4247_vm13 = vmand %vm449_vm11, %vm459_vm12  ;;  %s369_s19 = scalar_lea.vmem %s5237_s6, %s3146_s7 }
  0x1d   : > { %3427 = vmatpush3.bf16.msra.mxu0 %v3801_v20  ;;  %406 = vst [vmem:[#allocation2 + $0x2c] sm:$0x1] %v382_v30  ;;  %vm512_vm14 = vmand %vm4247_vm13, %vm477_vm5 }
  0x1e   : > { %3428 = vmatprep.subr.bf16.mxu0 %v3803_v22  ;;  %vm4286_vm2 = vmand %vm4171_vm4, %vm538_vm7 }
  0x1f   : > { %3493 = vmatpush3.bf16.msra.mxu1 %v3802_v21  ;;  %vm4352_vm11 = vmand %vm4247_vm13, %vm538_vm7 }
  0x20   : > { %3494 = vmatprep.subr.bf16.mxu1 %v3804_v23  ;;  %v580_v43 = vld [vmem:[#allocation2 + $0xc] sm:$0xff]   ;;  %v3364_v49 = vld [vmem:[#allocation2] sm:$0xff]  }
  0x21   : > { %3429 = vmatpush3.bf16.msra.mxu0 %v3805_v24  ;;  %v610_v46 = vunpack.c.l.bf16 %v580_v43  ;;  %v611_v47 = vunpack.c.h.bf16 %v580_v43  ;;  %v3365_v54 = vunpack.c.l.bf16 %v3364_v49  ;;  %v3366_v55 = vunpack.c.h.bf16 %v3364_v49  ;;  %v579_v56 = vld [vmem:[#allocation2 + $0x8] sm:$0x1]  ;;  %v3410_v9 = vld [vmem:[#allocation2 + $0x18] sm:$0xff]   ;;  %v383_v24 = vld [vmem:[%s4144_s8 + $0x30] sm:$0xff]  }
  0x22   : > { %3430 = vmatprep.subr.bf16.mxu0 %v3807_v26  ;;  %v609_v58 = vunpack.c.l.bf16 %v579_v56  ;;  %v3369_v12 = vunpack.c.l.bf16 %v3410_v9  ;;  %v3370_v13 = vunpack.c.h.bf16 %v3410_v9  ;;  %v582_v14 = vld [vmem:[#allocation2 + $0x14] sm:$0x1]  ;;  %407 = vst [vmem:[#allocation2 + $0x30] sm:$0xff] %v383_v24   ;;  %v586_v36 = vld [vmem:[#allocation2 + $0x24] sm:$0xff]   ;;  %v4278_v56 = vadd.s32 5, %v4136_v29 }
  0x23   : > { %3495 = vmatpush3.bf16.msra.mxu1 %v3806_v25  ;;  %v646_v52 = vmul.f32 %v4179_v45, %v610_v46  ;;  %v647_v53 = vmul.f32 %v4179_v45, %v611_v47  ;;  %v643_v0 = vmul.f32 %v3365_v54, %v4179_v45  ;;  %v644_v1 = vmul.f32 %v3366_v55, %v4179_v45  ;;  %v585_v37 = vld [vmem:[#allocation2 + $0x20] sm:$0x1] }
  0x24   : > { %3496 = vmatprep.subr.bf16.mxu1 %v3808_v27  ;;  %v645_v3 = vmul.f32 %v4179_v45, %v609_v58  ;;  %v649_v23 = vmul.f32 %v3369_v12, %v4179_v45  ;;  %v650_v27 = vmul.f32 %v3370_v13, %v4179_v45  ;;  %v616_v43 = vunpack.c.l.bf16 %v586_v36  ;;  %v386_v55 = vld [vmem:[%s4144_s8 + $0x3c] sm:$0xff]  }
  0x25   : > { %3431 = vmatpush3.bf16.msra.mxu0 %v3809_v28  ;;  %v682_v61 = vadd.f32 %v4203_v57, %v646_v52  ;;  %v683_v62 = vadd.f32 %v4203_v57, %v647_v53  ;;  %v679_v7 = vadd.f32 %v4203_v57, %v643_v0  ;;  %v680_v8 = vadd.f32 %v4203_v57, %v644_v1 }
  0x26   : > { %3432 = vmatprep.subr.bf16.mxu0 %v3813_v35  ;;  %v681_v11 = vadd.f32 %v4203_v57, %v645_v3  ;;  %v612_v28 = vunpack.c.l.bf16 %v582_v14  ;;  %v685_v35 = vadd.f32 %v4203_v57, %v649_v23  ;;  %v617_v46 = vunpack.c.h.bf16 %v586_v36  ;;  %410 = vst [vmem:[#allocation2 + $0x3c] sm:$0xff] %v386_v55  }
  0x27   : > { %3497 = vmatpush3.bf16.msra.mxu1 %v3810_v31  ;;  %v712_v5 = vmax.f32 %v682_v61, 0.0  ;;  %v713_v6 = vmax.f32 %v683_v62, 0.0  ;;  %v709_v17 = vmax.f32 %v679_v7, 0.0  ;;  %v710_v18 = vmax.f32 %v680_v8, 0.0  ;;  %v385_v61 = vld [vmem:[%s4144_s8 + $0x38] sm:$0x1] }
  0x28   : > { %3610 = vmatprep.subr.bf16.mxu1 %v3833_v10  ;;  %v711_v22 = vmax.f32 %v681_v11, 0.0  ;;  %v648_v41 = vmul.f32 %v4179_v45, %v612_v28  ;;  %v715_v44 = vmax.f32 %v685_v35, 0.0  ;;  %v615_v47 = vunpack.c.l.bf16 %v585_v37  ;;  %409 = vst [vmem:[#allocation2 + $0x38] sm:$0x1] %v385_v61  ;;  %v388_v11 = vld [vmem:[%s4144_s8 + $0x44] sm:$0x1] }
  0x29   : > { %3433 = vmatpush3.bf16.msra.mxu0 %v3817_v38  ;;  %v802_v15 = vsel %vm4194_vm8, %v712_v5, 0.0  ;;  %v803_v16 = vsel %vm4171_vm4, %v713_v6, 0.0  ;;  %v799_v25 = vsel %vm4213_vm9, %v709_v17, 0.0  ;;  %v800_v26 = vsel %vm4182_vm6, %v710_v18, 0.0  ;;  %v3411_v1 = vld [vmem:[#allocation2 + $0x30] sm:$0xff]   ;;  %vm4310_vm8 = vmand %vm450_vm15, %vm460_vm1  ;;  %v3852_v37 = vld [vmem:[%s5233_s2 + $0x120] sm:$0xff]  }
  0x2a   : > { %3546 = vmatprep.subr.bf16.mxu0 %v3818_v40  ;;  %v3336_v20 = vpack.c.bf16 %v802_v15, %v802_v15  ;;  %v3337_v21 = vpack.c.bf16 %v803_v16, %v803_v16  ;;  %v801_v31 = vsel %vm4223_vm10, %v711_v22, 0.0  ;;  %v3386_v32 = vpack.c.bf16 %v800_v26, %v799_v25  ;;  %vm4328_vm9 = vmand %vm4310_vm8, %vm477_vm5  ;;  %412 = vst [vmem:[#allocation2 + $0x44] sm:$0x1] %v388_v11 }
  0x2b   : > { %v3335_v38 = vpack.c.bf16 %v801_v31, %v801_v31  ;;  %v686_v40 = vadd.f32 %v4203_v57, %v650_v27  ;;  %v684_v51 = vadd.f32 %v4203_v57, %v648_v41  ;;  %v652_v52 = vmul.f32 %v4179_v45, %v616_v43  ;;  %vm4434_vm15 = vmand %vm4310_vm8, %vm538_vm7 }
  0x2c   : > { %962 = vst [vmem:[#allocation2 + $0xc] sm:$0xf] %v3336_v20  ;;  %963 = vst [vmem:[#allocation2 + $0x10] sm:$0xf] %v3337_v21  ;;  %v805_v53 = vsel %vm512_vm14, %v715_v44, 0.0  ;;  %v653_v54 = vmul.f32 %v4179_v45, %v617_v46  ;;  %v651_v0 = vmul.f32 %v4179_v45, %v615_v47  ;;  %vm461_vm4 = vcmp.le.s32.totalorder %v4269_v48, 16 }
  0x2d   : > { %3387 = vst [vmem:[#allocation2] sm:$0xff] %v3386_v32   ;;  %961 = vst [vmem:[#allocation2 + $0x8] sm:$0x1] %v3335_v38  ;;  %v716_v49 = vmax.f32 %v686_v40, 0.0  ;;  %v714_v60 = vmax.f32 %v684_v51, 0.0  ;;  %v688_v63 = vadd.f32 %v4203_v57, %v652_v52  ;;  %v3373_v5 = vunpack.c.l.bf16 %v3411_v1  ;;  %v3835_v47 = vld [vmem:[%s5233_s2 + $0x180] sm:$0xff]  }
  0x2e   : > { %vm1159_vm6 = vsmask.f32 7424  ;;  %v689_v42 = vadd.f32 %v4203_v57, %v653_v54  ;;  %v4299_v6 = vadd.s32 6, %v4136_v29  ;;  %v3374_v12 = vunpack.c.h.bf16 %v3411_v1  ;;  %vm4340_vm10 = vmand %vm451_vm3, %vm461_vm4  ;;  %v3832_v46 = vld [vmem:[%s5233_s2 + $0x150] sm:$0xff]  }
  0x2f   : > { %v806_v58 = vsel %vm4247_vm13, %v716_v49, 0.0  ;;  %v804_v8 = vsel %vm4286_vm2, %v714_v60, 0.0  ;;  %v4315_v13 = vadd.s32 7, %v4136_v29  ;;  %v718_v23 = vmax.f32 %v688_v63, 0.0  ;;  %vm4384_vm13 = vmand %vm4340_vm10, %vm477_vm5 }
  0x30   : > { %v3391_v62 = vpack.c.bf16 %v806_v58, %v805_v53  ;;  %v3338_v17 = vpack.c.bf16 %v804_v8, %v804_v8  ;;  %v687_v24 = vadd.f32 %v4203_v57, %v651_v0  ;;  %v719_v30 = vmax.f32 %v689_v42, 0.0  ;;  %v3842_v53 = vld [vmem:[%s5233_s2 + $0x1c8] sm:$0xff]   ;;  %v3819_v58 = vld [vmem:[%s5233_s2 + $0x100] sm:$0xff]  }
  0x31   : > { %v655_v31 = vmul.f32 %v3373_v5, %v4179_v45  ;;  %v656_v38 = vmul.f32 %v3374_v12, %v4179_v45  ;;  %vm452_vm12 = vcmp.ge.s32.totalorder %v4278_v56, 1  ;;  %vm462_vm14 = vcmp.le.s32.totalorder %v4278_v56, 16  ;;  %v3844_v0 = vld [vmem:[%s5233_s2 + $0x188] sm:$0xff]   ;;  %v4399_v12 = vld [vmem:[#allocation2 + $0x3c] sm:$0xff]   ;;  %v594_v11 = vld [vmem:[#allocation2 + $0x44] sm:$0x1] }
  0x32   : > { %3414 = vst [vmem:[#allocation2 + $0x18] sm:$0xff] %v3391_v62   ;;  %964 = vst [vmem:[#allocation2 + $0x14] sm:$0x1] %v3338_v17  ;;  %v808_v51 = vsel %vm4328_vm9, %v718_v23, 0.0  ;;  %v809_v52 = vsel %vm4310_vm8, %v719_v30, 0.0  ;;  %v717_v19 = vmax.f32 %v687_v24, 0.0 }
  0x33   : > { %v1022_v2 = vld [vmem:[#allocation2 + $0xc] sm:$0xf]  ;;  %v4294_v3 = vld [vmem:[#allocation2 + $0x10] sm:$0xf]  ;;  %v3342_v62 = vpack.c.bf16 %v808_v51, %v808_v51  ;;  %v3343_v5 = vpack.c.bf16 %v809_v52, %v809_v52  ;;  %v691_v17 = vadd.f32 %v4203_v57, %v655_v31  ;;  %v622_v31 = vunpack.c.l.bf16 %v4399_v12  ;;  %vm4469_vm3 = vmand %vm452_vm12, %vm462_vm14 }
  0x34   : > { %v4302_v7 = vcombine.low %v1022_v2, %v4294_v3  ;;  %v991_v9 = vld [vmem:[#allocation2 + $0xc] sm:$0xf]  ;;  %v992_v10 = vld [vmem:[#allocation2 + $0x10] sm:$0xf]  ;;  %v989_v14 = vld [vmem:[#allocation2] sm:$0xf] }
  0x35   : > { %v990_v15 = vld [vmem:[#allocation2 + $0x4] sm:$0xf]  ;;  %v1013_v16 = vld [vmem:[#allocation2] sm:$0xe]  ;;  %v4317_v18 = vcombine.low %v991_v9, %v992_v10  ;;  %v1014_v22 = vld [vmem:[#allocation2 + $0xc] sm:$0xe] }
  0x36   : > { %2490 = vmatprep.mubr.bf16.mxu1 %v4302_v7  ;;  %v4320_v20 = vcombine.low %v989_v14, %v990_v15  ;;  %v3196_v21 = vcombine.low %v1013_v16, %v990_v15  ;;  %v3815_v25 = vld [vmem:[#allocation2 + $0x8] ss:$0 sps:$4 sm:$0x11]   ;;  %v3197_v26 = vcombine.low %v1014_v22, %v992_v10  ;;  %v807_v8 = vsel %vm4352_vm11, %v717_v19, 0.0  ;;  %v588_v10 = vld [vmem:[#allocation2 + $0x2c] sm:$0x1]  ;;  %vm4498_vm4 = vmand %vm4469_vm3, %vm477_vm5 }
  0x37   : > { %v1175_v27 = vshll.u32 %v4317_v18, 16  ;;  %v1290_v40 = vrot.slane %v3815_v25, 1  ;;  %v1168_v41 = vshll.u32 %v3815_v25, 16  ;;  %v1173_v44 = vshrl.u32 %v4317_v18, 16  ;;  %v3825_v42 = vld [vmem:[%s5233_s2 + $0x148] sm:$0xff]   ;;  %v3851_v25 = vld [vmem:[%s5233_s2 + $0x1d0] sm:$0xff]   ;;  %vm4523_vm8 = vmand %vm4340_vm10, %vm538_vm7 }
  0x38   : > { %v1289_v32 = vrot.slane %v3196_v21, 1  ;;  %v1161_v35 = vshrl.u32 %v4320_v20, 16  ;;  %v1163_v36 = vshll.u32 %v4320_v20, 16  ;;  %v4345_v43 = vrot.slane %v3197_v26, 1  ;;  %968 = vst [vmem:[#allocation2 + $0x24] sm:$0xf] %v3342_v62  ;;  %vm562_vm14 = vmand %vm4469_vm3, %vm538_vm7 }
  0x39   : > { %v1170_v55 = vrot.slane %v1168_v41, 1  ;;  %v1024_v59 = vld [vmem:[#allocation2 + $0x18] sm:$0xf]  ;;  %v4378_v60 = vld [vmem:[#allocation2 + $0x1c] sm:$0xf]  ;;  %v1177_v61 = vrot.slane %v1175_v27, 1  ;;  %v3341_v14 = vpack.c.bf16 %v807_v8, %v807_v8  ;;  %v692_v21 = vadd.f32 %v4203_v57, %v656_v38 }
  0x3a   : > { %v1165_v49 = vrot.slane %v1163_v36, 1  ;;  %v1291_v54 = vsel %vm1288_vm0, %v1289_v32, %v1290_v40  ;;  %v4392_v2 = vcombine.low %v1024_v59, %v4378_v60  ;;  %v993_v9 = vld [vmem:[#allocation2 + $0x18] sm:$0xf]  ;;  %v4401_v15 = vld [vmem:[#allocation2 + $0x1c] sm:$0xf]  ;;  %v3826_v26 = vld [vmem:[%s5233_s2 + $0x108] sm:$0xff]   ;;  %v618_v30 = vunpack.c.l.bf16 %v588_v10 }
  0x3b   : > { %2491 = vmatmul.mubr.bf16.vlgmr.msra.gmra.mrb[0].mxu1 %v1291_v54  ;;  %v4403_v16 = vld [vmem:[#allocation2 + $0x18] sm:$0xe]  ;;  %v3823_v23 = vld [vmem:[#allocation2 + $0x14] ss:$0 sps:$4 sm:$0x11]   ;;  %v4410_v24 = vcombine.low %v993_v9, %v4401_v15  ;;  %v721_v27 = vmax.f32 %v691_v17, 0.0 }
  0x3c   : > { %v1166_v1 = vor.u32 %v1165_v49, %v1161_v35  ;;  %3611 = vmatpush3.bf16.msra.mxu1 %v3835_v47  ;;  %2498 = vmatprep.mubr.bf16.mxu1 %v4392_v2  ;;  %969 = vst [vmem:[#allocation2 + $0x28] sm:$0xf] %v3343_v5  ;;  %967 = vst [vmem:[#allocation2 + $0x20] sm:$0x1] %v3341_v14  ;;  %v722_v28 = vmax.f32 %v692_v21, 0.0  ;;  %v1293_v32 = vrot.slane %v3823_v23, 1 }
  0x3d   : > { %3612 = vmatprep.subr.bf16.mxu1 %v3842_v53  ;;  %v1178_v35 = vor.u32 %v1177_v61, %v1173_v44  ;;  %v1180_v36 = vshll.u32 %v3823_v23, 16  ;;  %v3198_v38 = vcombine.low %v4403_v16, %v4401_v15  ;;  %v591_v40 = vld [vmem:[#allocation2 + $0x38] sm:$0x1]  ;;  %v1187_v41 = vshll.u32 %v4410_v24, 16  ;;  %v389_v54 = vld [vmem:[%s4144_s8 + $0x48] sm:$0xff]   ;;  %v3853_v61 = vld [vmem:[%s5233_s2 + $0x190] sm:$0xff]  }
  0x3e   : > { %v1171_v22 = vsel %vm1159_vm6, %v1166_v1, %v1170_v55  ;;  %v811_v47 = vsel %vm4384_vm13, %v721_v27, 0.0  ;;  %v654_v49 = vmul.f32 %v4179_v45, %v618_v30  ;;  %v1294_v51 = vsel %vm1288_vm0, %v4345_v43, %v1293_v32  ;;  %v3834_v55 = vld [vmem:[%s5233_s2 + $0x110] sm:$0xff]   ;;  %413 = vst [vmem:[#allocation2 + $0x48] sm:$0xff] %v389_v54   ;;  %v3841_v5 = vld [vmem:[%s5233_s2 + $0x158] sm:$0xff]  }
  0x3f   : > { %2393 = vmatprep.mubr.bf16.mxu0 %v1171_v22  ;;  %v1182_v52 = vrot.slane %v1180_v36, 1  ;;  %v623_v53 = vunpack.c.h.bf16 %v4399_v12  ;;  %vm453_vm1 = vcmp.ge.s32.totalorder %v4299_v6, 1  ;;  %vm463_vm2 = vcmp.le.s32.totalorder %v4299_v6, 16  ;;  %v1026_v63 = vld [vmem:[#allocation2 + $0x24] sm:$0xf]  ;;  %v3860_v17 = vld [vmem:[%s5233_s2 + $0x1d8] sm:$0xff]  }
  0x40   : > { %2394 = vmatmul.mubr.bf16.vlgmr.msra.gmra.mrb[0].mxu0 %v4320_v20  ;;  %v812_v20 = vsel %vm4340_vm10, %v722_v28, 0.0  ;;  %3613 = vmatpush3.bf16.msra.mxu1 %v3844_v0  ;;  %v690_v43 = vadd.f32 %v4203_v57, %v654_v49  ;;  %v621_v59 = vunpack.c.l.bf16 %v591_v40  ;;  %v1185_v0 = vshrl.u32 %v4410_v24, 16  ;;  %v4492_v28 = vld [vmem:[#allocation2 + $0x24] sm:$0xe]  ;;  %v392_v44 = vld [vmem:[%s4144_s8 + $0x54] sm:$0xff]   ;;  %vm4558_vm11 = vmand %vm453_vm1, %vm463_vm2 }
  0x41   : > { %3547 = vmatpush3.bf16.msra.mxu0 %v3819_v58  ;;  %v3396_v19 = vpack.c.bf16 %v812_v20, %v811_v47  ;;  %3614 = vmatprep.subr.bf16.mxu1 %v3851_v25  ;;  %v658_v58 = vmul.f32 %v4179_v45, %v622_v31  ;;  %v1183_v62 = vsel %vm1159_vm6, %v1178_v35, %v1182_v52  ;;  %v1189_v1 = vrot.slane %v1187_v41, 1  ;;  %v3843_v41 = vld [vmem:[%s5233_s2 + $0x118] sm:$0xff]   ;;  %vm4589_vm12 = vmand %vm4558_vm11, %vm477_vm5 }
  0x42   : > { %3548 = vmatprep.subr.bf16.mxu0 %v3825_v42  ;;  %v995_v42 = vld [vmem:[#allocation2 + $0x24] sm:$0xf]  ;;  %v659_v9 = vmul.f32 %v4179_v45, %v623_v53  ;;  %2401 = vmatprep.mubr.bf16.mxu0 %v1183_v62  ;;  %v720_v12 = vmax.f32 %v690_v43, 0.0  ;;  %v657_v16 = vmul.f32 %v4179_v45, %v621_v59  ;;  %v1295_v23 = vrot.slane %v3198_v38, 1  ;;  %416 = vst [vmem:[#allocation2 + $0x54] sm:$0xff] %v392_v44   ;;  %vm565_vm2 = vmand %vm4558_vm11, %vm538_vm7 }
  0x43   : > { %2499 = vmatmul.mubr.bf16.gmra.mrb[4].mxu1 %v1294_v51  ;;  %3415 = vst [vmem:[#allocation2 + $0x30] sm:$0xff] %v3396_v19   ;;  %v4474_v10 = vld [vmem:[#allocation2 + $0x28] sm:$0xf]  ;;  %v694_v15 = vadd.f32 %v4203_v57, %v658_v58  ;;  %v3830_v22 = vld [vmem:[#allocation2 + $0x20] ss:$0 sps:$4 sm:$0x11]   ;;  %v1190_v36 = vor.u32 %v1189_v1, %v1185_v0 }
  0x44   : > { %v4476_v14 = vld [vmem:[#allocation2 + $0x28] sm:$0xf]  ;;  %v4484_v21 = vcombine.low %v1026_v63, %v4474_v10  ;;  %v810_v27 = vsel %vm4434_vm15, %v720_v12, 0.0  ;;  %v693_v32 = vadd.f32 %v4203_v57, %v657_v16  ;;  %3615 = vmatpush3.bf16.msra.mxu1 %v3853_v61  ;;  %v1296_v35 = vrot.slane %v3830_v22, 1  ;;  %v3868_v12 = vld [vmem:[%s5233_s2 + $0x1e0] sm:$0xff]  }
  0x45   : > { %3549 = vmatpush3.bf16.msra.mxu0 %v3826_v26  ;;  %v4487_v25 = vcombine.low %v995_v42, %v4476_v14  ;;  %v695_v26 = vadd.f32 %v4203_v57, %v659_v9  ;;  %v724_v31 = vmax.f32 %v694_v15, 0.0  ;;  %v1192_v38 = vshll.u32 %v3830_v22, 16  ;;  %3616 = vmatprep.subr.bf16.mxu1 %v3860_v17  ;;  %v3412_v54 = vld [vmem:[#allocation2 + $0x48] sm:$0xff]  }
  0x46   : > { %3550 = vmatprep.subr.bf16.mxu0 %v3832_v46  ;;  %2506 = vmatprep.mubr.bf16.mxu1 %v4484_v21  ;;  %v3344_v40 = vpack.c.bf16 %v810_v27, %v810_v27  ;;  %v3862_v46 = vld [vmem:[%s5233_s2 + $0x198] sm:$0xff]   ;;  %v1297_v49 = vsel %vm1288_vm0, %v1295_v23, %v1296_v35  ;;  %v723_v53 = vmax.f32 %v693_v32, 0.0  ;;  %v3199_v58 = vcombine.low %v4492_v28, %v4476_v14  ;;  %v3859_v32 = vld [vmem:[%s5233_s2 + $0x168] sm:$0xff]  }
  0x47   : > { %v1199_v47 = vshll.u32 %v4487_v25, 16  ;;  %v725_v20 = vmax.f32 %v695_v26, 0.0  ;;  %v1194_v51 = vrot.slane %v1192_v38, 1  ;;  %v814_v52 = vsel %vm4498_vm4, %v724_v31, 0.0  ;;  %v3869_v26 = vld [vmem:[%s5233_s2 + $0x1a0] sm:$0xff]   ;;  %v3861_v38 = vld [vmem:[%s5233_s2 + $0x128] sm:$0xff]  }
  0x48   : > { %2402 = vmatmul.mubr.bf16.gmra.mrb[4].mxu0 %v4317_v18  ;;  %v3850_v18 = vld [vmem:[%s5233_s2 + $0x160] sm:$0xff]   ;;  %970 = vst [vmem:[#allocation2 + $0x2c] sm:$0x1] %v3344_v40  ;;  %v3348_v59 = vpack.c.bf16 %v814_v52, %v814_v52  ;;  %v3377_v61 = vunpack.c.l.bf16 %v3412_v54  ;;  %3617 = vmatpush3.bf16.msra.mxu1 %v3862_v46  ;;  %vm454_vm9 = vcmp.ge.s32.totalorder %v4315_v13, 1  ;;  %vm464_vm10 = vcmp.le.s32.totalorder %v4315_v13, 16 }
  0x49   : > { %3551 = vmatpush3.bf16.msra.mxu0 %v3834_v55  ;;  %v4537_v62 = vadd.s32 8, %v4136_v29  ;;  %v1195_v63 = vsel %vm1159_vm6, %v1190_v36, %v1194_v51  ;;  %v624_v9 = vunpack.c.l.bf16 %v594_v11  ;;  %v1197_v14 = vshrl.u32 %v4487_v25, 16  ;;  %v391_v40 = vld [vmem:[%s4144_s8 + $0x50] sm:$0x1]  ;;  %3618 = vmatprep.subr.bf16.mxu1 %v3868_v12  ;;  %v598_v11 = vld [vmem:[#allocation2 + $0x54] sm:$0xff]   ;;  %vm4619_vm13 = vmand %vm454_vm9, %vm464_vm10 }
  0x4a   : > { %3552 = vmatprep.subr.bf16.mxu0 %v3841_v5  ;;  %v1028_v55 = vld [vmem:[#allocation2 + $0x30] sm:$0xf]  ;;  %v4527_v43 = vld [vmem:[#allocation2 + $0x34] sm:$0xf]  ;;  %v3378_v5 = vunpack.c.h.bf16 %v3412_v54  ;;  %2409 = vmatprep.mubr.bf16.mxu0 %v1195_v63  ;;  %v815_v15 = vsel %vm4469_vm3, %v725_v20, 0.0  ;;  %v813_v16 = vsel %vm4523_vm8, %v723_v53, 0.0  ;;  %v661_v36 = vmul.f32 %v3377_v61, %v4179_v45  ;;  %vm527_vm15 = vmand %vm4619_vm13, %vm477_vm5 }
  0x4b   : > { %2507 = vmatmul.mubr.bf16.gmra.mrb[8].mxu1 %v1297_v49  ;;  %v4541_v0 = vcombine.low %v1028_v55, %v4527_v43  ;;  %v997_v1 = vld [vmem:[#allocation2 + $0x30] sm:$0xf]  ;;  %v998_v42 = vld [vmem:[#allocation2 + $0x34] sm:$0xf]  ;;  %974 = vst [vmem:[#allocation2 + $0x3c] sm:$0xf] %v3348_v59  ;;  %v3349_v28 = vpack.c.bf16 %v815_v15, %v815_v15  ;;  %v3347_v30 = vpack.c.bf16 %v813_v16, %v813_v16  ;;  %vm568_vm9 = vmand %vm4619_vm13, %vm538_vm7 }
  0x4c   : > { %v1017_v17 = vld [vmem:[#allocation2 + $0x30] sm:$0xe]  ;;  %v4552_v22 = vcombine.low %v997_v1, %v998_v42  ;;  %v1201_v27 = vrot.slane %v1199_v47, 1  ;;  %v662_v46 = vmul.f32 %v3378_v5, %v4179_v45  ;;  %v660_v47 = vmul.f32 %v4179_v45, %v624_v9  ;;  %415 = vst [vmem:[#allocation2 + $0x50] sm:$0x1] %v391_v40  ;;  %3619 = vmatpush3.bf16.msra.mxu1 %v3869_v26 }
  0x4d   : > { %3553 = vmatpush3.bf16.msra.mxu0 %v3843_v41  ;;  %2514 = vmatprep.mubr.bf16.mxu1 %v4541_v0  ;;  %v3200_v31 = vcombine.low %v1017_v17, %v998_v42  ;;  %v1298_v41 = vrot.slane %v3199_v58, 1  ;;  %975 = vst [vmem:[#allocation2 + $0x40] sm:$0xf] %v3349_v28  ;;  %973 = vst [vmem:[#allocation2 + $0x38] sm:$0x1] %v3347_v30  ;;  %v3870_v20 = vld [vmem:[%s5233_s2 + $0x170] sm:$0xff]   ;;  %v697_v51 = vadd.f32 %v4203_v57, %v661_v36 }
  0x4e   : > { %3554 = vmatprep.subr.bf16.mxu0 %v3850_v18  ;;  %v1211_v35 = vshll.u32 %v4552_v22, 16  ;;  %v3871_v18 = vld [vmem:[%s5233_s2 + $0x1e8] sm:$0xff]   ;;  %v1202_v52 = vor.u32 %v1201_v27, %v1197_v14  ;;  %v698_v53 = vadd.f32 %v4203_v57, %v662_v46  ;;  %v696_v54 = vadd.f32 %v4203_v57, %v660_v47  ;;  %v3872_v5 = vld [vmem:[%s5233_s2 + $0x130] sm:$0xff]  }
  0x4f   : > { %v3839_v44 = vld [vmem:[#allocation2 + $0x2c] ss:$0 sps:$4 sm:$0x11]   ;;  %v1301_v19 = vrot.slane %v3200_v31, 1  ;;  %3620 = vmatprep.subr.bf16.mxu1 %v3871_v18  ;;  %v628_v1 = vunpack.c.l.bf16 %v598_v11  ;;  %v629_v42 = vunpack.c.h.bf16 %v598_v11  ;;  %vm455_vm1 = vcmp.ge.s32.totalorder %v4537_v62, 1 }
  0x50   : > { %2410 = vmatmul.mubr.bf16.gmra.mrb[8].mxu0 %v4410_v24  ;;  %v1209_v24 = vshrl.u32 %v4552_v22, 16  ;;  %v1299_v55 = vrot.slane %v3839_v44, 1  ;;  %v1204_v58 = vshll.u32 %v3839_v44, 16  ;;  %v1213_v59 = vrot.slane %v1211_v35, 1 }
  0x51   : > { %3555 = vmatpush3.bf16.msra.mxu0 %v3852_v37  ;;  %v727_v37 = vmax.f32 %v697_v51, 0.0  ;;  %v728_v61 = vmax.f32 %v698_v53, 0.0  ;;  %v726_v63 = vmax.f32 %v696_v54, 0.0  ;;  %v664_v27 = vmul.f32 %v4179_v45, %v628_v1 }
  0x52   : > { %3556 = vmatprep.subr.bf16.mxu0 %v3859_v32  ;;  %v1300_v9 = vsel %vm1288_vm0, %v1298_v41, %v1299_v55  ;;  %v1206_v12 = vrot.slane %v1204_v58, 1  ;;  %v1030_v14 = vld [vmem:[#allocation2 + $0x3c] sm:$0xf]  ;;  %v665_v28 = vmul.f32 %v4179_v45, %v629_v42  ;;  %vm465_vm3 = vcmp.le.s32.totalorder %v4537_v62, 16 }
  0x53   : > { %v817_v15 = vsel %vm4589_vm12, %v727_v37, 0.0  ;;  %v999_v16 = vld [vmem:[#allocation2 + $0x3c] sm:$0xf]  ;;  %2515 = vmatmul.mubr.bf16.gmra.mrb[12].mxu1 %v1300_v9  ;;  %v818_v8 = vsel %vm4558_vm11, %v728_v61, 0.0  ;;  %v816_v17 = vsel %vm562_vm14, %v726_v63, 0.0  ;;  %v700_v18 = vadd.f32 %v4203_v57, %v664_v27  ;;  %vm4687_vm4 = vmand %vm455_vm1, %vm465_vm3 }
  0x54   : > { %v1207_v30 = vsel %vm1159_vm6, %v1202_v52, %v1206_v12  ;;  %v4626_v31 = vld [vmem:[#allocation2 + $0x40] sm:$0xf]  ;;  %v3401_v32 = vpack.c.bf16 %v818_v8, %v817_v15  ;;  %v3350_v35 = vpack.c.bf16 %v816_v17, %v816_v17  ;;  %v3848_v41 = vld [vmem:[#allocation2 + $0x38] ss:$0 sps:$4 sm:$0x11]   ;;  %v701_v44 = vadd.f32 %v4203_v57, %v665_v28  ;;  %vm4719_vm8 = vmand %vm4687_vm4, %vm477_vm5 }
  0x55   : > { %3557 = vmatpush3.bf16.msra.mxu0 %v3861_v38  ;;  %v1000_v36 = vld [vmem:[#allocation2 + $0x40] sm:$0xf]  ;;  %v1018_v38 = vld [vmem:[#allocation2 + $0x3c] sm:$0xe]  ;;  %2417 = vmatprep.mubr.bf16.mxu0 %v1207_v30  ;;  %v4629_v40 = vcombine.low %v1030_v14, %v4626_v31  ;;  %v597_v47 = vld [vmem:[#allocation2 + $0x50] sm:$0x1]  ;;  %v1214_v52 = vor.u32 %v1213_v59, %v1209_v24 }
  0x56   : > { %3558 = vmatprep.subr.bf16.mxu0 %v3870_v20  ;;  %v4631_v46 = vcombine.low %v999_v16, %v1000_v36  ;;  %v3873_v20 = vld [vmem:[%s5233_s2 + $0x1a8] sm:$0xff]   ;;  %3416 = vst [vmem:[#allocation2 + $0x48] sm:$0xff] %v3401_v32   ;;  %976 = vst [vmem:[#allocation2 + $0x44] sm:$0x1] %v3350_v35  ;;  %v627_v49 = vunpack.c.l.bf16 %v597_v47  ;;  %v1302_v51 = vrot.slane %v3848_v41, 1  ;;  %v730_v54 = vmax.f32 %v700_v18, 0.0 }
  0x57   : > { %2522 = vmatprep.mubr.bf16.mxu1 %v4629_v40  ;;  %v731_v11 = vmax.f32 %v701_v44, 0.0  ;;  %3621 = vmatpush3.bf16.msra.mxu1 %v3873_v20  ;;  %v3201_v37 = vcombine.low %v1018_v38, %v1000_v36  ;;  %v419_v59 = vld [vmem:[%s4644_s20] sm:$0xff]   ;;  %v394_v61 = vld [vmem:[%s4144_s8 + $0x5c] sm:$0x1]  ;;  %v3880_v14 = vld [vmem:[%s5233_s2 + $0x1b0] sm:$0xff]   ;;  %s3143_s8 = sshll.u32 %s5299_s22, 5 }
  0x58   : > { %2418 = vmatmul.mubr.bf16.gmra.mrb[12].mxu0 %v4487_v25  ;;  %v1216_v25 = vshll.u32 %v3848_v41, 16  ;;  %v1223_v53 = vshll.u32 %v4631_v46, 16  ;;  %v1303_v55 = vsel %vm1288_vm0, %v1301_v19, %v1302_v51  ;;  %v663_v24 = vmul.f32 %v4179_v45, %v627_v49  ;;  %426 = vst [vmem:[#allocation2 + $0x60] sm:$0xff] %v419_v59   ;;  %418 = vst [vmem:[#allocation2 + $0x5c] sm:$0x1] %v394_v61  ;;  %v3881_v16 = vld [vmem:[%s5233_s2 + $0x178] sm:$0xff]   ;;  %s358_s12 = sadd.s32 %s3143_s8, %s3142_s10 }
  0x59   : > { %3559 = vmatpush3.bf16.msra.mxu0 %v3872_v5  ;;  %v1221_v63 = vshrl.u32 %v4631_v46, 16  ;;  %v820_v1 = vsel %vm527_vm15, %v730_v54, 0.0  ;;  %v821_v42 = vsel %vm4619_vm13, %v731_v11, 0.0  ;;  %v3879_v5 = vld [vmem:[%s5233_s2 + $0x1f0] sm:$0xff]   ;;  %v1304_v27 = vrot.slane %v3201_v37, 1  ;;  %v3882_v54 = vld [vmem:[%s5233_s2 + $0x1f8] sm:$0xff]  }
  0x5a   : > { %v1218_v58 = vrot.slane %v1216_v25, 1  ;;  %v3354_v9 = vpack.c.bf16 %v820_v1, %v820_v1  ;;  %v3355_v12 = vpack.c.bf16 %v821_v42, %v821_v42  ;;  %v699_v45 = vadd.f32 %v4203_v57, %v663_v24  ;;  %3622 = vmatprep.subr.bf16.mxu1 %v3879_v5  ;;  %3560 = vmatprep.subr.bf16.mxu0 %v3881_v16  ;;  %v4707_v59 = vld [vmem:[%s5234_s3] ss:$0 sm:$0xff]  ;;  %s3144_s15 = sshll.u32 %s358_s12, 3 }
  0x5b   : > { %2523 = vmatmul.mubr.bf16.gmra.mrb[16].mxu1 %v1303_v55  ;;  %v1225_v15 = vrot.slane %v1223_v53, 1  ;;  %v3883_v55 = vld [vmem:[%s5233_s2 + $0x138] sm:$0xff]   ;;  %s5112_s17 = scalar_lea.vmem %s5236_s5, %s3144_s15  ;;  %vm2846_vm15 = vcmp.lt.s32.totalorder %v4136_v29, 16  ;;  %vm2853_vm1 = vcmp.lt.s32.totalorder %v4315_v13, 16  ;;  %vm2849_vm3 = vcmp.lt.s32.totalorder %v4231_v4, 16 }
  0x5c   : > { %v1219_v19 = vsel %vm1159_vm6, %v1214_v52, %v1218_v58  ;;  %980 = vst [vmem:[#allocation2 + $0x54] sm:$0xf] %v3354_v9  ;;  %981 = vst [vmem:[#allocation2 + $0x58] sm:$0xf] %v3355_v12  ;;  %3623 = vmatpush3.bf16.msra.mxu1 %v3880_v14  ;;  %v729_v30 = vmax.f32 %v699_v45, 0.0  ;;  %v3884_v45 = vld [vmem:[%s5233_s2 + $0x1b8] sm:$0xff]  }
  0x5d   : > { %2425 = vmatprep.mubr.bf16.mxu0 %v1219_v19  ;;  %v1032_v8 = vld [vmem:[#allocation2 + $0x48] sm:$0xf]  ;;  %v4671_v17 = vld [vmem:[#allocation2 + $0x4c] sm:$0xf]  ;;  %v1226_v38 = vor.u32 %v1225_v15, %v1221_v63  ;;  %3624 = vmatprep.subr.bf16.mxu1 %v3882_v54  ;;  %v4731_v14 = vld [vmem:[%s5235_s4] ss:$0 sm:$0xff] }
  0x5e   : > { %v4680_v57 = vcombine.low %v1032_v8, %v4671_v17  ;;  %v3857_v28 = vld [vmem:[#allocation2 + $0x44] ss:$0 sps:$4 sm:$0x11]   ;;  %v1001_v32 = vld [vmem:[#allocation2 + $0x48] sm:$0xf]  ;;  %v819_v23 = vsel %vm565_vm2, %v729_v30, 0.0  ;;  %3561 = vmatpush3.bf16.msra.mxu0 %v3883_v55 }
  0x5f   : > { %v1002_v35 = vld [vmem:[#allocation2 + $0x4c] sm:$0xf]  ;;  %v1305_v36 = vrot.slane %v3857_v28, 1  ;;  %v1228_v41 = vshll.u32 %v3857_v28, 16  ;;  %v1019_v47 = vld [vmem:[#allocation2 + $0x48] sm:$0xe]  ;;  %v3353_v20 = vpack.c.bf16 %v819_v23, %v819_v23 }
  0x60   : > { %2426 = vmatmul.mubr.bf16.gmra.mrb[16].mxu0 %v4552_v22  ;;  %2530 = vmatprep.mubr.bf16.mxu1 %v4680_v57  ;;  %v4691_v18 = vcombine.low %v1001_v32, %v1002_v35  ;;  %v3413_v44 = vld [vmem:[#allocation2 + $0x60] sm:$0xff]   ;;  %v600_v49 = vld [vmem:[#allocation2 + $0x5c] sm:$0x1]  ;;  %v3202_v42 = vcombine.low %v1019_v47, %v1002_v35  ;;  %v1046_v19 = vld [vmem:[#allocation2 + $0xc] sm:$0xe]  ;;  %vm2852_vm2 = vcmp.lt.s32.totalorder %v4299_v6, 16 }
  0x61   : > { %v1306_v51 = vsel %vm1288_vm0, %v1304_v27, %v1305_v36  ;;  %v1230_v52 = vrot.slane %v1228_v41, 1  ;;  %v3381_v25 = vunpack.c.l.bf16 %v3413_v44  ;;  %v3382_v53 = vunpack.c.h.bf16 %v3413_v44  ;;  %979 = vst [vmem:[#allocation2 + $0x50] sm:$0x1] %v3353_v20  ;;  %v1055_v27 = vld [vmem:[#allocation2 + $0x18] sm:$0xf]  ;;  %3625 = vmatpush3.bf16.msra.mxu1 %v3884_v45 }
  0x62   : > { %v1235_v62 = vshll.u32 %v4691_v18, 16  ;;  %v630_v11 = vunpack.c.l.bf16 %v600_v49  ;;  %v1233_v5 = vshrl.u32 %v4691_v18, 16  ;;  %v4737_v32 = vld [vmem:[#allocation2 + $0x1c] sm:$0xf]  ;;  %v1057_v55 = vld [vmem:[#allocation2 + $0x24] sm:$0xf] }
  0x63   : > { %2531 = vmatmul.mubr.bf16.gmra.mrb[20].mxu1 %v1306_v51  ;;  %v1231_v58 = vsel %vm1159_vm6, %v1226_v38, %v1230_v52  ;;  %v1034_v37 = vld [vmem:[#allocation2 + $0x54] sm:$0xf]  ;;  %v4702_v24 = vld [vmem:[#allocation2 + $0x58] sm:$0xf]  ;;  %v667_v61 = vmul.f32 %v4707_v59, %v3381_v25  ;;  %v668_v63 = vmul.f32 %v4707_v59, %v3382_v53  ;;  %v1307_v38 = vrot.slane %v3202_v42, 1 }
  0x64   : > { %2433 = vmatprep.mubr.bf16.mxu0 %v1231_v58  ;;  %v4712_v1 = vcombine.low %v1034_v37, %v4702_v24  ;;  %v666_v9 = vmul.f32 %v4707_v59, %v630_v11  ;;  %v1003_v12 = vld [vmem:[#allocation2 + $0x54] sm:$0xf]  ;;  %v1004_v8 = vld [vmem:[#allocation2 + $0x58] sm:$0xf]  ;;  %v1237_v28 = vrot.slane %v1235_v62, 1  ;;  %v4749_v23 = vcombine.low %v1055_v27, %v4737_v32 }
  0x65   : > { %v703_v15 = vadd.f32 %v4731_v14, %v667_v61  ;;  %v704_v16 = vadd.f32 %v4731_v14, %v668_v63  ;;  %v4751_v47 = vld [vmem:[#allocation2 + $0x20] ss:$0 sps:$4 sm:$0x11]   ;;  %v4757_v49 = vcombine.low %v1003_v12, %v1004_v8  ;;  %v1020_v61 = vld [vmem:[#allocation2 + $0x54] sm:$0xe] }
  0x66   : > { %2538 = vmatprep.mubr.bf16.mxu1 %v4712_v1  ;;  %v702_v30 = vadd.f32 %v4731_v14, %v666_v9  ;;  %v1238_v51 = vor.u32 %v1237_v28, %v1233_v5  ;;  %v1628_v11 = vshll.u32 %v4749_v23, 16  ;;  %v4764_v42 = vld [vmem:[#allocation2 + $0x28] sm:$0xf]  ;;  %v1633_v5 = vshll.u32 %v4751_v47, 16 }
  0x67   : > { %v733_v35 = vmax.f32 %v703_v15, 0.0  ;;  %v734_v36 = vmax.f32 %v704_v16, 0.0  ;;  %v1247_v63 = vshll.u32 %v4757_v49, 16  ;;  %v4769_v12 = vcombine.low %v1057_v55, %v4764_v42  ;;  %v1047_v55 = vld [vmem:[#allocation2 + $0x18] sm:$0xe] }
  0x68   : > { %2434 = vmatmul.mubr.bf16.gmra.mrb[20].mxu0 %v4631_v46  ;;  %v4742_v46 = vld [vmem:[%s5233_s2 + $0x200] sm:$0xff]   ;;  %v732_v41 = vmax.f32 %v702_v30, 0.0  ;;  %v3866_v20 = vld [vmem:[#allocation2 + $0x50] ss:$0 sps:$4 sm:$0x11]   ;;  %v1626_v45 = vshrl.u32 %v4749_v23, 16  ;;  %v3203_v27 = vcombine.low %v1020_v61, %v1004_v8 }
  0x69   : > { %3690 = vmatprep.subr.bf16.mxu0 %v4742_v46  ;;  %3722 = vmatprep.subr.bf16.mxu1 %v4742_v46  ;;  %v823_v44 = vsel %vm4719_vm8, %v733_v35, 0.0  ;;  %v824_v26 = vsel %vm4687_vm4, %v734_v36, 0.0  ;;  %v1308_v25 = vrot.slane %v3866_v20, 1  ;;  %v1240_v53 = vshll.u32 %v3866_v20, 16 }
  0x6a   : > { %v822_v52 = vsel %vm568_vm9, %v732_v41, 0.0  ;;  %v3406_v54 = vpack.c.bf16 %v824_v26, %v823_v44  ;;  %v1630_v15 = vrot.slane %v1628_v11, 1  ;;  %v1396_v16 = vshll.u32 %v4302_v7, 16  ;;  %v4776_v41 = vld [vmem:[#allocation2 + $0x2c] ss:$0 sps:$4 sm:$0x11]  }
  0x6b   : > { %v3356_v62 = vpack.c.bf16 %v822_v52, %v822_v52  ;;  %v1309_v58 = vsel %vm1288_vm0, %v1307_v38, %v1308_v25  ;;  %v1242_v37 = vrot.slane %v1240_v53, 1  ;;  %v1245_v28 = vshrl.u32 %v4757_v49, 16  ;;  %v3887_v38 = vld [vmem:[#allocation2 + $0x14] ss:$0 sps:$4 sm:$0x11]  }
  0x6c   : > { %3417 = vst [vmem:[#allocation2 + $0x60] sm:$0xff] %v3406_v54   ;;  %2539 = vmatmul.mubr.bf16.gmra.mrb[24].mxu1 %v1309_v58  ;;  %v1249_v30 = vrot.slane %v1247_v63, 1  ;;  %v3220_v35 = vcombine.low %v1046_v19, %v4294_v3  ;;  %v1635_v36 = vrot.slane %v1633_v5, 1  ;;  %v1640_v20 = vshll.u32 %v4769_v12, 16  ;;  %v1059_v44 = vld [vmem:[#allocation2 + $0x30] sm:$0xf] }
  0x6d   : > { %982 = vst [vmem:[#allocation2 + $0x5c] sm:$0x1] %v3356_v62  ;;  %v1243_v9 = vsel %vm1159_vm6, %v1238_v51, %v1242_v37  ;;  %v1631_v52 = vor.u32 %v1630_v15, %v1626_v45  ;;  %v4781_v25 = vld [vmem:[#allocation2 + $0x34] sm:$0xf]  ;;  %v1310_v53 = vrot.slane %v3203_v27, 1  ;;  %v1522_v62 = vrot.slane %v3887_v38, 1 }
  0x6e   : > { %2441 = vmatprep.mubr.bf16.mxu0 %v1243_v9  ;;  %v1250_v54 = vor.u32 %v1249_v30, %v1245_v28  ;;  %v1521_v3 = vrot.slane %v3220_v35, 1  ;;  %v1638_v11 = vshrl.u32 %v4769_v12, 16  ;;  %v1642_v61 = vrot.slane %v1640_v20, 1 }
  0x6f   : > { %v1645_v63 = vshll.u32 %v4776_v41, 16  ;;  %v1636_v5 = vsel %vm1159_vm6, %v1631_v52, %v1635_v36  ;;  %v4791_v19 = vcombine.low %v1059_v44, %v4781_v25  ;;  %v1394_v15 = vshrl.u32 %v4302_v7, 16  ;;  %v3891_v44 = vld [vmem:[#allocation2 + $0x20] ss:$0 sps:$4 sm:$0x11]  }
  0x70   : > { %2442 = vmatmul.mubr.bf16.gmra.mrb[24].mxu0 %v4691_v18  ;;  %v1398_v27 = vrot.slane %v1396_v16, 1  ;;  %v3221_v28 = vcombine.low %v1047_v55, %v4378_v60  ;;  %v1401_v30 = vshll.u32 %v3887_v38, 16  ;;  %v1523_v20 = vsel %vm1288_vm0, %v1521_v3, %v1522_v62  ;;  %v4798_v52 = vld [vmem:[#allocation2 + $0x38] ss:$0 sps:$4 sm:$0x11]   ;;  %v422_v3 = vld [vmem:[%s4644_s20 + $0xc] sm:$0xff]  }
  0x71   : > { %v1643_v36 = vor.u32 %v1642_v61, %v1638_v11  ;;  %v1061_v7 = vld [vmem:[#allocation2 + $0x3c] sm:$0xf]  ;;  %v4802_v60 = vld [vmem:[#allocation2 + $0x40] sm:$0xf]  ;;  %v1408_v16 = vshll.u32 %v4392_v2, 16  ;;  %v4807_v62 = vadd.s32 9, %v4136_v29 }
  0x72   : > { %v1048_v38 = vld [vmem:[#allocation2 + $0x24] sm:$0xe]  ;;  %v1049_v11 = vld [vmem:[#allocation2 + $0x30] sm:$0xe]  ;;  %429 = vst [vmem:[#allocation2 + $0x6c] sm:$0xff] %v422_v3   ;;  %v1650_v61 = vshrl.u32 %v4791_v19, 16 }
  0x73   : > { %v1036_v51 = vld [vmem:[#allocation2 + $0x60] sm:$0xf]  ;;  %v4779_v26 = vld [vmem:[#allocation2 + $0x64] sm:$0xf]  ;;  %vm456_vm10 = vcmp.ge.s32.totalorder %v4807_v62, 1  ;;  %vm466_vm11 = vcmp.le.s32.totalorder %v4807_v62, 16 }
  0x74   : > { %v4784_v18 = vcombine.low %v1036_v51, %v4779_v26  ;;  %v3877_v8 = vld [vmem:[#allocation2 + $0x5c] ss:$0 sps:$4 sm:$0x11]   ;;  %v1647_v51 = vrot.slane %v1645_v63, 1  ;;  %vm4884_vm12 = vmand %vm456_vm10, %vm466_vm11 }
  0x75   : > { %v1311_v58 = vrot.slane %v3877_v8, 1  ;;  %v1252_v37 = vshll.u32 %v3877_v8, 16  ;;  %v1652_v8 = vshll.u32 %v4791_v19, 16  ;;  %vm4914_vm14 = vmand %vm4884_vm12, %vm477_vm5 }
  0x76   : > { %2546 = vmatprep.mubr.bf16.mxu1 %v4784_v18  ;;  %v1648_v55 = vsel %vm1159_vm6, %v1643_v36, %v1647_v51  ;;  %v4827_v51 = vld [vmem:[%s5233_s2 + $0x210] sm:$0xff]   ;;  %vm4938_vm5 = vmand %vm4687_vm4, %vm538_vm7  ;;  %vm2848_vm4 = vcmp.lt.s32.totalorder %v4188_v50, 16 }
  0x77   : > { %v1312_v9 = vsel %vm1288_vm0, %v1310_v53, %v1311_v58  ;;  %v1254_v45 = vrot.slane %v1252_v37, 1  ;;  %v1399_v53 = vor.u32 %v1398_v27, %v1394_v15  ;;  %v1524_v58 = vrot.slane %v3221_v28, 1  ;;  %v3895_v15 = vld [vmem:[#allocation2 + $0x2c] ss:$0 sps:$4 sm:$0x11]   ;;  %vm574_vm13 = vmand %vm4884_vm12, %vm538_vm7 }
  0x78   : > { %2547 = vmatmul.mubr.bf16.gmra.mrb[28].mxu1 %v1312_v9  ;;  %v1525_v37 = vrot.slane %v3891_v44, 1  ;;  %v1654_v63 = vrot.slane %v1652_v8, 1  ;;  %v4816_v9 = vcombine.low %v1061_v7, %v4802_v60  ;;  %v1406_v28 = vshrl.u32 %v4392_v2, 16  ;;  %v1063_v7 = vld [vmem:[#allocation2 + $0x48] sm:$0xf] }
  0x79   : > { %v1255_v35 = vsel %vm1159_vm6, %v1250_v54, %v1254_v45  ;;  %2684 = vmatprep.mubr.bf16.mxu1 %v1636_v5  ;;  %v1403_v54 = vrot.slane %v1401_v30, 1  ;;  %v1657_v5 = vshll.u32 %v4798_v52, 16  ;;  %v3222_v45 = vcombine.low %v1048_v38, %v4474_v10  ;;  %v4830_v10 = vld [vmem:[#allocation2 + $0x44] ss:$0 sps:$4 sm:$0x11]  }
  0x7a   : > { %2449 = vmatprep.mubr.bf16.mxu0 %v1255_v35  ;;  %v1410_v30 = vrot.slane %v1408_v16, 1  ;;  %v1413_v35 = vshll.u32 %v3891_v44, 16  ;;  %v1526_v36 = vsel %vm1288_vm0, %v1524_v58, %v1525_v37  ;;  %v1655_v8 = vor.u32 %v1654_v63, %v1650_v61  ;;  %v4834_v16 = vld [vmem:[#allocation2 + $0x4c] sm:$0xf] }
  0x7b   : > { %2450 = vmatmul.mubr.bf16.gmra.mrb[28].mxu0 %v4757_v49  ;;  %v3892_v49 = vld [vmem:[%s5233_s2 + $0x208] sm:$0xff]   ;;  %v1404_v27 = vsel %vm1159_vm6, %v1399_v53, %v1403_v54  ;;  %v1659_v2 = vrot.slane %v1657_v5, 1  ;;  %v1664_v44 = vshll.u32 %v4816_v9, 16  ;;  %v1432_v38 = vshll.u32 %v4541_v0, 16  ;;  %v1050_v5 = vld [vmem:[#allocation2 + $0x3c] sm:$0xe] }
  0x7c   : > { %2587 = vmatprep.mubr.bf16.mxu0 %v1523_v20  ;;  %v1420_v20 = vshll.u32 %v4484_v21, 16  ;;  %v1527_v53 = vrot.slane %v3222_v45, 1  ;;  %v1418_v54 = vshrl.u32 %v4484_v21, 16  ;;  %v1425_v3 = vshll.u32 %v3895_v15, 16 }
  0x7d   : > { %v1528_v58 = vrot.slane %v3895_v15, 1  ;;  %v1662_v61 = vshrl.u32 %v4816_v9, 16  ;;  %v4845_v63 = vcombine.low %v1063_v7, %v4834_v16  ;;  %v1660_v21 = vsel %vm1159_vm6, %v1655_v8, %v1659_v2  ;;  %v3900_v15 = vld [vmem:[%s5233_s2 + $0x218] sm:$0xff]   ;;  %v4858_v2 = vld [vmem:[#allocation2 + $0x50] ss:$0 sps:$4 sm:$0x11]  }
  0x7e   : > { %v1422_v37 = vrot.slane %v1420_v20, 1  ;;  %v1666_v45 = vrot.slane %v1664_v44, 1  ;;  %v1434_v20 = vrot.slane %v1432_v38, 1  ;;  %vm2851_vm7 = vcmp.lt.s32.totalorder %v4278_v56, 16 }
  0x80   : > { %2685 = vmatmul.mubr.bf16.vlgmr.msra.gmra.mrb[32].mxu1 %v4749_v23  ;;  %v3223_v23 = vcombine.low %v1049_v11, %v4527_v43  ;;  %v1411_v43 = vor.u32 %v1410_v30, %v1406_v28  ;;  %v1415_v11 = vrot.slane %v1413_v35, 1  ;;  %v1427_v28 = vrot.slane %v1425_v3, 1  ;;  %v1065_v3 = vld [vmem:[#allocation2 + $0x54] sm:$0xf] }
  0x81   : > { %2692 = vmatprep.mubr.bf16.mxu1 %v1648_v55  ;;  %3730 = vmatpush3.bf16.msra.mxu1 %v4742_v46  ;;  %v4841_v55 = vld [vmem:[#allocation2 + $0x38] ss:$0 sps:$4 sm:$0x11]   ;;  %v1430_v35 = vshrl.u32 %v4541_v0, 16  ;;  %v1676_v0 = vshll.u32 %v4845_v63, 16  ;;  %v1423_v7 = vor.u32 %v1422_v37, %v1418_v54  ;;  %v1681_v37 = vshll.u32 %v4858_v2, 16 }
  0x82   : > { %3723 = vmatprep.subr.bf16.mxu1 %v3892_v49  ;;  %v1530_v30 = vrot.slane %v3223_v23, 1  ;;  %v1437_v8 = vshll.u32 %v4841_v55, 16  ;;  %v1529_v23 = vsel %vm1288_vm0, %v1527_v53, %v1528_v58  ;;  %v1531_v44 = vrot.slane %v4841_v55, 1  ;;  %v4872_v58 = vld [vmem:[#allocation2 + $0x58] sm:$0xf] }
  0x83   : > { %2588 = vmatmul.mubr.bf16.vlgmr.msra.gmra.mrb[32].mxu0 %v1404_v27  ;;  %v421_v27 = vld [vmem:[%s4644_s20 + $0x8] sm:$0x1]  ;;  %v3224_v53 = vcombine.low %v1050_v5, %v4626_v31  ;;  %v1674_v31 = vshrl.u32 %v4845_v63, 16  ;;  %v1678_v5 = vrot.slane %v1676_v0, 1  ;;  %v1079_v0 = vld [vmem:[#allocation2 + $0x18] sm:$0xe] }
  0x84   : > { %3691 = vmatpush3.bf16.msra.mxu0 %v4742_v46  ;;  %2595 = vmatprep.mubr.bf16.mxu0 %v1526_v36  ;;  %v1669_v46 = vshll.u32 %v4830_v10, 16  ;;  %428 = vst [vmem:[#allocation2 + $0x68] sm:$0x1] %v421_v27  ;;  %v1416_v36 = vsel %vm1159_vm6, %v1411_v43, %v1415_v11  ;;  %v424_v43 = vld [vmem:[%s4644_s20 + $0x14] sm:$0x1]  ;;  %v604_v11 = vld [vmem:[#allocation2 + $0x6c] sm:$0xff]   ;;  %v1532_v62 = vsel %vm1288_vm0, %v1530_v30, %v1531_v44 }
  0x85   : > { %3692 = vmatprep.subr.bf16.mxu0 %v3892_v49  ;;  %3731 = vmatpush3.bf16.msra.mxu1 %v3892_v49  ;;  %431 = vst [vmem:[#allocation2 + $0x74] sm:$0x1] %v424_v43  ;;  %v634_v55 = vunpack.c.l.bf16 %v604_v11  ;;  %v1439_v54 = vrot.slane %v1437_v8, 1  ;;  %v4896_v43 = vrot.slane %v3224_v53, 1 }
  0x86   : > { %3724 = vmatprep.subr.bf16.mxu1 %v4827_v51  ;;  %v1671_v38 = vrot.slane %v1669_v46, 1  ;;  %v4908_v44 = vld [vmem:[#allocation2 + $0x5c] ss:$0 sps:$4 sm:$0x11]  }
  0x88   : > { %2693 = vmatmul.mubr.bf16.gmra.mrb[36].mxu1 %v4769_v12  ;;  %3693 = vmatpush3.bf16.msra.mxu0 %v3892_v49  ;;  %v4867_v12 = vld [vmem:[%s5233_s2 + $0x220] sm:$0xff]   ;;  %v1667_v49 = vor.u32 %v1666_v45, %v1662_v61  ;;  %v635_v45 = vunpack.c.h.bf16 %v604_v11  ;;  %v3908_v11 = vld [vmem:[%s5233_s2 + $0x228] sm:$0xff]  }
  0x89   : > { %2700 = vmatprep.mubr.bf16.mxu1 %v1660_v21  ;;  %3694 = vmatprep.subr.bf16.mxu0 %v4827_v51  ;;  %v1435_v21 = vor.u32 %v1434_v20, %v1430_v35  ;;  %v4876_v61 = vld [vmem:[#allocation2 + $0x44] ss:$0 sps:$4 sm:$0x11]   ;;  %v1428_v35 = vsel %vm1159_vm6, %v1423_v7, %v1427_v28 }
  0x8a   : > { %3732 = vmatpush3.bf16.msra.mxu1 %v4827_v51  ;;  %v1672_v20 = vsel %vm1159_vm6, %v1667_v49, %v1671_v38  ;;  %v1683_v49 = vrot.slane %v1681_v37, 1  ;;  %v1534_v30 = vrot.slane %v4876_v61, 1 }
  0x8b   : > { %2596 = vmatmul.mubr.bf16.gmra.mrb[36].mxu0 %v1416_v36  ;;  %3725 = vmatprep.subr.bf16.mxu1 %v3900_v15  ;;  %v4892_v36 = vcombine.low %v1065_v3, %v4872_v58  ;;  %v603_v8 = vld [vmem:[#allocation2 + $0x68] sm:$0x1]  ;;  %v4905_v7 = vsel %vm1159_vm6, %v1435_v21, %v1439_v54  ;;  %v3244_v21 = vcombine.low %v1079_v0, %v4737_v32  ;;  %v1080_v54 = vld [vmem:[#allocation2 + $0x24] sm:$0xe]  ;;  %v1693_v0 = vshll.u32 %v4908_v44, 16 }
  0x8c   : > { %2603 = vmatprep.mubr.bf16.mxu0 %v1529_v23  ;;  %3695 = vmatpush3.bf16.msra.mxu0 %v4827_v51  ;;  %v670_v51 = vmul.f32 %v4707_v59, %v634_v55  ;;  %v671_v23 = vmul.f32 %v4707_v59, %v635_v45  ;;  %v633_v55 = vunpack.c.l.bf16 %v603_v8  ;;  %v606_v45 = vld [vmem:[#allocation2 + $0x74] sm:$0x1]  ;;  %v1754_v8 = vrot.slane %v4751_v47, 1 }
  0x8d   : > { %3696 = vmatprep.subr.bf16.mxu0 %v3900_v15  ;;  %v1686_v34 = vshrl.u32 %v4892_v36, 16  ;;  %v1688_v37 = vshll.u32 %v4892_v36, 16  ;;  %v636_v32 = vunpack.c.l.bf16 %v606_v45 }
  0x8e   : > { %3733 = vmatpush3.bf16.msra.mxu1 %v3900_v15  ;;  %v706_v28 = vadd.f32 %v4731_v14, %v670_v51  ;;  %v707_v3 = vadd.f32 %v4731_v14, %v671_v23  ;;  %v1753_v23 = vrot.slane %v3244_v21, 1 }
  0x8f   : > { %3726 = vmatprep.subr.bf16.mxu1 %v4867_v12  ;;  %v1690_v45 = vrot.slane %v1688_v37, 1  ;;  %v1449_v37 = vshll.u32 %v4876_v61, 16 }
  0x90   : > { %2701 = vmatmul.mubr.bf16.gmra.mrb[40].mxu1 %v4791_v19  ;;  %3697 = vmatpush3.bf16.msra.mxu0 %v3900_v15  ;;  %v1679_v19 = vor.u32 %v1678_v5, %v1674_v31  ;;  %v669_v15 = vmul.f32 %v4707_v59, %v633_v55  ;;  %v736_v53 = vmax.f32 %v706_v28, 0.0  ;;  %v737_v51 = vmax.f32 %v707_v3, 0.0  ;;  %v3912_v5 = vld [vmem:[%s5233_s2 + $0x230] sm:$0xff]   ;;  %v4942_v55 = vld [vmem:[#allocation2 + $0x64] sm:$0xf] }
  0x91   : > { %2708 = vmatprep.mubr.bf16.mxu1 %v1672_v20  ;;  %3698 = vmatprep.subr.bf16.mxu0 %v4867_v12  ;;  %v672_v3 = vmul.f32 %v4707_v59, %v636_v32  ;;  %v4949_v22 = vsel %vm1288_vm0, %v1753_v23, %v1754_v8  ;;  %v1691_v61 = vor.u32 %v1690_v45, %v1686_v34  ;;  %v1451_v47 = vrot.slane %v1449_v37, 1 }
  0x92   : > { %3734 = vmatpush3.bf16.msra.mxu1 %v4867_v12  ;;  %v705_v31 = vadd.f32 %v4731_v14, %v669_v15  ;;  %v826_v20 = vsel %vm4914_vm14, %v736_v53, 0.0  ;;  %v827_v28 = vsel %vm4884_vm12, %v737_v51, 0.0  ;;  %v1051_v53 = vld [vmem:[#allocation2 + $0x48] sm:$0xe]  ;;  %v1684_v21 = vsel %vm1159_vm6, %v1679_v19, %v1683_v49  ;;  %v3916_v49 = vld [vmem:[%s5233_s2 + $0x238] sm:$0xff]  }
  0x93   : > { %2604 = vmatmul.mubr.bf16.gmra.mrb[40].mxu0 %v1428_v35  ;;  %3727 = vmatprep.subr.bf16.mxu1 %v3908_v11  ;;  %v1067_v35 = vld [vmem:[#allocation2 + $0x60] sm:$0xf]  ;;  %v3360_v38 = vpack.c.bf16 %v826_v20, %v826_v20  ;;  %v3361_v15 = vpack.c.bf16 %v827_v28, %v827_v28  ;;  %v1757_v51 = vrot.slane %v4776_v41, 1  ;;  %v1442_v20 = vshrl.u32 %v4629_v40, 16 }
  0x94   : > { %2611 = vmatprep.mubr.bf16.mxu0 %v1532_v62  ;;  %3699 = vmatpush3.bf16.msra.mxu0 %v4867_v12  ;;  %v3245_v62 = vcombine.low %v1080_v54, %v4764_v42  ;;  %v735_v12 = vmax.f32 %v705_v31, 0.0  ;;  %v4957_v59 = vcombine.low %v1067_v35, %v4942_v55  ;;  %v708_v54 = vadd.f32 %v4731_v14, %v672_v3 }
  0x95   : > { %3700 = vmatprep.subr.bf16.mxu0 %v3908_v11  ;;  %986 = vst [vmem:[#allocation2 + $0x6c] sm:$0xf] %v3360_v38  ;;  %987 = vst [vmem:[#allocation2 + $0x70] sm:$0xf] %v3361_v15  ;;  %v5287_v41 = vshll.u32 %v4629_v40, 16  ;;  %v3225_v31 = vcombine.low %v1051_v53, %v4671_v17  ;;  %v1454_v3 = vshrl.u32 %v4680_v57, 16 }
  0x96   : > { %3735 = vmatpush3.bf16.msra.mxu1 %v3908_v11  ;;  %v1756_v46 = vrot.slane %v3245_v62, 1  ;;  %v825_v42 = vsel %vm4938_vm5, %v735_v12, 0.0  ;;  %v3907_v40 = vld [vmem:[#allocation2 + $0x50] ss:$0 sps:$4 sm:$0x11]   ;;  %v738_v32 = vmax.f32 %v708_v54, 0.0 }
  0x97   : > { %3728 = vmatprep.subr.bf16.mxu1 %v3912_v5  ;;  %v1446_v19 = vrot.slane %v5287_v41, 1  ;;  %v3359_v8 = vpack.c.bf16 %v825_v42, %v825_v42  ;;  %v1700_v39 = vshll.u32 %v4957_v59, 16  ;;  %v1052_v17 = vld [vmem:[#allocation2 + $0x54] sm:$0xe]  ;;  %v1537_v35 = vrot.slane %v3907_v40, 1 }
  0x98   : > { %2709 = vmatmul.mubr.bf16.gmra.mrb[44].mxu1 %v4816_v9  ;;  %3701 = vmatpush3.bf16.msra.mxu0 %v3908_v11  ;;  %v4972_v14 = vsel %vm1288_vm0, %v1756_v46, %v1757_v51  ;;  %v1535_v9 = vsel %vm1288_vm0, %v4896_v43, %v1534_v30  ;;  %v1695_v11 = vrot.slane %v1693_v0, 1  ;;  %v828_v27 = vsel %vm574_vm13, %v738_v32, 0.0 }
  0x99   : > { %2716 = vmatprep.mubr.bf16.mxu1 %v1684_v21  ;;  %3702 = vmatprep.subr.bf16.mxu0 %v3912_v5  ;;  %985 = vst [vmem:[#allocation2 + $0x68] sm:$0x1] %v3359_v8  ;;  %v1456_v46 = vshll.u32 %v4680_v57, 16  ;;  %v1447_v23 = vor.u32 %v1446_v19, %v1442_v20  ;;  %v3362_v43 = vpack.c.bf16 %v828_v27, %v828_v27  ;;  %v1536_v30 = vrot.slane %v3225_v31, 1  ;;  %v1053_v8 = vld [vmem:[#allocation2 + $0x60] sm:$0xe] }
  0x9a   : > { %3736 = vmatpush3.bf16.msra.mxu1 %v3912_v5  ;;  %v1696_v0 = vsel %vm1159_vm6, %v1691_v61, %v1695_v11  ;;  %v3226_v28 = vcombine.low %v1052_v17, %v4702_v24  ;;  %v1698_v38 = vshrl.u32 %v4957_v59, 16  ;;  %v1702_v62 = vrot.slane %v1700_v39, 1  ;;  %v3911_v21 = vld [vmem:[#allocation2 + $0x5c] ss:$0 sps:$4 sm:$0x11]  }
  0x9b   : > { %2612 = vmatmul.mubr.bf16.gmra.mrb[44].mxu0 %v4905_v7  ;;  %3729 = vmatprep.subr.bf16.mxu1 %v3916_v49  ;;  %988 = vst [vmem:[#allocation2 + $0x74] sm:$0x1] %v3362_v43  ;;  %v1458_v15 = vrot.slane %v1456_v46, 1  ;;  %v1461_v53 = vshll.u32 %v3907_v40, 16  ;;  %v1538_v45 = vsel %vm1288_vm0, %v1536_v30, %v1537_v35  ;;  %v1468_v20 = vshll.u32 %v4712_v1, 16 }
  0x9c   : > { %2619 = vmatprep.mubr.bf16.mxu0 %v1535_v9  ;;  %3703 = vmatpush3.bf16.msra.mxu0 %v3912_v5  ;;  %v1069_v34 = vld [vmem:[#allocation2 + $0x6c] sm:$0xf]  ;;  %v4981_v7 = vld [vmem:[#allocation2 + $0x70] sm:$0xf]  ;;  %v1452_v5 = vsel %vm1159_vm6, %v1447_v23, %v1451_v47  ;;  %v1703_v42 = vor.u32 %v1702_v62, %v1698_v38  ;;  %v1539_v41 = vrot.slane %v3226_v28, 1  ;;  %v1540_v19 = vrot.slane %v3911_v21, 1 }
  0x9d   : > { %3704 = vmatprep.subr.bf16.mxu0 %v3916_v49  ;;  %v4986_v12 = vcombine.low %v1069_v34, %v4981_v7  ;;  %v1459_v54 = vor.u32 %v1458_v15, %v1454_v3  ;;  %v1463_v57 = vrot.slane %v1461_v53, 1  ;;  %v1466_v11 = vshrl.u32 %v4712_v1, 16  ;;  %v1083_v30 = vld [vmem:[#allocation2 + $0x48] sm:$0xe] }
  0x9e   : > { %3737 = vmatpush3.bf16.msra.mxu1 %v3916_v49  ;;  %v1470_v39 = vrot.slane %v1468_v20, 1  ;;  %v1473_v27 = vshll.u32 %v3911_v21, 16  ;;  %v3227_v46 = vcombine.low %v1053_v8, %v4779_v26  ;;  %v1541_v17 = vsel %vm1288_vm0, %v1539_v41, %v1540_v19  ;;  %v1086_v8 = vld [vmem:[#allocation2 + $0x6c] sm:$0xe] }
  0x9f   : > { %v1712_v51 = vshll.u32 %v4986_v12, 16  ;;  %v1710_v31 = vshrl.u32 %v4986_v12, 16  ;;  %v1464_v61 = vsel %vm1159_vm6, %v1459_v54, %v1463_v57  ;;  %v1480_v35 = vshll.u32 %v4784_v18, 16 }
  0xa0   : > { %2717 = vmatmul.mubr.bf16.gmra.mrb[48].mxu1 %v4845_v63  ;;  %3705 = vmatpush3.bf16.msra.mxu0 %v3916_v49  ;;  %v4992_v24 = vld [vmem:[#allocation2 + $0x68] ss:$0 sps:$4 sm:$0x11]   ;;  %v1475_v34 = vrot.slane %v1473_v27, 1  ;;  %v3248_v38 = vcombine.low %v1083_v30, %v4834_v16  ;;  %v1478_v62 = vshrl.u32 %v4784_v18, 16  ;;  %v1766_v21 = vrot.slane %v4858_v2, 1 }
  0xa1   : > { %2724 = vmatprep.mubr.bf16.mxu1 %v1696_v0  ;;  %v1705_v63 = vshll.u32 %v4992_v24, 16  ;;  %v1714_v9 = vrot.slane %v1712_v51, 1  ;;  %v3915_v23 = vld [vmem:[#allocation2 + $0x68] ss:$0 sps:$4 sm:$0x11]   ;;  %v1542_v0 = vrot.slane %v3227_v46, 1 }
  0xa2   : > { %v4997_v49 = vld [vmem:[#allocation2 + $0x74] ss:$0 sps:$4 sm:$0x11]   ;;  %v1543_v28 = vrot.slane %v3915_v23, 1  ;;  %v1485_v3 = vshll.u32 %v3915_v23, 16  ;;  %v1765_v53 = vrot.slane %v3248_v38, 1 }
  0xa3   : > { %2620 = vmatmul.mubr.bf16.gmra.mrb[48].mxu0 %v1452_v5  ;;  %v1707_v37 = vrot.slane %v1705_v63, 1  ;;  %v1717_v32 = vshll.u32 %v4997_v49, 16  ;;  %v1715_v47 = vor.u32 %v1714_v9, %v1710_v31  ;;  %v1482_v5 = vrot.slane %v1480_v35, 1  ;;  %v1085_v51 = vld [vmem:[#allocation2 + $0x60] sm:$0xe] }
  0xa4   : > { %2627 = vmatprep.mubr.bf16.mxu0 %v1538_v45  ;;  %v1544_v15 = vsel %vm1288_vm0, %v1542_v0, %v1543_v28  ;;  %v1084_v45 = vld [vmem:[#allocation2 + $0x54] sm:$0xe]  ;;  %v1487_v16 = vrot.slane %v1485_v3, 1  ;;  %v3250_v18 = vcombine.low %v1085_v51, %v4942_v55  ;;  %v1081_v63 = vld [vmem:[#allocation2 + $0x30] sm:$0xe]  ;;  %v1769_v2 = vrot.slane %v4908_v44, 1 }
  0xa5   : > { %v1708_v40 = vsel %vm1159_vm6, %v1703_v42, %v1707_v37  ;;  %v1719_v43 = vrot.slane %v1717_v32, 1  ;;  %v1483_v20 = vor.u32 %v1482_v5, %v1478_v62  ;;  %v1767_v42 = vsel %vm1288_vm0, %v1765_v53, %v1766_v21  ;;  %v1082_v9 = vld [vmem:[#allocation2 + $0x3c] sm:$0xe] }
  0xa6   : > { %v3246_v41 = vcombine.low %v1081_v63, %v4781_v25  ;;  %v1771_v19 = vrot.slane %v3250_v18, 1  ;;  %v1772_v37 = vrot.slane %v4992_v24, 1  ;;  %v3251_v55 = vcombine.low %v1086_v8, %v4981_v7 }
  0xa7   : > { %v1720_v1 = vsel %vm1159_vm6, %v1715_v47, %v1719_v43  ;;  %v1488_v54 = vsel %vm1159_vm6, %v1483_v20, %v1487_v16  ;;  %v1760_v31 = vrot.slane %v4798_v52, 1  ;;  %v3247_v25 = vcombine.low %v1082_v9, %v4802_v60 }
  0xa8   : > { %2725 = vmatmul.mubr.bf16.gmra.mrb[52].mxu1 %v4892_v36  ;;  %v1471_v36 = vor.u32 %v1470_v39, %v1466_v11  ;;  %v1774_v44 = vrot.slane %v3251_v55, 1  ;;  %v1775_v24 = vrot.slane %v4997_v49, 1  ;;  %v1763_v7 = vrot.slane %v4830_v10, 1 }
  0xa9   : > { %2732 = vmatprep.mubr.bf16.mxu1 %v1708_v40  ;;  %v1773_v40 = vsel %vm1288_vm0, %v1771_v19, %v1772_v37 }
  0xaa   : > { %v1476_v26 = vsel %vm1159_vm6, %v1471_v36, %v1475_v34  ;;  %v1776_v52 = vsel %vm1288_vm0, %v1774_v44, %v1775_v24  ;;  %vm2847_vm6 = vcmp.lt.s32.totalorder %v4148_v33, 16 }
  0xab   : > { %2628 = vmatmul.mubr.bf16.gmra.mrb[52].mxu0 %v1464_v61 }
  0xac   : > { %2635 = vmatprep.mubr.bf16.mxu0 %v1541_v17 }
  0xb0   : > { %2733 = vmatmul.mubr.bf16.gmra.mrb[56].mxu1 %v4957_v59  ;;  %v3249_v59 = vcombine.low %v1084_v45, %v4872_v58 }
  0xb1   : > { %2740 = vmatprep.mubr.bf16.mxu1 %v1720_v1 }
  0xb2   : > { %v1768_v57 = vrot.slane %v3249_v59, 1 }
  0xb3   : > { %2636 = vmatmul.mubr.bf16.gmra.mrb[56].mxu0 %v1476_v26 }
  0xb4   : > { %2643 = vmatprep.mubr.bf16.mxu0 %v1544_v15  ;;  %v1770_v58 = vsel %vm1288_vm0, %v1768_v57, %v1769_v2 }
  0xb8   : > { %2741 = vmatmul.mubr.bf16.gmra.mrb[60].mxu1 %v4986_v12  ;;  %v1759_v12 = vrot.slane %v3246_v41, 1 }
  0xb9   : > { %3714 = vmatprep.mubr.bf16.mxu1 %v1767_v42 }
  0xba   : > { %v1761_v32 = vsel %vm1288_vm0, %v1759_v12, %v1760_v31 }
  0xbb   : > { %2644 = vmatmul.mubr.bf16.gmra.mrb[60].mxu0 %v1488_v54 }
  0xbc   : > { %3706 = vmatprep.mubr.bf16.mxu0 %v4949_v22  ;;  %v1762_v22 = vrot.slane %v3247_v25, 1 }
  0xbe   : > { %v1764_v61 = vsel %vm1288_vm0, %v1762_v22, %v1763_v7  ;;  %vm2850_vm0 = vcmp.lt.s32.totalorder %v4269_v48, 16 }
  0xc0   : > { %3715 = vmatmul.mubr.bf16.vlgmr.msra.gmra.mrb[64].mxu1 %v1770_v58 }
  0xc1   : > { %3718 = vmatprep.mubr.bf16.mxu1 %v1773_v40 }
  0xc3   : > { %3707 = vmatmul.mubr.bf16.vlgmr.msra.gmra.mrb[64].mxu0 %v4972_v14 }
  0xc4   : > { %3710 = vmatprep.mubr.bf16.mxu0 %v1761_v32 }
  0xc8   : > { %3719 = vmatmul.mubr.bf16.gmra.mrb[68].mxu1 %v1776_v52 }
  0xcb   : > { %3711 = vmatmul.mubr.bf16.gmra.mrb[68].mxu0 %v1764_v61 }
 0x10e   : > { %v3498_v11 = vpop.f32.mrb[0].mxu1 }
 0x10f   : > { %v3499_v60 = vpop.f32.mrb[1].mxu1 }
 0x110   : > { %v3500_v39 = vadd.f32 %v3499_v60, %v3498_v11  ;;  %v3501_v27 = vpop.f32.mrb[2].mxu1 }
 0x111   : > { %v3502_v46 = vpop.f32.mrb[3].mxu1 }
 0x112   : > { %v3503_v17 = vadd.f32 %v3502_v46, %v3501_v27 }
 0x113   : > { %v3434_v49 = vpop.f32.mrb[0].mxu0 }
 0x114   : > { %v3435_v23 = vpop.f32.mrb[1].mxu0 }
 0x115   : > { %v3436_v47 = vadd.f32 %v3435_v23, %v3434_v49  ;;  %v3437_v14 = vpop.f32.mrb[2].mxu0 }
 0x116   : > { %v3438_v43 = vpop.f32.mrb[3].mxu0  ;;  %v3504_v35 = vpop.f32.mrb[4].mxu1 }
 0x117   : > { %v5035_v30 = vadd.f32 %v3500_v39, %v3436_v47  ;;  %v3439_v10 = vadd.f32 %v3438_v43, %v3437_v14  ;;  %v3505_v36 = vpop.f32.mrb[5].mxu1 }
 0x118   : > { %v3506_v0 = vadd.f32 %v3505_v36, %v3504_v35  ;;  %v3507_v28 = vpop.f32.mrb[6].mxu1 }
 0x119   : > { %v5037_v34 = vadd.f32 %v3503_v17, %v3439_v10  ;;  %v3508_v1 = vpop.f32.mrb[7].mxu1 }
 0x11a   : > { %v3509_v26 = vadd.f32 %v3508_v1, %v3507_v28 }
 0x11b   : > { %v3440_v38 = vpop.f32.mrb[4].mxu0 }
 0x11c   : > { %v3441_v62 = vpop.f32.mrb[5].mxu0 }
 0x11d   : > { %v3442_v5 = vadd.f32 %v3441_v62, %v3440_v38  ;;  %v3443_v3 = vpop.f32.mrb[6].mxu0 }
 0x11e   : > { %v3444_v15 = vpop.f32.mrb[7].mxu0  ;;  %v3510_v45 = vpop.f32.mrb[8].mxu1 }
 0x11f   : > { %v5039_v53 = vadd.f32 %v3506_v0, %v3442_v5  ;;  %v3445_v21 = vadd.f32 %v3444_v15, %v3443_v3  ;;  %v3511_v51 = vpop.f32.mrb[9].mxu1 }
 0x120   : > { %v3512_v16 = vadd.f32 %v3511_v51, %v3510_v45  ;;  %v3513_v59 = vpop.f32.mrb[10].mxu1 }
 0x121   : > { %v5041_v20 = vadd.f32 %v3509_v26, %v3445_v21  ;;  %v3514_v42 = vpop.f32.mrb[11].mxu1 }
 0x122   : > { %v3515_v63 = vadd.f32 %v3514_v42, %v3513_v59 }
 0x123   : > { %v3446_v18 = vpop.f32.mrb[8].mxu0 }
 0x124   : > { %v3447_v54 = vpop.f32.mrb[9].mxu0 }
 0x125   : > { %v3448_v57 = vadd.f32 %v3447_v54, %v3446_v18  ;;  %v3449_v2 = vpop.f32.mrb[10].mxu0 }
 0x126   : > { %v3450_v41 = vpop.f32.mrb[11].mxu0  ;;  %v3516_v58 = vpop.f32.mrb[12].mxu1 }
 0x127   : > { %v5043_v19 = vadd.f32 %v3512_v16, %v3448_v57  ;;  %v3451_v37 = vadd.f32 %v3450_v41, %v3449_v2  ;;  %v3517_v55 = vpop.f32.mrb[13].mxu1 }
 0x128   : > { %v3518_v12 = vadd.f32 %v3517_v55, %v3516_v58  ;;  %v3519_v31 = vpop.f32.mrb[14].mxu1 }
 0x129   : > { %v5045_v8 = vadd.f32 %v3515_v63, %v3451_v37  ;;  %v3520_v40 = vpop.f32.mrb[15].mxu1 }
 0x12a   : > { %v3521_v44 = vadd.f32 %v3520_v40, %v3519_v31 }
 0x12b   : > { %v3452_v9 = vpop.f32.mrb[12].mxu0 }
 0x12c   : > { %v3453_v25 = vpop.f32.mrb[13].mxu0 }
 0x12d   : > { %v3454_v24 = vadd.f32 %v3453_v25, %v3452_v9  ;;  %v3455_v32 = vpop.f32.mrb[14].mxu0 }
 0x12e   : > { %v3456_v22 = vpop.f32.mrb[15].mxu0  ;;  %v3522_v61 = vpop.f32.mrb[16].mxu1 }
 0x12f   : > { %v5047_v7 = vadd.f32 %v3518_v12, %v3454_v24  ;;  %v3457_v52 = vadd.f32 %v3456_v22, %v3455_v32  ;;  %v3523_v60 = vpop.f32.mrb[17].mxu1 }
 0x130   : > { %v3524_v39 = vadd.f32 %v3523_v60, %v3522_v61  ;;  %v3525_v27 = vpop.f32.mrb[18].mxu1 }
 0x131   : > { %v5049_v11 = vadd.f32 %v3521_v44, %v3457_v52  ;;  %v3526_v49 = vpop.f32.mrb[19].mxu1 }
 0x132   : > { %v3527_v23 = vadd.f32 %v3526_v49, %v3525_v27 }
 0x133   : > { %v3458_v46 = vpop.f32.mrb[16].mxu0 }
 0x134   : > { %v3459_v17 = vpop.f32.mrb[17].mxu0 }
 0x135   : > { %v3460_v47 = vadd.f32 %v3459_v17, %v3458_v46  ;;  %v3461_v14 = vpop.f32.mrb[18].mxu0 }
 0x136   : > { %v3462_v43 = vpop.f32.mrb[19].mxu0  ;;  %v3528_v36 = vpop.f32.mrb[20].mxu1 }
 0x137   : > { %v5051_v10 = vadd.f32 %v3524_v39, %v3460_v47  ;;  %v3463_v35 = vadd.f32 %v3462_v43, %v3461_v14  ;;  %v3529_v28 = vpop.f32.mrb[21].mxu1 }
 0x138   : > { %v3530_v1 = vadd.f32 %v3529_v28, %v3528_v36  ;;  %v3531_v38 = vpop.f32.mrb[22].mxu1 }
 0x139   : > { %v5053_v0 = vadd.f32 %v3527_v23, %v3463_v35  ;;  %v3532_v62 = vpop.f32.mrb[23].mxu1 }
 0x13a   : > { %v3533_v3 = vadd.f32 %v3532_v62, %v3531_v38 }
 0x13b   : > { %v3464_v26 = vpop.f32.mrb[20].mxu0 }
 0x13c   : > { %v3465_v5 = vpop.f32.mrb[21].mxu0 }
 0x13d   : > { %v3466_v15 = vadd.f32 %v3465_v5, %v3464_v26  ;;  %v3467_v21 = vpop.f32.mrb[22].mxu0 }
 0x13e   : > { %v3468_v45 = vpop.f32.mrb[23].mxu0 }
 0x13f   : > { %v5055_v51 = vadd.f32 %v3530_v1, %v3466_v15  ;;  %v3469_v16 = vadd.f32 %v3468_v45, %v3467_v21  ;;  %v3534_v42 = vpop.f32.mrb[24].mxu1 }
 0x140   : > { %v3535_v18 = vpop.f32.mrb[25].mxu1 }
 0x141   : > { %v5057_v59 = vadd.f32 %v3533_v3, %v3469_v16  ;;  %v3536_v63 = vadd.f32 %v3535_v18, %v3534_v42  ;;  %v3537_v54 = vpop.f32.mrb[26].mxu1 }
 0x142   : > { %v3538_v2 = vpop.f32.mrb[27].mxu1 }
 0x143   : > { %v3470_v57 = vpop.f32.mrb[24].mxu0  ;;  %v3539_v37 = vadd.f32 %v3538_v2, %v3537_v54 }
 0x144   : > { %v3471_v41 = vpop.f32.mrb[25].mxu0 }
 0x145   : > { %v3472_v58 = vadd.f32 %v3471_v41, %v3470_v57  ;;  %v3473_v55 = vpop.f32.mrb[26].mxu0 }
 0x146   : > { %v3474_v12 = vpop.f32.mrb[27].mxu0 }
 0x147   : > { %v5059_v31 = vadd.f32 %v3536_v63, %v3472_v58  ;;  %v3475_v9 = vadd.f32 %v3474_v12, %v3473_v55 }
 0x149   : > { %v5061_v40 = vadd.f32 %v3539_v37, %v3475_v9 }
 0x14b   : > { %v3540_v25 = vpop.f32.mrb[28].mxu1 }
 0x14c   : > { %v3541_v44 = vpop.f32.mrb[29].mxu1 }
 0x14d   : > { %v3542_v24 = vadd.f32 %v3541_v44, %v3540_v25  ;;  %v3543_v32 = vpop.f32.mrb[30].mxu1 }
 0x14e   : > { %v3476_v22 = vpop.f32.mrb[28].mxu0  ;;  %v3544_v52 = vpop.f32.mrb[31].mxu1 }
 0x14f   : > { %v3477_v61 = vpop.f32.mrb[29].mxu0  ;;  %v3545_v60 = vadd.f32 %v3544_v52, %v3543_v32 }
 0x150   : > { %v3478_v39 = vadd.f32 %v3477_v61, %v3476_v22  ;;  %v3479_v27 = vpop.f32.mrb[30].mxu0 }
 0x151   : > { %v3480_v46 = vpop.f32.mrb[31].mxu0 }
 0x152   : > { %v5063_v49 = vadd.f32 %v3542_v24, %v3478_v39  ;;  %v3481_v17 = vadd.f32 %v3480_v46, %v3479_v27 }
 0x153   : > { %v3626_v23 = vpop.f32.mrb[32].mxu1 }
 0x154   : > { %v5065_v47 = vadd.f32 %v3545_v60, %v3481_v17  ;;  %v3627_v14 = vpop.f32.mrb[33].mxu1 }
 0x155   : > { %v3628_v43 = vadd.f32 %v3627_v14, %v3626_v23  ;;  %v3629_v35 = vpop.f32.mrb[34].mxu1 }
 0x156   : > { %v3562_v36 = vpop.f32.mrb[32].mxu0  ;;  %v3630_v28 = vpop.f32.mrb[35].mxu1 }
 0x157   : > { %v3563_v1 = vpop.f32.mrb[33].mxu0  ;;  %v3631_v38 = vadd.f32 %v3630_v28, %v3629_v35 }
 0x158   : > { %v3564_v26 = vadd.f32 %v3563_v1, %v3562_v36  ;;  %v3565_v62 = vpop.f32.mrb[34].mxu0 }
 0x159   : > { %v3566_v5 = vpop.f32.mrb[35].mxu0 }
 0x15a   : > { %v2590_v3 = vadd.f32 %v3564_v26, %v5035_v30  ;;  %v3567_v15 = vadd.f32 %v3566_v5, %v3565_v62 }
 0x15b   : > { %v3632_v21 = vpop.f32.mrb[36].mxu1 }
 0x15c   : > { %v2593_v45 = vadd.f32 %v3567_v15, %v5037_v34  ;;  %v3633_v16 = vpop.f32.mrb[37].mxu1  ;;  %v5069_v42 = vadd.f32 %v3628_v43, %v2590_v3 }
 0x15d   : > { %v3634_v18 = vadd.f32 %v3633_v16, %v3632_v21  ;;  %v3635_v63 = vpop.f32.mrb[38].mxu1 }
 0x15e   : > { %v3568_v54 = vpop.f32.mrb[36].mxu0  ;;  %v3636_v57 = vpop.f32.mrb[39].mxu1  ;;  %v5071_v2 = vadd.f32 %v3631_v38, %v2593_v45 }
 0x15f   : > { %v3569_v41 = vpop.f32.mrb[37].mxu0  ;;  %v3637_v37 = vadd.f32 %v3636_v57, %v3635_v63 }
 0x160   : > { %v3570_v58 = vadd.f32 %v3569_v41, %v3568_v54  ;;  %v3571_v55 = vpop.f32.mrb[38].mxu0 }
 0x161   : > { %v3572_v12 = vpop.f32.mrb[39].mxu0 }
 0x162   : > { %v2598_v30 = vadd.f32 %v3570_v58, %v5039_v53  ;;  %v3573_v9 = vadd.f32 %v3572_v12, %v3571_v55 }
 0x163   : > { %v3638_v25 = vpop.f32.mrb[40].mxu1 }
 0x164   : > { %v2601_v34 = vadd.f32 %v3573_v9, %v5041_v20  ;;  %v3639_v44 = vpop.f32.mrb[41].mxu1  ;;  %v5075_v24 = vadd.f32 %v3634_v18, %v2598_v30 }
 0x165   : > { %v3640_v32 = vadd.f32 %v3639_v44, %v3638_v25  ;;  %v3641_v22 = vpop.f32.mrb[42].mxu1 }
 0x166   : > { %v3574_v52 = vpop.f32.mrb[40].mxu0  ;;  %v3642_v61 = vpop.f32.mrb[43].mxu1  ;;  %v5077_v60 = vadd.f32 %v3637_v37, %v2601_v34 }
 0x167   : > { %v3575_v39 = vpop.f32.mrb[41].mxu0  ;;  %v3643_v27 = vadd.f32 %v3642_v61, %v3641_v22 }
 0x168   : > { %v3576_v46 = vadd.f32 %v3575_v39, %v3574_v52  ;;  %v3577_v17 = vpop.f32.mrb[42].mxu0 }
 0x169   : > { %v3578_v23 = vpop.f32.mrb[43].mxu0 }
 0x16a   : > { %v2606_v53 = vadd.f32 %v3576_v46, %v5043_v19  ;;  %v3579_v14 = vadd.f32 %v3578_v23, %v3577_v17 }
 0x16b   : > { %v3644_v43 = vpop.f32.mrb[44].mxu1 }
 0x16c   : > { %v2609_v20 = vadd.f32 %v3579_v14, %v5045_v8  ;;  %v3645_v35 = vpop.f32.mrb[45].mxu1  ;;  %v5081_v36 = vadd.f32 %v3640_v32, %v2606_v53 }
 0x16d   : > { %v3646_v28 = vadd.f32 %v3645_v35, %v3644_v43  ;;  %v3647_v1 = vpop.f32.mrb[46].mxu1 }
 0x16e   : > { %v3580_v38 = vpop.f32.mrb[44].mxu0  ;;  %v3648_v26 = vpop.f32.mrb[47].mxu1  ;;  %v5083_v62 = vadd.f32 %v3643_v27, %v2609_v20 }
 0x16f   : > { %v3581_v5 = vpop.f32.mrb[45].mxu0  ;;  %v3649_v3 = vadd.f32 %v3648_v26, %v3647_v1 }
 0x170   : > { %v3582_v15 = vadd.f32 %v3581_v5, %v3580_v38  ;;  %v3583_v21 = vpop.f32.mrb[46].mxu0 }
 0x171   : > { %v3584_v45 = vpop.f32.mrb[47].mxu0 }
 0x172   : > { %v2614_v19 = vadd.f32 %v3582_v15, %v5047_v7  ;;  %v3585_v16 = vadd.f32 %v3584_v45, %v3583_v21 }
 0x173   : > { %v3650_v18 = vpop.f32.mrb[48].mxu1 }
 0x174   : > { %v2617_v8 = vadd.f32 %v3585_v16, %v5049_v11  ;;  %v3651_v63 = vpop.f32.mrb[49].mxu1  ;;  %v5087_v54 = vadd.f32 %v3646_v28, %v2614_v19 }
 0x175   : > { %v3652_v57 = vadd.f32 %v3651_v63, %v3650_v18  ;;  %v3653_v41 = vpop.f32.mrb[50].mxu1 }
 0x176   : > { %v3586_v37 = vpop.f32.mrb[48].mxu0  ;;  %v3654_v58 = vpop.f32.mrb[51].mxu1  ;;  %v5089_v55 = vadd.f32 %v3649_v3, %v2617_v8 }
 0x177   : > { %v3587_v12 = vpop.f32.mrb[49].mxu0  ;;  %v3655_v30 = vadd.f32 %v3654_v58, %v3653_v41 }
 0x178   : > { %v3588_v9 = vadd.f32 %v3587_v12, %v3586_v37  ;;  %v3589_v25 = vpop.f32.mrb[50].mxu0 }
 0x179   : > { %v3590_v34 = vpop.f32.mrb[51].mxu0 }
 0x17a   : > { %v2622_v7 = vadd.f32 %v3588_v9, %v5051_v10  ;;  %v3591_v44 = vadd.f32 %v3590_v34, %v3589_v25 }
 0x17b   : > { %v3656_v32 = vpop.f32.mrb[52].mxu1 }
 0x17c   : > { %v2625_v11 = vadd.f32 %v3591_v44, %v5053_v0  ;;  %v3657_v22 = vpop.f32.mrb[53].mxu1  ;;  %v2719_v52 = vadd.f32 %v3652_v57, %v2622_v7 }
 0x17d   : > { %v3658_v61 = vadd.f32 %v3657_v22, %v3656_v32  ;;  %v3659_v39 = vpop.f32.mrb[54].mxu1 }
 0x17e   : > { %v3592_v27 = vpop.f32.mrb[52].mxu0  ;;  %v3660_v46 = vpop.f32.mrb[55].mxu1  ;;  %v5093_v17 = vadd.f32 %v3655_v30, %v2625_v11 }
 0x17f   : > { %v3593_v23 = vpop.f32.mrb[53].mxu0  ;;  %v3661_v53 = vadd.f32 %v3660_v46, %v3659_v39 }
 0x180   : > { %v3594_v14 = vadd.f32 %v3593_v23, %v3592_v27  ;;  %v3595_v43 = vpop.f32.mrb[54].mxu0 }
 0x181   : > { %v3596_v20 = vpop.f32.mrb[55].mxu0 }
 0x182   : > { %v2630_v10 = vadd.f32 %v3594_v14, %v5055_v51  ;;  %v3597_v35 = vadd.f32 %v3596_v20, %v3595_v43 }
 0x183   : > { %v3662_v28 = vpop.f32.mrb[56].mxu1 }
 0x184   : > { %v2633_v0 = vadd.f32 %v3597_v35, %v5057_v59  ;;  %v3663_v1 = vpop.f32.mrb[57].mxu1  ;;  %v2727_v38 = vadd.f32 %v3658_v61, %v2630_v10 }
 0x185   : > { %v3664_v26 = vadd.f32 %v3663_v1, %v3662_v28  ;;  %v3665_v5 = vpop.f32.mrb[58].mxu1 }
 0x186   : > { %v3598_v3 = vpop.f32.mrb[56].mxu0  ;;  %v3666_v15 = vpop.f32.mrb[59].mxu1  ;;  %v2730_v21 = vadd.f32 %v3661_v53, %v2633_v0 }
 0x187   : > { %v3599_v45 = vpop.f32.mrb[57].mxu0  ;;  %v3667_v19 = vadd.f32 %v3666_v15, %v3665_v5 }
 0x188   : > { %v3600_v16 = vadd.f32 %v3599_v45, %v3598_v3  ;;  %v3601_v18 = vpop.f32.mrb[58].mxu0 }
 0x189   : > { %v3602_v8 = vpop.f32.mrb[59].mxu0 }
 0x18a   : > { %v2638_v51 = vadd.f32 %v3600_v16, %v5059_v31  ;;  %v3603_v63 = vadd.f32 %v3602_v8, %v3601_v18 }
 0x18b   : > { %v3668_v57 = vpop.f32.mrb[60].mxu1 }
 0x18c   : > { %v2641_v59 = vadd.f32 %v3603_v63, %v5061_v40  ;;  %v3669_v41 = vpop.f32.mrb[61].mxu1  ;;  %v5102_v37 = vadd.f32 %v3664_v26, %v2638_v51 }
 0x18d   : > { %v3670_v58 = vadd.f32 %v3669_v41, %v3668_v57  ;;  %v3671_v12 = vpop.f32.mrb[62].mxu1 }
 0x18e   : > { %v3604_v30 = vpop.f32.mrb[60].mxu0  ;;  %v3672_v9 = vpop.f32.mrb[63].mxu1  ;;  %v5104_v25 = vadd.f32 %v3667_v19, %v2641_v59 }
 0x18f   : > { %v3605_v34 = vpop.f32.mrb[61].mxu0  ;;  %v3673_v7 = vadd.f32 %v3672_v9, %v3671_v12 }
 0x190   : > { %v3606_v44 = vadd.f32 %v3605_v34, %v3604_v30  ;;  %v3607_v31 = vpop.f32.mrb[62].mxu0 }
 0x191   : > { %v3608_v32 = vpop.f32.mrb[63].mxu0 }
 0x192   : > { %v2646_v11 = vadd.f32 %v3606_v44, %v5063_v49  ;;  %v3609_v22 = vadd.f32 %v3608_v32, %v3607_v31 }
 0x193   : > { %v3716_v40 = vpop.f32.mrb[64].mxu1 }
 0x194   : > { %v2649_v61 = vadd.f32 %v3609_v22, %v5065_v47  ;;  %v2824_v39 = vadd.f32 %v3716_v40, %v2727_v38  ;;  %v2815_v27 = vpop.f32.mrb[65].mxu1  ;;  %v2743_v46 = vadd.f32 %v3670_v58, %v2646_v11 }
 0x195   : > { %v2816_v23 = vadd.f32 %v2815_v27, %v2719_v52  ;;  %v3717_v49 = vpop.f32.mrb[66].mxu1 }
 0x196   : > { %v5117_v53 = vsel %vm2851_vm7, %v2824_v39, 0.0  ;;  %v2827_v47 = vadd.f32 %v3717_v49, %v2730_v21  ;;  %v2818_v14 = vpop.f32.mrb[67].mxu1  ;;  %v3708_v43 = vpop.f32.mrb[64].mxu0  ;;  %v2746_v20 = vadd.f32 %v3673_v7, %v2649_v61 }
 0x197   : > { %2896 = vst [vmem:[%s5112_s17 + $0x50] sm:$0xff] %v5117_v53  ;;  %v5124_v10 = vsel %vm2850_vm0, %v2816_v23, 0.0  ;;  %v2819_v52 = vadd.f32 %v2818_v14, %v5093_v17  ;;  %v2792_v35 = vadd.f32 %v3708_v43, %v5075_v24  ;;  %v2783_v28 = vpop.f32.mrb[65].mxu0 }
 0x198   : > { %2894 = vst [vmem:[%s5112_s17 + $0x40] sm:$0xff] %v5124_v10  ;;  %v5133_v0 = vsel %vm2851_vm7, %v2827_v47, 0.0  ;;  %v2784_v1 = vadd.f32 %v2783_v28, %v5069_v42  ;;  %v3709_v38 = vpop.f32.mrb[66].mxu0 }
 0x199   : > { %2897 = vst [vmem:[%s5112_s17 + $0x58] sm:$0xff] %v5133_v0  ;;  %v5140_v17 = vsel %vm2850_vm0, %v2819_v52, 0.0  ;;  %v2872_v24 = vsel %vm2847_vm6, %v2792_v35, 0.0  ;;  %v2795_v26 = vadd.f32 %v3709_v38, %v5077_v60  ;;  %v2786_v5 = vpop.f32.mrb[67].mxu0 }
 0x19a   : > { %2895 = vst [vmem:[%s5112_s17 + $0x48] sm:$0xff] %v5140_v17  ;;  %2888 = vst [vmem:[%s5112_s17 + $0x10] sm:$0xff] %v2872_v24  ;;  %v2870_v56 = vsel %vm2846_vm15, %v2784_v1, 0.0  ;;  %v2787_v42 = vadd.f32 %v2786_v5, %v5071_v2  ;;  %v2926_v63 = vmul.f32 %v2872_v24, %v2872_v24  ;;  %v2933_v50 = vmul.f32 %v5140_v17, %v5140_v17 }
 0x19b   : > { %2886 = vst [vmem:[%s5112_s17] sm:$0xff] %v2870_v56  ;;  %v2873_v48 = vsel %vm2847_vm6, %v2795_v26, 0.0  ;;  %v3720_v3 = vpop.f32.mrb[68].mxu1  ;;  %v2924_v45 = vmul.f32 %v2870_v56, %v2870_v56  ;;  %v2934_v1 = vmul.f32 %v5117_v53, %v5117_v53  ;;  %v2935_v26 = vmul.f32 %v5133_v0, %v5133_v0 }
 0x19c   : > { %2889 = vst [vmem:[%s5112_s17 + $0x18] sm:$0xff] %v2873_v48  ;;  %v2871_v60 = vsel %vm2846_vm15, %v2787_v42, 0.0  ;;  %v2840_v15 = vadd.f32 %v3720_v3, %v2743_v46  ;;  %v2831_v21 = vpop.f32.mrb[69].mxu1  ;;  %v2927_v34 = vmul.f32 %v2873_v48, %v2873_v48 }
 0x19d   : > { %2887 = vst [vmem:[%s5112_s17 + $0x8] sm:$0xff] %v2871_v60  ;;  %v2902_v2 = vadd.f32 %v2871_v60, %v2870_v56  ;;  %v2925_v19 = vmul.f32 %v2871_v60, %v2871_v60  ;;  %v2832_v33 = vadd.f32 %v2831_v21, %v5102_v37  ;;  %v3721_v16 = vpop.f32.mrb[70].mxu1 }
 0x19e   : > { %v5163_v18 = vsel %vm2853_vm1, %v2840_v15, 0.0  ;;  %v2843_v8 = vadd.f32 %v3721_v16, %v2746_v20  ;;  %v2834_v29 = vpop.f32.mrb[71].mxu1  ;;  %v3712_v51 = vpop.f32.mrb[68].mxu0  ;;  %v2932_v20 = vmul.f32 %v5124_v10, %v5124_v10 }
 0x19f   : > { %v2903_v57 = vadd.f32 %v2902_v2, %v2872_v24  ;;  %v2940_v59 = vadd.f32 %v2925_v19, %v2924_v45  ;;  %2900 = vst [vmem:[%s5112_s17 + $0x70] sm:$0xff] %v5163_v18  ;;  %v2882_v41 = vsel %vm2852_vm2, %v2832_v33, 0.0  ;;  %v2799_v37 = vpop.f32.mrb[69].mxu0  ;;  %v2835_v12 = vadd.f32 %v2834_v29, %v5104_v25 }
 0x1a0   : > { %2898 = vst [vmem:[%s5112_s17 + $0x60] sm:$0xff] %v2882_v41  ;;  %v2885_v58 = vsel %vm2853_vm1, %v2843_v8, 0.0  ;;  %v2808_v30 = vadd.f32 %v3712_v51, %v5087_v54  ;;  %v3713_v9 = vpop.f32.mrb[70].mxu0  ;;  %v2800_v44 = vadd.f32 %v2799_v37, %v5081_v36  ;;  %v2936_v56 = vmul.f32 %v2882_v41, %v2882_v41 }
 0x1a1   : > { %v2941_v7 = vadd.f32 %v2940_v59, %v2926_v63  ;;  %2901 = vst [vmem:[%s5112_s17 + $0x78] sm:$0xff] %v2885_v58  ;;  %v2904_v31 = vadd.f32 %v2903_v57, %v2873_v48  ;;  %v2802_v13 = vpop.f32.mrb[71].mxu0  ;;  %v2883_v32 = vsel %vm2852_vm2, %v2835_v12, 0.0  ;;  %v2811_v54 = vadd.f32 %v3713_v9, %v5089_v55 }
 0x1a2   : > { %v2876_v25 = vsel %vm2849_vm3, %v2808_v30, 0.0  ;;  %v2803_v11 = vadd.f32 %v2802_v13, %v5083_v62  ;;  %2899 = vst [vmem:[%s5112_s17 + $0x68] sm:$0xff] %v2883_v32  ;;  %v2874_v22 = vsel %vm2848_vm4, %v2800_v44, 0.0  ;;  %v2937_v3 = vmul.f32 %v2883_v32, %v2883_v32 }
 0x1a3   : > { %2892 = vst [vmem:[%s5112_s17 + $0x30] sm:$0xff] %v2876_v25  ;;  %v2942_v36 = vadd.f32 %v2941_v7, %v2927_v34  ;;  %2890 = vst [vmem:[%s5112_s17 + $0x20] sm:$0xff] %v2874_v22  ;;  %v2905_v40 = vadd.f32 %v2904_v31, %v2874_v22  ;;  %v2928_v61 = vmul.f32 %v2874_v22, %v2874_v22  ;;  %v2877_v6 = vsel %vm2849_vm3, %v2811_v54, 0.0 }
 0x1a4   : > { %v2875_v39 = vsel %vm2848_vm4, %v2803_v11, 0.0  ;;  %2893 = vst [vmem:[%s5112_s17 + $0x38] sm:$0xff] %v2877_v6  ;;  %v2930_v46 = vmul.f32 %v2876_v25, %v2876_v25  ;;  %v2931_v47 = vmul.f32 %v2877_v6, %v2877_v6  ;;  %v2938_v15 = vmul.f32 %v5163_v18, %v5163_v18 }
 0x1a5   : > { %2891 = vst [vmem:[%s5112_s17 + $0x28] sm:$0xff] %v2875_v39  ;;  %v2929_v55 = vmul.f32 %v2875_v39, %v2875_v39  ;;  %v2943_v27 = vadd.f32 %v2942_v36, %v2928_v61  ;;  %v2906_v62 = vadd.f32 %v2905_v40, %v2875_v39  ;;  %v2939_v45 = vmul.f32 %v2885_v58, %v2885_v58 }
 0x1a7   : > { %v2907_v23 = vadd.f32 %v2906_v62, %v2876_v25  ;;  %v2944_v49 = vadd.f32 %v2943_v27, %v2929_v55 }
 0x1a9   : > { %v2908_v14 = vadd.f32 %v2907_v23, %v2877_v6  ;;  %v2945_v43 = vadd.f32 %v2944_v49, %v2930_v46 }
 0x1ab   : > { %v2909_v4 = vadd.f32 %v2908_v14, %v5124_v10  ;;  %v2946_v52 = vadd.f32 %v2945_v43, %v2931_v47 }
 0x1ad   : > { %v2910_v35 = vadd.f32 %v2909_v4, %v5140_v17  ;;  %v2947_v28 = vadd.f32 %v2946_v52, %v2932_v20 }
 0x1af   : > { %v2911_v38 = vadd.f32 %v2910_v35, %v5117_v53  ;;  %v2948_v24 = vadd.f32 %v2947_v28, %v2933_v50 }
 0x1b1   : > { %v2912_v10 = vadd.f32 %v2911_v38, %v5133_v0  ;;  %v2949_v5 = vadd.f32 %v2948_v24, %v2934_v1 }
 0x1b3   : > { %v2913_v42 = vadd.f32 %v2912_v10, %v2882_v41  ;;  %v2950_v48 = vadd.f32 %v2949_v5, %v2935_v26 }
 0x1b5   : > { %v2914_v17 = vadd.f32 %v2913_v42, %v2883_v32  ;;  %v2951_v60 = vadd.f32 %v2950_v48, %v2936_v56 }
 0x1b7   : > { %v2915_v53 = vadd.f32 %v2914_v17, %v5163_v18  ;;  %v2952_v21 = vadd.f32 %v2951_v60, %v2937_v3 }
 0x1b9   : > { %v2916_v2 = vadd.f32 %v2915_v53, %v2885_v58  ;;  %v2953_v19 = vadd.f32 %v2952_v21, %v2938_v15 }
 0x1bb   : > { %v2917_v0 = vrot.slane %v2916_v2, 4  ;;  %v2954_v33 = vadd.f32 %v2953_v19, %v2939_v45 }
 0x1bd   : > { %v2918_v16 = vadd.f32 %v2917_v0, %v2916_v2  ;;  %v2955_v8 = vrot.slane %v2954_v33, 4 }
 0x1bf   : > { %v2919_v29 = vrot.slane %v2918_v16, 2  ;;  %v2956_v51 = vadd.f32 %v2955_v8, %v2954_v33 }
 0x1c1   : > { %v2920_v63 = vadd.f32 %v2919_v29, %v2918_v16  ;;  %v2957_v57 = vrot.slane %v2956_v51, 2 }
 0x1c3   : > { %v2921_v59 = vrot.slane %v2920_v63, 1  ;;  %v2958_v41 = vadd.f32 %v2957_v57, %v2956_v51 }
 0x1c5   : > { %v2922_v18 = vadd.f32 %v2921_v59, %v2920_v63  ;;  %v2959_v37 = vrot.slane %v2958_v41, 1 }
 0x1c7   : > { %2923 = vst [vmem:[%s369_s19] sm:$0x1] %v2922_v18  ;;  %v2960_v58 = vadd.f32 %v2959_v37, %v2958_v41 }
 0x1c9   : > { %2961 = vst [vmem:[%s369_s19 + $0x1] sm:$0x1] %v2960_v58 }
 0x1ca PF: > { %s17_s25 = sadd.s32 1, %s3965_s25   ;;  %s5288_s21 = smov %s3957_s23 }
 0x1cb   : > { %p14_p10 = scmp.ge.s32.totalorder %s17_s25, 6   ;;  %s5289_s22 = smov %s3961_s24 }
 0x1cc   : > { %s5290_s23 = smov %s5293_s26  ;;  %s5291_s24 = smov %s5297_s27 }
 0x1cd   :  { %16 = sbr.rel (!%p14_p10) target bundleno = 3 (0x3), region = 88 }

// kernel: upblock_forward.5
= control target key start
LH: loop header
LB: loop body
LE: loop exit
PB: predicated region body
PF: predicated region fallthrough
CT: control target
= control target key end

     0   :  { %s5573_s21 = smov 0   ;;  %s5575_s22 = smov 0   ;;  %s6942_s0 = inlined_call_operand.vmem [shape: bf16[2,24,18,256], index: 0, kind: input, shape index: {}, may-alias: {0,1}]   ;;  %s6943_s1 = inlined_call_operand.vmem [shape: bf16[2,24,18,256], index: 1, kind: input, shape index: {}, may-alias: {0,1}]   ;;  %s6944_s2 = inlined_call_operand.vmem [shape: bf16[2304,128], index: 2, kind: input, shape index: {}]   ;;  %s6945_s3 = inlined_call_operand.vmem [shape: f32[1,256], index: 3, kind: input, shape index: {}]   ;;  %s6946_s4 = inlined_call_operand.vmem [shape: f32[1,256], index: 4, kind: input, shape index: {}]   ;;  %s6947_s5 = inlined_call_operand.vmem [shape: bf16[2,16,16,128], index: 5, kind: output, shape index: {0}]   ;;  %s6948_s6 = inlined_call_operand.vmem [shape: f32[2,2,2,128], index: 6, kind: output, shape index: {1}]  }
   0x1   :  { %s5577_s23 = smov 0   ;;  %s5579_s24 = smov 0  }
   0x2   :  { %s5581_s25 = smov 0  }
   0x3 LB: > { %s26_s3 = sadd.s32 1, %s5528_s23  ;;  %s29_s4 = sadd.s32 1, %s5532_s24  ;;  %s5536_s25 = sphi %s5581_s25, %s17_s25   ;;  %s5532_s24 = sphi %s5579_s24, %s6952_s24   ;;  %s5528_s23 = sphi %s5577_s23, %s6951_s23   ;;  %s5524_s22 = sphi %s5575_s22, %s6950_s22   ;;  %s5520_s21 = sphi %s5573_s21, %s6949_s21  }
   0x4   : > { %p27_p0 = scmp.ge.s32.totalorder %s26_s3, 2  ;;  %p4215_p1 = scmp.ge.s32.totalorder %s5536_s25, 1 }
   0x5   : > { %p265_p2 = scmp.lt.s32.totalorder %s5536_s25, 5 }
   0x6   : > { %s6954_s3 = smov (%p27_p0, %s26_s3), 0  ;;  %s6956_s4 = smov (!%p27_p0, %s29_s4), %s5532_s24 }
   0x7   : > { %p266_p3 = pnand %p4215_p1, %p265_p2  ;;  %p31_p4 = scmp.ge.s32.totalorder %s6956_s4, 2 }
   0x8   : > { %v5241_v0 = vld [vmem:[%s6944_s2 + $0x40] sm:$0xff] (!%p266_p3)   ;;  %s5609_s28 = sshll.u32 (!%p266_p3), %s5520_s21, 3  ;;  %p326_p5 = scmp.lt.s32.totalorder (!%p266_p3), %s5524_s22, 1  ;;  %v5243_v2 = vld [vmem:[%s6944_s2 + $0x48] sm:$0xff] (!%p266_p3)   ;;  %v5245_v4 = vld [vmem:[%s6944_s2 + $0x50] sm:$0xff] (!%p266_p3)   ;;  %vm899_vm0 = vcmask (!%p266_p3), 1046528  }
   0x9   : > { %s6958_s4 = smov (%p31_p4, %s6956_s4), 0  ;;  %269 = sbr.rel (%p266_p3) target bundleno = 563 (0x233), region = 40 }
   0xa   : > { %v5242_v1 = vld [vmem:[%s6944_s2] sm:$0xff] (!%p266_p3)   ;;  %4606 = vmatprep.subr.bf16.mxu0 (!%p266_p3), %v5241_v0  ;;  %5182 = vmatprep.subr.bf16.mxu1 (!%p266_p3), %v5241_v0  ;;  %p328_p6 = scmp.lt.s32.totalorder (!%p266_p3), %s5609_s28, 23  ;;  %v5244_v3 = vld [vmem:[%s6944_s2 + $0x8] sm:$0xff] (!%p266_p3)   ;;  %v5246_v5 = vld [vmem:[%s6944_s2 + $0x10] sm:$0xff] (!%p266_p3)   ;;  %vm650_vm1 = vsmask.f32 (!%p266_p3), 7424 }
   0xb   : > { %4607 = vmatpush3.bf16.msra.mxu0 (!%p266_p3), %v5242_v1  ;;  %5190 = vmatpush3.bf16.msra.mxu1 (!%p266_p3), %v5242_v1  ;;  %v5247_v6 = vld [vmem:[%s6944_s2 + $0x58] sm:$0xff] (!%p266_p3)   ;;  %v5249_v8 = vld [vmem:[%s6944_s2 + $0x60] sm:$0xff] (!%p266_p3)   ;;  %v5251_v10 = vld [vmem:[%s6944_s2 + $0x68] sm:$0xff] (!%p266_p3)   ;;  %s4598_s12 = sadd.s32 (!%p266_p3), 8, %s5609_s28  ;;  %p354_p8 = scmp.lt.s32.totalorder (!%p266_p3), %s5609_s28, 15 }
   0xc   : > { %4608 = vmatprep.subr.bf16.mxu0 (!%p266_p3), %v5243_v2  ;;  %5183 = vmatprep.subr.bf16.mxu1 (!%p266_p3), %v5243_v2  ;;  %v5248_v7 = vld [vmem:[%s6944_s2 + $0x18] sm:$0xff] (!%p266_p3)   ;;  %v5250_v9 = vld [vmem:[%s6944_s2 + $0x20] sm:$0xff] (!%p266_p3)   ;;  %v5252_v17 = vld [vmem:[%s6944_s2 + $0x28] sm:$0xff] (!%p266_p3)   ;;  %p341_p7 = scmp.lt.s32.totalorder (!%p266_p3), %s4598_s12, 23  ;;  %p364_p9 = scmp.lt.s32.totalorder (!%p266_p3), %s5520_s21, 1 }
   0xd   : > { %v5253_v18 = vld [vmem:[%s6944_s2 + $0x70] sm:$0xff] (!%p266_p3)   ;;  %v5255_v20 = vld [vmem:[%s6944_s2 + $0x78] sm:$0xff] (!%p266_p3)   ;;  %v5261_v26 = vld [vmem:[%s6944_s2 + $0xc0] sm:$0xff] (!%p266_p3)  }
   0xe   : > { %v5254_v19 = vld [vmem:[%s6944_s2 + $0x30] sm:$0xff] (!%p266_p3)   ;;  %v5256_v21 = vld [vmem:[%s6944_s2 + $0x38] sm:$0xff] (!%p266_p3)   ;;  %v5262_v27 = vld [vmem:[%s6944_s2 + $0x140] sm:$0xff] (!%p266_p3)  }
   0xf   : > { %4609 = vmatpush3.bf16.msra.mxu0 (!%p266_p3), %v5244_v3  ;;  %5191 = vmatpush3.bf16.msra.mxu1 (!%p266_p3), %v5244_v3  ;;  %v5263_v28 = vld [vmem:[%s6944_s2 + $0x80] sm:$0xff] (!%p266_p3)   ;;  %v5265_v32 = vld [vmem:[%s6944_s2 + $0xc8] sm:$0xff] (!%p266_p3)   ;;  %v5273_v38 = vld [vmem:[%s6944_s2 + $0xd0] sm:$0xff] (!%p266_p3)  }
  0x10   : > { %s6960_s22 = smov (!%p326_p5, %s5524_s22), 1  ;;  %4610 = vmatprep.subr.bf16.mxu0 %v5245_v4  ;;  %5184 = vmatprep.subr.bf16.mxu1 %v5245_v4  ;;  %v5264_v29 = vld [vmem:[%s6944_s2 + $0x100] sm:$0xff]   ;;  %v5266_v33 = vld [vmem:[%s6944_s2 + $0x148] sm:$0xff]   ;;  %v5274_v39 = vld [vmem:[%s6944_s2 + $0x150] sm:$0xff]   ;;  %s6962_s12 = smov (!%p341_p7, %s4598_s12), 23 }
  0x11   : > { %s329_s13 = scalar_select %p328_p6, %s5609_s28, 23  ;;  %v5267_v34 = vld [vmem:[%s6944_s2 + $0x88] sm:$0xff]   ;;  %v5275_v46 = vld [vmem:[%s6944_s2 + $0x90] sm:$0xff]   ;;  %v5277_v48 = vld [vmem:[%s6944_s2 + $0xd8] sm:$0xff]  }
  0x12   : > { %s5199_s14 = smul.u32 144, %s6960_s22  ;;  %v5268_v35 = vld [vmem:[%s6944_s2 + $0x108] sm:$0xff]   ;;  %v5276_v47 = vld [vmem:[%s6944_s2 + $0x110] sm:$0xff]   ;;  %v5278_v49 = vld [vmem:[%s6944_s2 + $0x158] sm:$0xff]   ;;  %s6964_s21 = smov (!%p364_p9, %s5520_s21), 1 }
  0x13   : > { %s5198_s15 = smul.u32 6, %s329_s13  ;;  %4611 = vmatpush3.bf16.msra.mxu0 %v5246_v5  ;;  %5192 = vmatpush3.bf16.msra.mxu1 %v5246_v5  ;;  %v5279_v50 = vld [vmem:[%s6944_s2 + $0x98] sm:$0xff]   ;;  %v5285_v54 = vld [vmem:[%s6944_s2 + $0xe0] sm:$0xff]   ;;  %s4225_s8 = sshll.u32 %s6960_s22, 1 }
  0x14   : > { %4612 = vmatprep.subr.bf16.mxu0 %v5247_v6  ;;  %5185 = vmatprep.subr.bf16.mxu1 %v5247_v6  ;;  %v5280_v53 = vld [vmem:[%s6944_s2 + $0x118] sm:$0xff]   ;;  %v5286_v56 = vld [vmem:[%s6944_s2 + $0x160] sm:$0xff]   ;;  %v5289_v6 = vld [vmem:[%s6944_s2 + $0xe8] sm:$0xff]   ;;  %s5200_s13 = smul.u32 6, %s6962_s12 }
  0x15   : > { %s332_s20 = sadd.s32 %s5199_s14, %s5198_s15  ;;  %v5287_v59 = vld [vmem:[%s6944_s2 + $0xa0] sm:$0xff]  }
  0x16   : > { %s4217_s26 = sshll.u32 %s332_s20, 2  ;;  %v5288_v4 = vld [vmem:[%s6944_s2 + $0x120] sm:$0xff]   ;;  %s6194_s27 = sadd.s32 %s5200_s13, %s5199_s14 }
  0x17   : > { %s5645_s10 = scalar_lea.vmem %s6942_s0, %s4217_s26  ;;  %4613 = vmatpush3.bf16.msra.mxu0 %v5248_v7  ;;  %5193 = vmatpush3.bf16.msra.mxu1 %v5248_v7  ;;  %v5290_v7 = vld [vmem:[%s6944_s2 + $0x168] sm:$0xff]   ;;  %s4220_s13 = sshll.u32 %s6194_s27, 2 }
  0x18   : > { %4614 = vmatprep.subr.bf16.mxu0 %v5249_v8  ;;  %5186 = vmatprep.subr.bf16.mxu1 %v5249_v8  ;;  %v371_v11 = vld [vmem:[%s5645_s10] sm:$0xff]  ;;  %v5655_v12 = vld [vmem:[%s5645_s10 + $0x8] sm:$0xff]  ;;  %v374_v22 = vld [vmem:[%s5645_s10 + $0x18] sm:$0xff]  ;;  %s6261_s11 = scalar_lea.vmem %s6943_s1, %s4220_s13  ;;  %s367_s14 = sadd.s32 %s4225_s8, %s6964_s21 }
  0x19   : > { %v383_v13 = vld [vmem:[%s5645_s10 + $0x60] sm:$0xff]  ;;  %395 = vst [vmem:[#allocation2] sm:$0xff] %v371_v11  ;;  %v5659_v14 = vcombine.high %v371_v11, %v5655_v12  ;;  %v5662_v15 = vld [vmem:[%s5645_s10 + $0x68] sm:$0xff]  ;;  %398 = vst [vmem:[#allocation2 + $0x18] sm:$0xff] %v374_v22  ;;  %v5708_v30 = vcombine.low %v371_v11, %v5655_v12  ;;  %s355_s19 = scalar_select %p354_p8, %s5609_s28, 15 }
  0x1a   : > { %407 = vst [vmem:[#allocation2 + $0x60] sm:$0xff] %v383_v13  ;;  %408 = vst [vmem:[#allocation2 + $0x68] sm:$0xff] %v5662_v15  ;;  %v5666_v16 = vcombine.high %v383_v13, %v5662_v15  ;;  %v5687_v23 = vld [vmem:[%s5645_s10 + $0x20] sm:$0xff]  ;;  %v386_v24 = vld [vmem:[%s5645_s10 + $0x78] sm:$0xff]  ;;  %v5711_v31 = vcombine.low %v383_v13, %v5662_v15  ;;  %s4226_s9 = sshll.u32 %s367_s14, 1 }
  0x1b   : > { %4615 = vmatpush3.bf16.msra.mxu0 %v5250_v9  ;;  %5194 = vmatpush3.bf16.msra.mxu1 %v5250_v9  ;;  %v5691_v25 = vld [vmem:[%s5645_s10 + $0x80] sm:$0xff]  ;;  %399 = vst [vmem:[#allocation2 + $0x20] sm:$0xff] %v5687_v23  ;;  %410 = vst [vmem:[#allocation2 + $0x78] sm:$0xff] %v386_v24  ;;  %v5726_v36 = vcombine.high %v374_v22, %v5687_v23  ;;  %v377_v40 = vld [vmem:[%s5645_s10 + $0x30] sm:$0xff]  ;;  %v5752_v44 = vcombine.low %v374_v22, %v5687_v23  ;;  %v654_v55 = vshll.u32 %v5708_v30, 16  ;;  %s4222_s20 = sshll.u32 %s355_s19, 1  ;;  %s369_s27 = scalar_lea.vmem %s6948_s6, %s4226_s9 }
  0x1c   : > { %4616 = vmatprep.subr.bf16.mxu0 %v5251_v10  ;;  %5187 = vmatprep.subr.bf16.mxu1 %v5251_v10  ;;  %411 = vst [vmem:[#allocation2 + $0x80] sm:$0xff] %v5691_v25  ;;  %v5729_v37 = vcombine.high %v386_v24, %v5691_v25  ;;  %v5741_v41 = vld [vmem:[%s5645_s10 + $0x38] sm:$0xff]  ;;  %401 = vst [vmem:[#allocation2 + $0x30] sm:$0xff] %v377_v40  ;;  %v389_v42 = vld [vmem:[%s5645_s10 + $0x90] sm:$0xff]  ;;  %v5755_v45 = vcombine.low %v386_v24, %v5691_v25  ;;  %v666_v57 = vshll.u32 %v5659_v14, 16 }
  0x1d   : > { %3012 = vmatprep.mubr.bf16.mxu0 %v5659_v14  ;;  %3044 = vmatprep.mubr.bf16.mxu1 %v5666_v16  ;;  %402 = vst [vmem:[#allocation2 + $0x38] sm:$0xff] %v5741_v41  ;;  %v5746_v43 = vld [vmem:[%s5645_s10 + $0x98] sm:$0xff]  ;;  %413 = vst [vmem:[#allocation2 + $0x90] sm:$0xff] %v389_v42  ;;  %v5773_v51 = vcombine.high %v377_v40, %v5741_v41  ;;  %v652_v58 = vshrl.u32 %v5708_v30, 16  ;;  %v380_v60 = vld [vmem:[%s5645_s10 + $0x48] sm:$0xff]  ;;  %v762_v63 = vshll.u32 %v5666_v16, 16 }
  0x1e   : > { %414 = vst [vmem:[#allocation2 + $0x98] sm:$0xff] %v5746_v43  ;;  %v5776_v52 = vcombine.high %v389_v42, %v5746_v43  ;;  %v5799_v61 = vld [vmem:[%s5645_s10 + $0x50] sm:$0xff]  ;;  %v392_v62 = vld [vmem:[%s5645_s10 + $0xa8] sm:$0xff]  ;;  %v5804_v0 = vcombine.low %v377_v40, %v5741_v41  ;;  %v5807_v1 = vcombine.low %v389_v42, %v5746_v43  ;;  %404 = vst [vmem:[#allocation2 + $0x48] sm:$0xff] %v380_v60  ;;  %v750_v3 = vshll.u32 %v5711_v31, 16 }
  0x1f   : > { %4617 = vmatpush3.bf16.msra.mxu0 %v5252_v17  ;;  %5195 = vmatpush3.bf16.msra.mxu1 %v5252_v17  ;;  %405 = vst [vmem:[#allocation2 + $0x50] sm:$0xff] %v5799_v61  ;;  %v5811_v2 = vld [vmem:[%s5645_s10 + $0xb0] sm:$0xff]  ;;  %416 = vst [vmem:[#allocation2 + $0xa8] sm:$0xff] %v392_v62  ;;  %v5818_v5 = vrot.slane %v654_v55, 1  ;;  %v664_v8 = vshrl.u32 %v5659_v14, 16  ;;  %v5291_v9 = vld [vmem:[%s6944_s2 + $0xa8] sm:$0xff]   ;;  %v5831_v10 = vcombine.high %v380_v60, %v5799_v61 }
  0x20   : > { %4618 = vmatprep.subr.bf16.mxu0 %v5253_v18  ;;  %5188 = vmatprep.subr.bf16.mxu1 %v5253_v18  ;;  %417 = vst [vmem:[#allocation2 + $0xb0] sm:$0xff] %v5811_v2  ;;  %v5834_v11 = vcombine.high %v392_v62, %v5811_v2  ;;  %v668_v13 = vrot.slane %v666_v57, 1  ;;  %v5292_v17 = vld [vmem:[%s6944_s2 + $0x128] sm:$0xff]   ;;  %v760_v14 = vshrl.u32 %v5666_v16, 16  ;;  %v5297_v18 = vld [vmem:[%s6944_s2 + $0xf0] sm:$0xff]   ;;  %v690_v22 = vshll.u32 %v5726_v36, 16 }
  0x21   : > { %v5299_v24 = vld [vmem:[%s6944_s2 + $0xb0] sm:$0xff]   ;;  %v676_v40 = vshrl.u32 %v5752_v44, 16  ;;  %v714_v42 = vshll.u32 %v5773_v51, 16  ;;  %v376_v55 = vld [vmem:[%s5645_s10 + $0x28] sm:$0x11]  ;;  %v712_v57 = vshrl.u32 %v5773_v51, 16 }
  0x22   : > { %400 = vst [vmem:[#allocation2 + $0x28] sm:$0x11] %v376_v55  ;;  %v5316_v55 = vld [vmem:[%s6944_s2 + $0x208] sm:$0xff]  }
  0x23   : > { %4619 = vmatpush3.bf16.msra.mxu0 %v5254_v19  ;;  %5196 = vmatpush3.bf16.msra.mxu1 %v5254_v19  ;;  %v5845_v19 = vrot.slane %v762_v63, 1  ;;  %v5903_v63 = vrot.slane %v714_v42, 1 }
  0x24   : > { %4620 = vmatprep.subr.bf16.mxu0 %v5255_v20  ;;  %5189 = vmatprep.subr.bf16.mxu1 %v5255_v20  ;;  %v5298_v20 = vld [vmem:[%s6944_s2 + $0x170] sm:$0xff]  }
  0x27   : > { %4621 = vmatpush3.bf16.msra.mxu0 %v5256_v21  ;;  %5197 = vmatpush3.bf16.msra.mxu1 %v5256_v21  ;;  %v748_v21 = vshrl.u32 %v5711_v31, 16 }
  0x28   : > { %4670 = vmatprep.subr.bf16.mxu1 %v5261_v26  ;;  %4734 = vmatprep.subr.bf16.mxu0 %v5262_v27  ;;  %v5300_v26 = vld [vmem:[%s6944_s2 + $0x130] sm:$0xff]   ;;  %v678_v27 = vshll.u32 %v5752_v44, 16 }
  0x2a   : > { %3013 = vmatmul.mubr.bf16.vlgmr.msra.gmra.mrb[0].mxu0 %v5708_v30  ;;  %3045 = vmatmul.mubr.bf16.vlgmr.msra.gmra.mrb[0].mxu1 %v5711_v31 }
  0x2b   : > { %4671 = vmatpush3.bf16.msra.mxu1 %v5263_v28  ;;  %4735 = vmatpush3.bf16.msra.mxu0 %v5264_v29  ;;  %v5862_v28 = vcombine.low %v380_v60, %v5799_v61  ;;  %v5865_v29 = vcombine.low %v392_v62, %v5811_v2  ;;  %v669_v62 = vor.u32 %v668_v13, %v664_v8  ;;  %v379_v13 = vld [vmem:[%s5645_s10 + $0x40] sm:$0x11] }
  0x2c   : > { %4672 = vmatprep.subr.bf16.mxu1 %v5265_v32  ;;  %4736 = vmatprep.subr.bf16.mxu0 %v5266_v33  ;;  %v5301_v32 = vld [vmem:[%s6944_s2 + $0xf8] sm:$0xff]   ;;  %v373_v33 = vld [vmem:[%s5645_s10 + $0x10] sm:$0x11]  ;;  %403 = vst [vmem:[#allocation2 + $0x40] sm:$0x11] %v379_v13 }
  0x2d   : > { %3020 = vmatprep.mubr.bf16.mxu0 %v5726_v36  ;;  %3052 = vmatprep.mubr.bf16.mxu1 %v5729_v37  ;;  %397 = vst [vmem:[#allocation2 + $0x10] sm:$0x11] %v373_v33 }
  0x2f   : > { %4673 = vmatpush3.bf16.msra.mxu1 %v5267_v34  ;;  %4737 = vmatpush3.bf16.msra.mxu0 %v5268_v35  ;;  %v5302_v34 = vld [vmem:[%s6944_s2 + $0x178] sm:$0xff]   ;;  %v688_v35 = vshrl.u32 %v5726_v36, 16 }
  0x30   : > { %4674 = vmatprep.subr.bf16.mxu1 %v5273_v38  ;;  %4738 = vmatprep.subr.bf16.mxu0 %v5274_v39  ;;  %v456_v38 = vld [vmem:[#allocation2] sm:$0xee]  ;;  %v5875_v39 = vrot.slane %v690_v22, 1 }
  0x32   : > { %3021 = vmatmul.mubr.bf16.gmra.mrb[4].mxu0 %v5752_v44  ;;  %3053 = vmatmul.mubr.bf16.gmra.mrb[4].mxu1 %v5755_v45 }
  0x33   : > { %4675 = vmatpush3.bf16.msra.mxu1 %v5275_v46  ;;  %4739 = vmatpush3.bf16.msra.mxu0 %v5276_v47  ;;  %v5303_v46 = vld [vmem:[%s6944_s2 + $0xb8] sm:$0xff]  }
  0x34   : > { %4676 = vmatprep.subr.bf16.mxu1 %v5277_v48  ;;  %4740 = vmatprep.subr.bf16.mxu0 %v5278_v49  ;;  %v5304_v47 = vld [vmem:[%s6944_s2 + $0x138] sm:$0xff]   ;;  %v5887_v48 = vrot.slane %v678_v27, 1  ;;  %v702_v49 = vshll.u32 %v5804_v0, 16  ;;  %v448_v60 = vld [vmem:[#allocation2 + $0x10] sm:$0x11]  ;;  %v5315_v27 = vld [vmem:[%s6944_s2 + $0x248] sm:$0xff]  }
  0x35   : > { %3028 = vmatprep.mubr.bf16.mxu0 %v5773_v51  ;;  %3060 = vmatprep.mubr.bf16.mxu1 %v5776_v52  ;;  %v5325_v51 = vld [vmem:[%s6944_s2 + $0x1d8] sm:$0xff]  }
  0x36   : > { %v681_v36 = vor.u32 %v5887_v48, %v676_v40 }
  0x37   : > { %4677 = vmatpush3.bf16.msra.mxu1 %v5279_v50  ;;  %4741 = vmatpush3.bf16.msra.mxu0 %v5280_v53  ;;  %v4259_v50 = vcombine.low %v456_v38, %v5655_v12  ;;  %v4260_v53 = vcombine.high %v456_v38, %v5655_v12  ;;  %v657_v12 = vor.u32 %v5818_v5, %v652_v58  ;;  %v5910_v58 = vrot.slane %v702_v49, 1 }
  0x38   : > { %4678 = vmatprep.subr.bf16.mxu1 %v5285_v54  ;;  %4742 = vmatprep.subr.bf16.mxu0 %v5286_v56  ;;  %v5307_v54 = vld [vmem:[%s6944_s2 + $0x1c0] sm:$0xff]  }
  0x39   : > { %v5309_v56 = vld [vmem:[%s6944_s2 + $0x240] sm:$0xff]  }
  0x3a   : > { %3029 = vmatmul.mubr.bf16.gmra.mrb[8].mxu0 %v5804_v0  ;;  %3061 = vmatmul.mubr.bf16.gmra.mrb[8].mxu1 %v5807_v1 }
  0x3b   : > { %4679 = vmatpush3.bf16.msra.mxu1 %v5287_v59  ;;  %4743 = vmatpush3.bf16.msra.mxu0 %v5288_v4  ;;  %v457_v59 = vld [vmem:[#allocation2 + $0x18] sm:$0xee]  ;;  %v700_v4 = vshrl.u32 %v5804_v0, 16 }
  0x3c   : > { %4680 = vmatprep.subr.bf16.mxu1 %v5289_v6  ;;  %4744 = vmatprep.subr.bf16.mxu0 %v5290_v7  ;;  %v4243_v6 = vcombine.low %v448_v60, %v448_v60  ;;  %v4244_v7 = vcombine.high %v448_v60, %v448_v60  ;;  %v4262_v8 = vcombine.high %v457_v59, %v5687_v23 }
  0x3d   : > { %3036 = vmatprep.mubr.bf16.mxu0 %v5831_v10  ;;  %3068 = vmatprep.mubr.bf16.mxu1 %v5834_v11  ;;  %v4261_v30 = vcombine.low %v457_v59, %v5687_v23  ;;  %v5308_v23 = vld [vmem:[%s6944_s2 + $0x180] sm:$0xff]   ;;  %v693_v60 = vor.u32 %v5875_v39, %v688_v35  ;;  %v5321_v35 = vld [vmem:[%s6944_s2 + $0x250] sm:$0xff]   ;;  %v382_v39 = vld [vmem:[%s5645_s10 + $0x58] sm:$0x11] }
  0x3e   : > { %v671_v5 = vshll.u32 %v4244_v7, 16  ;;  %v659_v22 = vshll.u32 %v4243_v6, 16  ;;  %v909_v49 = vrot.slane %v4262_v8, 1  ;;  %406 = vst [vmem:[#allocation2 + $0x58] sm:$0x11] %v382_v39  ;;  %v5331_v39 = vld [vmem:[%s6944_s2 + $0x1e0] sm:$0xff]  }
  0x3f   : > { %4681 = vmatpush3.bf16.msra.mxu1 %v5291_v9  ;;  %4745 = vmatpush3.bf16.msra.mxu0 %v5292_v17  ;;  %v900_v9 = vrot.slane %v4259_v50, 1  ;;  %v903_v17 = vrot.slane %v4260_v53, 1  ;;  %v906_v53 = vrot.slane %v4261_v30, 1  ;;  %v5946_v30 = vld [vmem:[#allocation2 + $0x48] sm:$0xee] }
  0x40   : > { %4682 = vmatprep.subr.bf16.mxu1 %v5297_v18  ;;  %4746 = vmatprep.subr.bf16.mxu0 %v5298_v20  ;;  %v738_v18 = vshll.u32 %v5831_v10, 16  ;;  %v904_v20 = vrot.slane %v4244_v7, 1  ;;  %v673_v33 = vrot.slane %v671_v5, 1  ;;  %v661_v38 = vrot.slane %v659_v22, 1  ;;  %v450_v22 = vld [vmem:[#allocation2 + $0x40] sm:$0x11] }
  0x41   : > { %v4248_v44 = vcombine.high %v450_v22, %v450_v22  ;;  %v4247_v48 = vcombine.low %v450_v22, %v450_v22 }
  0x42   : > { %3037 = vmatmul.mubr.bf16.gmra.mrb[12].mxu0 %v5862_v28  ;;  %3069 = vmatmul.mubr.bf16.gmra.mrb[12].mxu1 %v5865_v29  ;;  %v662_v59 = vsel %vm650_vm1, %v657_v12, %v661_v38  ;;  %v726_v12 = vshll.u32 %v5862_v28, 16 }
  0x43   : > { %4683 = vmatpush3.bf16.msra.mxu1 %v5299_v24  ;;  %4747 = vmatpush3.bf16.msra.mxu0 %v5300_v26  ;;  %v901_v24 = vrot.slane %v4243_v6, 1  ;;  %v5310_v26 = vld [vmem:[%s6944_s2 + $0x200] sm:$0xff]   ;;  %v719_v38 = vshll.u32 %v4248_v44, 16 }
  0x44   : > { %4684 = vmatprep.subr.bf16.mxu1 %v5301_v32  ;;  %4748 = vmatprep.subr.bf16.mxu0 %v5302_v34  ;;  %v458_v32 = vld [vmem:[#allocation2 + $0x30] sm:$0xee]  ;;  %v905_v34 = vsel %vm899_vm0, %v903_v17, %v904_v20 }
  0x45   : > { %v902_v42 = vsel %vm899_vm0, %v900_v9, %v901_v24  ;;  %3206 = vmatprep.mubr.bf16.mxu0 %v905_v34  ;;  %v4264_v6 = vcombine.high %v458_v32, %v5741_v41  ;;  %v4263_v24 = vcombine.low %v458_v32, %v5741_v41  ;;  %v736_v41 = vshrl.u32 %v5831_v10, 16 }
  0x46   : > { %v4266_v32 = vcombine.high %v5946_v30, %v5799_v61  ;;  %v717_v34 = vor.u32 %v5903_v63, %v712_v57  ;;  %v5327_v57 = vld [vmem:[%s6944_s2 + $0x258] sm:$0xff]   ;;  %v721_v63 = vrot.slane %v719_v38, 1 }
  0x47   : > { %4685 = vmatpush3.bf16.msra.mxu1 %v5303_v46  ;;  %4749 = vmatpush3.bf16.msra.mxu0 %v5304_v47  ;;  %v449_v46 = vld [vmem:[#allocation2 + $0x28] sm:$0x11]  ;;  %v915_v40 = vrot.slane %v4264_v6, 1  ;;  %v6020_v38 = vld [vmem:[#allocation2 + $0x78] sm:$0xee] }
  0x48   : > { %4798 = vmatprep.subr.bf16.mxu1 %v5307_v54  ;;  %4862 = vmatprep.subr.bf16.mxu0 %v5309_v56  ;;  %v4246_v47 = vcombine.high %v449_v46, %v449_v46  ;;  %v4245_v50 = vcombine.low %v449_v46, %v449_v46  ;;  %v5313_v54 = vld [vmem:[%s6944_s2 + $0x1c8] sm:$0xff]   ;;  %v674_v56 = vsel %vm650_vm1, %v669_v62, %v673_v33  ;;  %v5322_v33 = vld [vmem:[%s6944_s2 + $0x210] sm:$0xff]  }
  0x49   : > { %3109 = vmatprep.mubr.bf16.mxu1 %v674_v56  ;;  %v5314_v62 = vld [vmem:[%s6944_s2 + $0x188] sm:$0xff]   ;;  %v5320_v46 = vld [vmem:[%s6944_s2 + $0x190] sm:$0xff]   ;;  %v921_v56 = vrot.slane %v4266_v32, 1  ;;  %v722_v6 = vsel %vm650_vm1, %v717_v34, %v721_v63 }
  0x4a   : > { %3207 = vmatmul.mubr.bf16.vlgmr.msra.gmra.mrb[16].mxu0 %v902_v42  ;;  %v695_v7 = vshll.u32 %v4246_v47, 16  ;;  %v910_v9 = vrot.slane %v4246_v47, 1  ;;  %v683_v17 = vshll.u32 %v4245_v50, 16  ;;  %v907_v8 = vrot.slane %v4245_v50, 1  ;;  %3110 = vmatmul.mubr.bf16.vlgmr.msra.gmra.mrb[16].mxu1 %v662_v59  ;;  %v5326_v59 = vld [vmem:[%s6944_s2 + $0x198] sm:$0xff]  }
  0x4b   : > { %4863 = vmatpush3.bf16.msra.mxu0 %v5310_v26  ;;  %4799 = vmatpush3.bf16.msra.mxu1 %v5308_v23  ;;  %v5319_v26 = vld [vmem:[%s6944_s2 + $0x1d0] sm:$0xff]   ;;  %v916_v42 = vrot.slane %v4248_v44, 1  ;;  %v740_v47 = vrot.slane %v738_v18, 1  ;;  %v707_v50 = vshll.u32 %v4247_v48, 16  ;;  %v5334_v44 = vld [vmem:[%s6944_s2 + $0x220] sm:$0xff]  }
  0x4c   : > { %4864 = vmatprep.subr.bf16.mxu0 %v5315_v27  ;;  %v697_v13 = vrot.slane %v695_v7, 1  ;;  %v911_v5 = vsel %vm899_vm0, %v909_v49, %v910_v9  ;;  %v685_v20 = vrot.slane %v683_v17, 1  ;;  %4800 = vmatprep.subr.bf16.mxu1 %v5313_v54  ;;  %v908_v23 = vsel %vm899_vm0, %v906_v53, %v907_v8  ;;  %v385_v18 = vld [vmem:[%s5645_s10 + $0x70] sm:$0x11]  ;;  %v451_v7 = vld [vmem:[#allocation2 + $0x58] sm:$0x11] }
  0x4d   : > { %3214 = vmatprep.mubr.bf16.mxu0 %v911_v5  ;;  %v912_v53 = vrot.slane %v4263_v24, 1  ;;  %v917_v54 = vsel %vm899_vm0, %v915_v40, %v916_v42  ;;  %409 = vst [vmem:[#allocation2 + $0x70] sm:$0x11] %v385_v18  ;;  %v4265_v9 = vcombine.low %v5946_v30, %v5799_v61  ;;  %v5987_v17 = vld [vmem:[#allocation2 + $0x60] sm:$0xee]  ;;  %v705_v8 = vor.u32 %v5910_v58, %v700_v4 }
  0x4e   : > { %v698_v27 = vsel %vm650_vm1, %v693_v60, %v697_v13  ;;  %v686_v49 = vsel %vm650_vm1, %v681_v36, %v685_v20  ;;  %v5328_v60 = vld [vmem:[%s6944_s2 + $0x218] sm:$0xff]   ;;  %v4250_v36 = vcombine.high %v451_v7, %v451_v7  ;;  %v724_v13 = vshrl.u32 %v5862_v28, 16  ;;  %v5333_v61 = vld [vmem:[%s6944_s2 + $0x260] sm:$0xff]   ;;  %v388_v40 = vld [vmem:[%s5645_s10 + $0x88] sm:$0x11] }
  0x4f   : > { %4865 = vmatpush3.bf16.msra.mxu0 %v5316_v55  ;;  %3117 = vmatprep.mubr.bf16.mxu1 %v698_v27  ;;  %v913_v55 = vrot.slane %v4247_v48, 1  ;;  %v6000_v30 = vor.u32 %v740_v47, %v736_v41  ;;  %v728_v5 = vrot.slane %v726_v12, 1  ;;  %v918_v20 = vrot.slane %v4265_v9, 1  ;;  %v5332_v24 = vld [vmem:[%s6944_s2 + $0x1a0] sm:$0xff]   ;;  %412 = vst [vmem:[#allocation2 + $0x88] sm:$0x11] %v388_v40 }
  0x50   : > { %4866 = vmatprep.subr.bf16.mxu0 %v5321_v35  ;;  %4801 = vmatpush3.bf16.msra.mxu1 %v5314_v62  ;;  %v709_v62 = vrot.slane %v707_v50, 1  ;;  %v4249_v35 = vcombine.low %v451_v7, %v451_v7  ;;  %v743_v4 = vshll.u32 %v4250_v36, 16  ;;  %v922_v58 = vrot.slane %v4250_v36, 1  ;;  %v5337_v41 = vld [vmem:[%s6944_s2 + $0x1e8] sm:$0xff]  }
  0x51   : > { %4802 = vmatprep.subr.bf16.mxu1 %v5319_v26  ;;  %v914_v0 = vsel %vm899_vm0, %v912_v53, %v913_v55  ;;  %v4268_v22 = vcombine.high %v5987_v17, %v5662_v15  ;;  %v786_v42 = vshll.u32 %v5729_v37, 16  ;;  %v5340_v50 = vld [vmem:[%s6944_s2 + $0x228] sm:$0xff]   ;;  %v774_v55 = vshll.u32 %v5755_v45, 16 }
  0x52   : > { %3215 = vmatmul.mubr.bf16.gmra.mrb[20].mxu0 %v908_v23  ;;  %3118 = vmatmul.mubr.bf16.gmra.mrb[20].mxu1 %v686_v49  ;;  %v710_v48 = vsel %vm650_vm1, %v705_v8, %v709_v62  ;;  %v745_v26 = vrot.slane %v743_v4, 1  ;;  %v923_v27 = vsel %vm899_vm0, %v921_v56, %v922_v58  ;;  %v731_v12 = vshll.u32 %v4249_v35, 16  ;;  %v5339_v49 = vld [vmem:[%s6944_s2 + $0x268] sm:$0xff]   ;;  %v6064_v58 = vld [vmem:[#allocation2 + $0x90] sm:$0xee] }
  0x53   : > { %3222 = vmatprep.mubr.bf16.mxu0 %v917_v54  ;;  %4867 = vmatpush3.bf16.msra.mxu0 %v5322_v33  ;;  %v919_v23 = vrot.slane %v4249_v35, 1  ;;  %v927_v47 = vrot.slane %v4268_v22, 1  ;;  %v5338_v54 = vld [vmem:[%s6944_s2 + $0x1a8] sm:$0xff]   ;;  %v765_v18 = vor.u32 %v5845_v19, %v760_v14  ;;  %v752_v56 = vrot.slane %v750_v3, 1  ;;  %v394_v22 = vld [vmem:[%s5645_s10 + $0xb8] sm:$0x11] }
  0x54   : > { %4868 = vmatprep.subr.bf16.mxu0 %v5327_v57  ;;  %3125 = vmatprep.mubr.bf16.mxu1 %v722_v6  ;;  %v452_v33 = vld [vmem:[#allocation2 + $0x70] sm:$0x11]  ;;  %v746_v32 = vsel %vm650_vm1, %v6000_v30, %v745_v26  ;;  %v733_v53 = vrot.slane %v731_v12, 1  ;;  %v784_v9 = vshrl.u32 %v5729_v37, 16  ;;  %v788_v62 = vrot.slane %v786_v42, 1  ;;  %v5351_v42 = vld [vmem:[%s6944_s2 + $0x278] sm:$0xff]  }
  0x55   : > { %4803 = vmatpush3.bf16.msra.mxu1 %v5320_v46  ;;  %v4252_v34 = vcombine.high %v452_v33, %v452_v33  ;;  %v6023_v46 = vor.u32 %v728_v5, %v724_v13  ;;  %v4251_v63 = vcombine.low %v452_v33, %v452_v33  ;;  %v920_v6 = vsel %vm899_vm0, %v918_v20, %v919_v23  ;;  %v5344_v37 = vld [vmem:[%s6944_s2 + $0x1b0] sm:$0xff]   ;;  %v5349_v33 = vld [vmem:[%s6944_s2 + $0x1f8] sm:$0xff]  }
  0x56   : > { %4804 = vmatprep.subr.bf16.mxu1 %v5325_v51  ;;  %v453_v16 = vld [vmem:[#allocation2 + $0x88] sm:$0x11]  ;;  %v4270_v14 = vcombine.high %v6020_v38, %v5691_v25  ;;  %v5345_v13 = vld [vmem:[%s6944_s2 + $0x270] sm:$0xff]   ;;  %418 = vst [vmem:[#allocation2 + $0xb8] sm:$0x11] %v394_v22  ;;  %v4272_v23 = vcombine.high %v6064_v58, %v5746_v43 }
  0x57   : > { %4869 = vmatpush3.bf16.msra.mxu0 %v5328_v60  ;;  %v767_v51 = vshll.u32 %v4252_v34, 16  ;;  %v928_v57 = vrot.slane %v4252_v34, 1  ;;  %v391_v60 = vld [vmem:[%s5645_s10 + $0xa0] sm:$0x11]  ;;  %v734_v3 = vsel %vm650_vm1, %v6023_v46, %v733_v53  ;;  %v755_v19 = vshll.u32 %v4251_v63, 16 }
  0x58   : > { %4870 = vmatprep.subr.bf16.mxu0 %v5333_v61  ;;  %415 = vst [vmem:[#allocation2 + $0xa0] sm:$0x11] %v391_v60  ;;  %v5346_v61 = vld [vmem:[%s6944_s2 + $0x230] sm:$0xff]   ;;  %v933_v5 = vrot.slane %v4270_v14, 1  ;;  %v4253_v40 = vcombine.low %v453_v16, %v453_v16  ;;  %v798_v34 = vshll.u32 %v5807_v1, 16 }
  0x59   : > { %4805 = vmatpush3.bf16.msra.mxu1 %v5326_v59  ;;  %v4267_v59 = vcombine.low %v5987_v17, %v5662_v15  ;;  %v769_v7 = vrot.slane %v767_v51, 1  ;;  %v929_v8 = vsel %vm899_vm0, %v927_v47, %v928_v57  ;;  %v5343_v15 = vld [vmem:[%s6944_s2 + $0x1f0] sm:$0xff]   ;;  %v4254_v17 = vcombine.high %v453_v16, %v453_v16  ;;  %v5352_v47 = vld [vmem:[%s6944_s2 + $0x238] sm:$0xff]   ;;  %v6098_v16 = vld [vmem:[#allocation2 + $0x20] sm:$0xff] }
  0x5a   : > { %3223 = vmatmul.mubr.bf16.gmra.mrb[24].mxu0 %v914_v0  ;;  %4806 = vmatprep.subr.bf16.mxu1 %v5331_v39  ;;  %v772_v39 = vshrl.u32 %v5755_v45, 16  ;;  %v925_v0 = vrot.slane %v4251_v63, 1  ;;  %v810_v45 = vshll.u32 %v5776_v52, 16  ;;  %v796_v51 = vshrl.u32 %v5807_v1, 16  ;;  %v5357_v1 = vld [vmem:[%s6944_s2 + $0x2c0] sm:$0xff]  }
  0x5b   : > { %3230 = vmatprep.mubr.bf16.mxu0 %v923_v27  ;;  %3126 = vmatmul.mubr.bf16.gmra.mrb[24].mxu1 %v710_v48  ;;  %v770_v36 = vsel %vm650_vm1, %v765_v18, %v769_v7  ;;  %v924_v35 = vrot.slane %v4267_v59, 1  ;;  %v791_v4 = vshll.u32 %v4254_v17, 16  ;;  %v934_v20 = vrot.slane %v4254_v17, 1  ;;  %v6093_v18 = vld [vmem:[#allocation2 + $0xa8] sm:$0xee] }
  0x5c   : > { %4871 = vmatpush3.bf16.msra.mxu0 %v5334_v44  ;;  %3133 = vmatprep.mubr.bf16.mxu1 %v746_v32  ;;  %v757_v44 = vrot.slane %v755_v19, 1  ;;  %v789_v48 = vor.u32 %v788_v62, %v784_v9  ;;  %v4269_v27 = vcombine.low %v6020_v38, %v5691_v25  ;;  %v5350_v32 = vld [vmem:[%s6944_s2 + $0x1b8] sm:$0xff]   ;;  %v808_v38 = vshrl.u32 %v5776_v52, 16 }
  0x5d   : > { %4807 = vmatpush3.bf16.msra.mxu1 %v5332_v24  ;;  %4872 = vmatprep.subr.bf16.mxu0 %v5339_v49  ;;  %v753_v24 = vor.u32 %v752_v56, %v748_v21  ;;  %v793_v26 = vrot.slane %v791_v4, 1  ;;  %v926_v31 = vsel %vm899_vm0, %v924_v35, %v925_v0  ;;  %v776_v21 = vrot.slane %v774_v55, 1  ;;  %v465_v56 = vld [vmem:[#allocation2 + $0x18] sm:$0xff]  ;;  %v481_v4 = vld [vmem:[#allocation2 + $0x28] sm:$0x11] }
  0x5e   : > { %4808 = vmatprep.subr.bf16.mxu1 %v5337_v41  ;;  %v935_v25 = vsel %vm899_vm0, %v933_v5, %v934_v20  ;;  %v812_v53 = vrot.slane %v810_v45, 1  ;;  %v930_v52 = vrot.slane %v4269_v27, 1  ;;  %v931_v55 = vrot.slane %v4253_v40, 1 }
  0x5f   : > { %v454_v12 = vld [vmem:[#allocation2 + $0xa0] sm:$0x11]  ;;  %v758_v49 = vsel %vm650_vm1, %v753_v24, %v757_v44  ;;  %v794_v57 = vsel %vm650_vm1, %v789_v48, %v793_v26  ;;  %v777_v7 = vor.u32 %v776_v21, %v772_v39  ;;  %v834_v62 = vshll.u32 %v5834_v11, 16 }
  0x60   : > { %4873 = vmatpush3.bf16.msra.mxu0 %v5340_v50  ;;  %v4256_v41 = vcombine.high %v454_v12, %v454_v12  ;;  %v779_v50 = vshll.u32 %v4253_v40, 16  ;;  %v4255_v60 = vcombine.low %v454_v12, %v454_v12  ;;  %v822_v19 = vshll.u32 %v5865_v29, 16 }
  0x61   : > { %4809 = vmatpush3.bf16.msra.mxu1 %v5338_v54  ;;  %4874 = vmatprep.subr.bf16.mxu0 %v5345_v13  ;;  %v939_v54 = vrot.slane %v4272_v23, 1  ;;  %v932_v17 = vsel %vm899_vm0, %v930_v52, %v931_v55  ;;  %v832_v13 = vshrl.u32 %v5834_v11, 16  ;;  %v836_v20 = vrot.slane %v834_v62, 1  ;;  %v467_v23 = vld [vmem:[#allocation2 + $0x30] sm:$0xff] }
  0x62   : > { %3231 = vmatmul.mubr.bf16.gmra.mrb[28].mxu0 %v920_v6  ;;  %4810 = vmatprep.subr.bf16.mxu1 %v5343_v15  ;;  %v815_v63 = vshll.u32 %v4256_v41, 16  ;;  %v940_v59 = vrot.slane %v4256_v41, 1  ;;  %v455_v6 = vld [vmem:[#allocation2 + $0xb8] sm:$0x11]  ;;  %v781_v9 = vrot.slane %v779_v50, 1  ;;  %v4271_v15 = vcombine.low %v6064_v58, %v5746_v43  ;;  %v5359_v43 = vld [vmem:[%s6944_s2 + $0x340] sm:$0xff]  }
  0x63   : > { %3238 = vmatprep.mubr.bf16.mxu0 %v929_v8  ;;  %3134 = vmatmul.mubr.bf16.gmra.mrb[28].mxu1 %v734_v3  ;;  %v813_v8 = vor.u32 %v812_v53, %v808_v38  ;;  %v4258_v3 = vcombine.high %v455_v6, %v455_v6  ;;  %v803_v39 = vshll.u32 %v4255_v60, 16  ;;  %v937_v45 = vrot.slane %v4255_v60, 1 }
  0x64   : > { %3141 = vmatprep.mubr.bf16.mxu1 %v770_v36  ;;  %4875 = vmatpush3.bf16.msra.mxu0 %v5346_v61  ;;  %v817_v14 = vrot.slane %v815_v63, 1  ;;  %v4274_v36 = vcombine.high %v6093_v18, %v5811_v2  ;;  %v941_v35 = vsel %vm899_vm0, %v939_v54, %v940_v59  ;;  %v6110_v61 = vcombine.high %v465_v56, %v6098_v16 }
  0x65   : > { %4811 = vmatpush3.bf16.msra.mxu1 %v5344_v37  ;;  %4876 = vmatprep.subr.bf16.mxu0 %v5351_v42  ;;  %v800_v37 = vrot.slane %v798_v34, 1  ;;  %v782_v0 = vsel %vm650_vm1, %v777_v7, %v781_v9  ;;  %v936_v5 = vrot.slane %v4271_v15, 1  ;;  %v839_v22 = vshll.u32 %v4258_v3, 16 }
  0x66   : > { %4812 = vmatprep.subr.bf16.mxu1 %v5349_v33  ;;  %v818_v58 = vsel %vm650_vm1, %v813_v8, %v817_v14  ;;  %v945_v11 = vrot.slane %v4274_v36, 1  ;;  %v4257_v24 = vcombine.low %v455_v6, %v455_v6  ;;  %v946_v44 = vrot.slane %v4258_v3, 1  ;;  %v6121_v33 = vld [vmem:[#allocation2 + $0x38] sm:$0xff] }
  0x67   : > { %v1099_v40 = vshll.u32 %v6110_v61, 16  ;;  %v6118_v48 = vcombine.high %v481_v4, %v481_v4  ;;  %v801_v26 = vor.u32 %v800_v37, %v796_v51  ;;  %v805_v27 = vrot.slane %v803_v39, 1  ;;  %v482_v51 = vld [vmem:[#allocation2 + $0x40] sm:$0x11]  ;;  %v483_v37 = vld [vmem:[#allocation2 + $0x58] sm:$0x11] }
  0x68   : > { %4877 = vmatpush3.bf16.msra.mxu0 %v5352_v47  ;;  %v820_v12 = vshrl.u32 %v5865_v29, 16  ;;  %v841_v21 = vrot.slane %v839_v22, 1  ;;  %v824_v41 = vrot.slane %v822_v19, 1  ;;  %v938_v34 = vsel %vm899_vm0, %v936_v5, %v937_v45  ;;  %v6163_v5 = vld [vmem:[#allocation2 + $0x68] sm:$0xff] }
  0x69   : > { %4813 = vmatpush3.bf16.msra.mxu1 %v5350_v32  ;;  %4990 = vmatprep.subr.bf16.mxu0 %v5359_v43  ;;  %v4273_v32 = vcombine.low %v6093_v18, %v5811_v2  ;;  %v6127_v38 = vcombine.low %v465_v56, %v6098_v16  ;;  %v1097_v42 = vshrl.u32 %v6110_v61, 16  ;;  %v947_v29 = vsel %vm899_vm0, %v945_v11, %v946_v44  ;;  %v471_v43 = vld [vmem:[#allocation2 + $0x60] sm:$0xff] }
  0x6a   : > { %3239 = vmatmul.mubr.bf16.gmra.mrb[32].mxu0 %v926_v31  ;;  %4926 = vmatprep.subr.bf16.mxu1 %v5357_v1  ;;  %v837_v31 = vor.u32 %v836_v20, %v832_v13  ;;  %v1101_v47 = vrot.slane %v1099_v40, 1  ;;  %v6133_v50 = vcombine.high %v467_v23, %v6121_v33  ;;  %v806_v53 = vsel %vm650_vm1, %v801_v26, %v805_v27  ;;  %v5360_v11 = vld [vmem:[%s6944_s2 + $0x300] sm:$0xff]   ;;  %v484_v40 = vld [vmem:[#allocation2 + $0x70] sm:$0x11]  ;;  %v5367_v26 = vld [vmem:[%s6944_s2 + $0x348] sm:$0xff]  }
  0x6b   : > { %3246 = vmatprep.mubr.bf16.mxu0 %v935_v25  ;;  %3142 = vmatmul.mubr.bf16.gmra.mrb[32].mxu1 %v758_v49  ;;  %v827_v25 = vshll.u32 %v4257_v24, 16  ;;  %v1104_v49 = vshll.u32 %v6118_v48, 16  ;;  %v943_v52 = vrot.slane %v4257_v24, 1  ;;  %v1087_v63 = vshll.u32 %v6127_v38, 16 }
  0x6c   : > { %3149 = vmatprep.mubr.bf16.mxu1 %v794_v57  ;;  %v842_v2 = vsel %vm650_vm1, %v837_v31, %v841_v21  ;;  %v942_v57 = vrot.slane %v4273_v32, 1  ;;  %v6139_v54 = vcombine.low %v481_v4, %v481_v4  ;;  %v1102_v55 = vor.u32 %v1101_v47, %v1097_v42  ;;  %v5365_v31 = vld [vmem:[%s6944_s2 + $0x2c8] sm:$0xff]  }
  0x6d   : > { %v1106_v18 = vrot.slane %v1104_v49, 1  ;;  %v1123_v56 = vshll.u32 %v6133_v50, 16  ;;  %v6142_v59 = vcombine.high %v482_v51, %v482_v51  ;;  %v825_v60 = vor.u32 %v824_v41, %v820_v12  ;;  %v5366_v42 = vld [vmem:[%s6944_s2 + $0x288] sm:$0xff]  }
  0x6e   : > { %v829_v6 = vrot.slane %v827_v25, 1  ;;  %v1085_v1 = vshrl.u32 %v6127_v38, 16  ;;  %v6146_v7 = vcombine.low %v467_v23, %v6121_v33  ;;  %v944_v9 = vsel %vm899_vm0, %v942_v57, %v943_v52  ;;  %v5358_v23 = vld [vmem:[%s6944_s2 + $0x280] sm:$0xff]  }
  0x6f   : > { %v1089_v8 = vrot.slane %v1087_v63, 1  ;;  %v1092_v62 = vshll.u32 %v6139_v54, 16  ;;  %v1107_v14 = vsel %vm650_vm1, %v1102_v55, %v1106_v18  ;;  %v1121_v15 = vshrl.u32 %v6133_v50, 16  ;;  %v6223_v52 = vld [vmem:[#allocation2 + $0x80] sm:$0xff] }
  0x70   : > { %v1125_v3 = vrot.slane %v1123_v56, 1  ;;  %v1128_v19 = vshll.u32 %v6142_v59, 16  ;;  %v1111_v36 = vshll.u32 %v6146_v7, 16  ;;  %v6157_v13 = vcombine.low %v482_v51, %v482_v51  ;;  %v5373_v51 = vld [vmem:[%s6944_s2 + $0x350] sm:$0xff]  }
  0x71   : > { %v1094_v39 = vrot.slane %v1092_v62, 1  ;;  %v1109_v20 = vshrl.u32 %v6146_v7, 16  ;;  %v6174_v44 = vcombine.high %v471_v43, %v6163_v5  ;;  %v6190_v21 = vcombine.low %v483_v37, %v483_v37 }
  0x72   : > { %3247 = vmatmul.mubr.bf16.gmra.mrb[36].mxu0 %v932_v17  ;;  %v830_v17 = vsel %vm650_vm1, %v825_v60, %v829_v6  ;;  %v1130_v4 = vrot.slane %v1128_v19, 1  ;;  %v1113_v22 = vrot.slane %v1111_v36, 1  ;;  %v1116_v24 = vshll.u32 %v6157_v13, 16 }
  0x73   : > { %3254 = vmatprep.mubr.bf16.mxu0 %v941_v35  ;;  %3150 = vmatmul.mubr.bf16.gmra.mrb[36].mxu1 %v782_v0  ;;  %v1090_v35 = vor.u32 %v1089_v8, %v1085_v1  ;;  %v6159_v0 = vor.u32 %v1125_v3, %v1121_v15  ;;  %v6196_v41 = vcombine.high %v484_v40, %v484_v40  ;;  %v1171_v47 = vshll.u32 %v6174_v44, 16  ;;  %v5381_v1 = vld [vmem:[%s6944_s2 + $0x358] sm:$0xff]  }
  0x74   : > { %3157 = vmatprep.mubr.bf16.mxu1 %v818_v58  ;;  %v6161_v58 = vcombine.high %v483_v37, %v483_v37  ;;  %v6182_v12 = vor.u32 %v1113_v22, %v1109_v20  ;;  %v6199_v32 = vcombine.low %v471_v43, %v6163_v5  ;;  %v1118_v25 = vrot.slane %v1116_v24, 1  ;;  %v5379_v15 = vld [vmem:[%s6944_s2 + $0x2d8] sm:$0xff]  }
  0x75   : > { %v1095_v45 = vsel %vm650_vm1, %v1090_v35, %v1094_v39  ;;  %v1140_v57 = vshll.u32 %v6190_v21, 16  ;;  %v1169_v63 = vshrl.u32 %v6174_v44, 16  ;;  %v1176_v55 = vshll.u32 %v6196_v41, 16  ;;  %v5382_v37 = vld [vmem:[%s6944_s2 + $0x318] sm:$0xff]   ;;  %v5389_v35 = vld [vmem:[%s6944_s2 + $0x360] sm:$0xff]  }
  0x76   : > { %v1152_v27 = vshll.u32 %v6161_v58, 16  ;;  %v1159_v18 = vshll.u32 %v6199_v32, 16  ;;  %v1119_v60 = vsel %vm650_vm1, %v6182_v12, %v1118_v25  ;;  %v1173_v6 = vrot.slane %v1171_v47, 1  ;;  %v5380_v43 = vld [vmem:[%s6944_s2 + $0x298] sm:$0xff]  }
  0x77   : > { %v1336_v3 = vrot.slane %v6118_v48, 1  ;;  %v1333_v19 = vrot.slane %v6139_v54, 1  ;;  %v1178_v39 = vrot.slane %v1176_v55, 1  ;;  %v6272_v24 = vld [vmem:[#allocation2 + $0x98] sm:$0xff]  ;;  %v5406_v48 = vld [vmem:[%s6944_s2 + $0x330] sm:$0xff]  }
  0x78   : > { %v1154_v49 = vrot.slane %v1152_v27, 1  ;;  %v6269_v20 = vor.u32 %v1173_v6, %v1169_v63  ;;  %v1161_v22 = vrot.slane %v1159_v18, 1  ;;  %v421_v27 = vld [vmem:[%s6261_s11 + $0x10] sm:$0x11]  ;;  %v489_v63 = vld [vmem:[#allocation2 + $0x18] sm:$0xee] }
  0x79   : > { %428 = vst [vmem:[#allocation2 + $0xd0] sm:$0x11] %v421_v27  ;;  %v4308_v6 = vcombine.high %v489_v63, %v6098_v16 }
  0x7a   : > { %3255 = vmatmul.mubr.bf16.gmra.mrb[40].mxu0 %v938_v34  ;;  %v6201_v34 = vcombine.low %v484_v40, %v484_v40  ;;  %v1155_v8 = vsel %vm650_vm1, %v6000_v30, %v1154_v49  ;;  %v1157_v30 = vshrl.u32 %v6199_v32, 16  ;;  %v6275_v40 = vld [vmem:[%s6261_s11] sm:$0xff] }
  0x7b   : > { %3262 = vmatprep.mubr.bf16.mxu0 %v947_v29  ;;  %3158 = vmatmul.mubr.bf16.gmra.mrb[40].mxu1 %v806_v53  ;;  %v5368_v29 = vld [vmem:[%s6944_s2 + $0x308] sm:$0xff]   ;;  %v5371_v53 = vld [vmem:[%s6944_s2 + $0x2d0] sm:$0xff]   ;;  %426 = vst [vmem:[#allocation2 + $0xc0] sm:$0xff] %v6275_v40  ;;  %v486_v49 = vld [vmem:[#allocation2 + $0xa0] sm:$0x11] }
  0x7c   : > { %3165 = vmatprep.mubr.bf16.mxu1 %v842_v2  ;;  %v473_v2 = vld [vmem:[#allocation2 + $0x78] sm:$0xff]  ;;  %v1164_v56 = vshll.u32 %v6201_v34, 16 }
  0x7d   : > { %v6237_v62 = vcombine.high %v473_v2, %v6223_v52 }
  0x7f   : > { %v1193_v25 = vshrl.u32 %v6237_v62, 16 }
  0x82   : > { %3263 = vmatmul.mubr.bf16.gmra.mrb[44].mxu0 %v944_v9  ;;  %v485_v9 = vld [vmem:[#allocation2 + $0x88] sm:$0x11] }
  0x83   : > { %3400 = vmatprep.mubr.bf16.mxu0 %v1107_v14  ;;  %3166 = vmatmul.mubr.bf16.gmra.mrb[44].mxu1 %v830_v17  ;;  %v5372_v14 = vld [vmem:[%s6944_s2 + $0x290] sm:$0xff]   ;;  %v1142_v17 = vrot.slane %v1140_v57, 1  ;;  %v6251_v36 = vcombine.high %v485_v9, %v485_v9  ;;  %v6315_v18 = vcombine.low %v485_v9, %v485_v9  ;;  %v5396_v9 = vld [vmem:[%s6944_s2 + $0x2a8] sm:$0xff]  }
  0x84   : > { %3303 = vmatprep.mubr.bf16.mxu1 %v6110_v61  ;;  %v1131_v61 = vsel %vm650_vm1, %v6159_v0, %v1130_v4  ;;  %v6266_v4 = vld [vmem:[#allocation2 + $0x90] sm:$0xff] }
  0x85   : > { %v6302_v47 = vcombine.high %v6266_v4, %v6272_v24 }
  0x87   : > { %v1217_v27 = vshrl.u32 %v6302_v47, 16 }
  0x8a   : > { %3401 = vmatmul.mubr.bf16.vlgmr.msra.gmra.mrb[48].mxu0 %v1095_v45  ;;  %v1166_v45 = vrot.slane %v1164_v56, 1  ;;  %v5398_v56 = vld [vmem:[%s6944_s2 + $0x328] sm:$0xff]  }
  0x8b   : > { %4991 = vmatpush3.bf16.msra.mxu0 %v5360_v11  ;;  %3408 = vmatprep.mubr.bf16.mxu0 %v1131_v61  ;;  %v1195_v11 = vshll.u32 %v6237_v62, 16  ;;  %v6278_v61 = vld [vmem:[%s6261_s11 + $0x8] sm:$0xff] }
  0x8c   : > { %3304 = vmatmul.mubr.bf16.vlgmr.msra.gmra.mrb[48].mxu1 %v6127_v38  ;;  %4992 = vmatprep.subr.bf16.mxu0 %v5367_v26  ;;  %v5374_v38 = vld [vmem:[%s6944_s2 + $0x310] sm:$0xff]   ;;  %v6282_v26 = vcombine.low %v473_v2, %v6223_v52  ;;  %427 = vst [vmem:[#allocation2 + $0xc8] sm:$0xff] %v6278_v61  ;;  %v6309_v2 = vor.u32 %v1161_v22, %v1157_v30 }
  0x8d   : > { %4927 = vmatpush3.bf16.msra.mxu1 %v5358_v23  ;;  %3311 = vmatprep.mubr.bf16.mxu1 %v6133_v50  ;;  %v1200_v23 = vshll.u32 %v6251_v36, 16 }
  0x8e   : > { %4928 = vmatprep.subr.bf16.mxu1 %v5365_v31  ;;  %v5387_v31 = vld [vmem:[%s6944_s2 + $0x2e0] sm:$0xff]   ;;  %v1183_v57 = vshll.u32 %v6282_v26, 16  ;;  %v1167_v30 = vsel %vm650_vm1, %v6309_v2, %v1166_v45 }
  0x8f   : > { %4993 = vmatpush3.bf16.msra.mxu0 %v5368_v29  ;;  %v5390_v29 = vld [vmem:[%s6944_s2 + $0x320] sm:$0xff]   ;;  %v1202_v55 = vrot.slane %v1200_v23, 1 }
  0x90   : > { %4994 = vmatprep.subr.bf16.mxu0 %v5373_v51  ;;  %v5397_v51 = vld [vmem:[%s6944_s2 + $0x368] sm:$0xff]  }
  0x91   : > { %4929 = vmatpush3.bf16.msra.mxu1 %v5366_v42  ;;  %v5388_v42 = vld [vmem:[%s6944_s2 + $0x2a0] sm:$0xff]  }
  0x92   : > { %3409 = vmatmul.mubr.bf16.gmra.mrb[52].mxu0 %v1119_v60  ;;  %4930 = vmatprep.subr.bf16.mxu1 %v5371_v53  ;;  %v1179_v53 = vsel %vm650_vm1, %v6269_v20, %v1178_v39  ;;  %v4307_v60 = vcombine.low %v489_v63, %v6098_v16  ;;  %v1181_v39 = vshrl.u32 %v6282_v26, 16 }
  0x93   : > { %3416 = vmatprep.mubr.bf16.mxu0 %v1155_v8  ;;  %4995 = vmatpush3.bf16.msra.mxu0 %v5374_v38  ;;  %v5395_v38 = vld [vmem:[%s6944_s2 + $0x2e8] sm:$0xff]   ;;  %v6323_v8 = vcombine.high %v486_v49, %v486_v49 }
  0x94   : > { %3312 = vmatmul.mubr.bf16.gmra.mrb[52].mxu1 %v6146_v7  ;;  %4996 = vmatprep.subr.bf16.mxu0 %v5381_v1  ;;  %v1219_v1 = vshll.u32 %v6302_v47, 16  ;;  %v1332_v16 = vrot.slane %v4307_v60, 1 }
  0x95   : > { %3319 = vmatprep.mubr.bf16.mxu1 %v5831_v10  ;;  %4931 = vmatpush3.bf16.msra.mxu1 %v5372_v14  ;;  %v1143_v10 = vsel %vm650_vm1, %v6023_v46, %v1142_v17  ;;  %v1197_v46 = vrot.slane %v1195_v11, 1  ;;  %v5405_v14 = vld [vmem:[%s6944_s2 + $0x370] sm:$0xff]   ;;  %v1335_v17 = vrot.slane %v4308_v6, 1  ;;  %v1185_v11 = vrot.slane %v1183_v57, 1  ;;  %v5414_v57 = vld [vmem:[%s6944_s2 + $0x338] sm:$0xff]  }
  0x96   : > { %4932 = vmatprep.subr.bf16.mxu1 %v5379_v15  ;;  %v6352_v45 = vsel %vm899_vm0, %v1332_v16, %v1333_v19  ;;  %v1224_v23 = vshll.u32 %v6323_v8, 16  ;;  %v5412_v6 = vld [vmem:[%s6944_s2 + $0x2b8] sm:$0xff]  }
  0x97   : > { %4997 = vmatpush3.bf16.msra.mxu0 %v5382_v37  ;;  %v6332_v15 = vor.u32 %v1197_v46, %v1193_v25  ;;  %v477_v37 = vld [vmem:[#allocation2 + $0xa8] sm:$0xff]  ;;  %v6347_v22 = vsel %vm899_vm0, %v1335_v17, %v1336_v3  ;;  %v1221_v3 = vrot.slane %v1219_v1, 1  ;;  %v5413_v25 = vld [vmem:[%s6944_s2 + $0x378] sm:$0xff]   ;;  %v6379_v46 = vor.u32 %v1185_v11, %v1181_v39 }
  0x98   : > { %4998 = vmatprep.subr.bf16.mxu0 %v5389_v35  ;;  %v6337_v35 = vld [vmem:[#allocation2 + $0xb0] sm:$0xff]  ;;  %v6414_v11 = vcombine.high %v6275_v40, %v6278_v61 }
  0x99   : > { %4933 = vmatpush3.bf16.msra.mxu1 %v5380_v43  ;;  %v1188_v43 = vshll.u32 %v6315_v18, 16  ;;  %v1203_v54 = vsel %vm650_vm1, %v6332_v15, %v1202_v55  ;;  %v6366_v19 = vcombine.high %v477_v37, %v6337_v35 }
  0x9a   : > { %3417 = vmatmul.mubr.bf16.gmra.mrb[56].mxu0 %v1143_v10  ;;  %4934 = vmatprep.subr.bf16.mxu1 %v5387_v31  ;;  %v6358_v31 = vcombine.low %v6266_v4, %v6272_v24  ;;  %v487_v10 = vld [vmem:[#allocation2 + $0xb8] sm:$0x11]  ;;  %v5404_v4 = vld [vmem:[%s6944_s2 + $0x2b0] sm:$0xff]  }
  0x9b   : > { %3424 = vmatprep.mubr.bf16.mxu0 %v1179_v53  ;;  %4999 = vmatpush3.bf16.msra.mxu0 %v5390_v29  ;;  %v6374_v29 = vcombine.low %v486_v49, %v486_v49  ;;  %v5411_v53 = vld [vmem:[%s6944_s2 + $0x2f8] sm:$0xff]   ;;  %v1226_v49 = vrot.slane %v1224_v23, 1  ;;  %v1243_v63 = vshll.u32 %v6366_v19, 16  ;;  %v6389_v55 = vcombine.high %v487_v10, %v487_v10 }
  0x9c   : > { %3320 = vmatmul.mubr.bf16.gmra.mrb[56].mxu1 %v5862_v28  ;;  %5000 = vmatprep.subr.bf16.mxu0 %v5397_v51  ;;  %v5403_v28 = vld [vmem:[%s6944_s2 + $0x2f0] sm:$0xff]   ;;  %v1207_v51 = vshll.u32 %v6358_v31, 16  ;;  %v1205_v60 = vshrl.u32 %v6358_v31, 16  ;;  %v1241_v17 = vshrl.u32 %v6366_v19, 16  ;;  %v6416_v23 = vcombine.low %v487_v10, %v487_v10 }
  0x9d   : > { %3327 = vmatprep.mubr.bf16.mxu1 %v6174_v44  ;;  %4935 = vmatpush3.bf16.msra.mxu1 %v5388_v42  ;;  %v1190_v42 = vrot.slane %v1188_v43, 1  ;;  %v1212_v1 = vshll.u32 %v6374_v29, 16  ;;  %v1245_v43 = vrot.slane %v1243_v63, 1  ;;  %v6435_v63 = vcombine.low %v6275_v40, %v6278_v61 }
  0x9e   : > { %4936 = vmatprep.subr.bf16.mxu1 %v5395_v38  ;;  %v6386_v38 = vor.u32 %v1221_v3, %v1217_v27  ;;  %v1209_v16 = vrot.slane %v1207_v51, 1  ;;  %v488_v27 = vld [vmem:[#allocation2 + $0xd0] sm:$0x11] }
  0x9f   : > { %5001 = vmatpush3.bf16.msra.mxu0 %v5398_v56  ;;  %v5419_v56 = vld [vmem:[%s6944_s2 + $0x440] sm:$0xff]   ;;  %v6422_v3 = vor.u32 %v1245_v43, %v1241_v17 }
  0xa0   : > { %5002 = vmatprep.subr.bf16.mxu0 %v5405_v14  ;;  %v1191_v14 = vsel %vm650_vm1, %v6379_v46, %v1190_v42  ;;  %v1227_v39 = vsel %vm650_vm1, %v6386_v38, %v1226_v49  ;;  %v6425_v42 = vcombine.high %v488_v27, %v488_v27  ;;  %v1265_v49 = vshrl.u32 %v6414_v11, 16 }
  0xa1   : > { %4937 = vmatpush3.bf16.msra.mxu1 %v5396_v9  ;;  %v5417_v9 = vld [vmem:[%s6944_s2 + $0x3c0] sm:$0xff]  }
  0xa2   : > { %3425 = vmatmul.mubr.bf16.gmra.mrb[60].mxu0 %v1167_v30  ;;  %4938 = vmatprep.subr.bf16.mxu1 %v5403_v28  ;;  %v6407_v30 = vcombine.low %v477_v37, %v6337_v35  ;;  %v1248_v28 = vshll.u32 %v6389_v55, 16  ;;  %v6418_v37 = vor.u32 %v1209_v16, %v1205_v60  ;;  %v6443_v16 = vcombine.low %v488_v27, %v488_v27 }
  0xa3   : > { %3432 = vmatprep.mubr.bf16.mxu0 %v1203_v54  ;;  %5003 = vmatpush3.bf16.msra.mxu0 %v5406_v48  ;;  %v1214_v48 = vrot.slane %v1212_v1, 1 }
  0xa4   : > { %3328 = vmatmul.mubr.bf16.gmra.mrb[60].mxu1 %v6199_v32  ;;  %5004 = vmatprep.subr.bf16.mxu0 %v5413_v25  ;;  %v1231_v54 = vshll.u32 %v6407_v30, 16  ;;  %v1250_v25 = vrot.slane %v1248_v28, 1  ;;  %v1229_v10 = vshrl.u32 %v6407_v30, 16 }
  0xa5   : > { %3335 = vmatprep.mubr.bf16.mxu1 %v6237_v62  ;;  %4939 = vmatpush3.bf16.msra.mxu1 %v5404_v4  ;;  %v1267_v4 = vshll.u32 %v6414_v11, 16  ;;  %v1215_v51 = vsel %vm650_vm1, %v6418_v37, %v1214_v48  ;;  %v1260_v48 = vshll.u32 %v6443_v16, 16 }
  0xa6   : > { %4940 = vmatprep.subr.bf16.mxu1 %v5411_v53  ;;  %v1236_v53 = vshll.u32 %v6416_v23, 16 }
  0xa7   : > { %5005 = vmatpush3.bf16.msra.mxu0 %v5414_v57  ;;  %v1233_v57 = vrot.slane %v1231_v54, 1  ;;  %v1269_v60 = vrot.slane %v1267_v4, 1  ;;  %v6458_v4 = vld [vmem:[%s6261_s11 + $0x18] sm:$0xff] }
  0xa8   : > { %5118 = vmatprep.subr.bf16.mxu0 %v5419_v56  ;;  %v1251_v56 = vsel %vm650_vm1, %v6422_v3, %v1250_v25  ;;  %v1262_v25 = vrot.slane %v1260_v48, 1  ;;  %429 = vst [vmem:[#allocation2 + $0xd8] sm:$0xff] %v6458_v4  ;;  %v5425_v48 = vld [vmem:[%s6944_s2 + $0x3c8] sm:$0xff]  }
  0xa9   : > { %4941 = vmatpush3.bf16.msra.mxu1 %v5412_v6  ;;  %v1272_v6 = vshll.u32 %v6425_v42, 16  ;;  %v6440_v1 = vor.u32 %v1233_v57, %v1229_v10  ;;  %v6446_v40 = vor.u32 %v1269_v60, %v1265_v49  ;;  %v6462_v10 = vld [vmem:[%s6261_s11 + $0x20] sm:$0xff]  ;;  %v490_v57 = vld [vmem:[#allocation2 + $0x30] sm:$0xee] }
  0xaa   : > { %3433 = vmatmul.mubr.bf16.gmra.mrb[64].mxu0 %v1191_v14  ;;  %5054 = vmatprep.subr.bf16.mxu1 %v5417_v9  ;;  %v1238_v9 = vrot.slane %v1236_v53, 1  ;;  %v1255_v14 = vshll.u32 %v6435_v63, 16  ;;  %v6468_v53 = vcombine.low %v6458_v4, %v6462_v10  ;;  %v4310_v49 = vcombine.high %v490_v57, %v6121_v33  ;;  %v6475_v60 = vld [vmem:[#allocation2 + $0x50] sm:$0xff] }
  0xab   : > { %3440 = vmatprep.mubr.bf16.mxu0 %v1227_v39  ;;  %v1274_v17 = vrot.slane %v1272_v6, 1  ;;  %v1253_v39 = vshrl.u32 %v6435_v63, 16 }
  0xac   : > { %3336 = vmatmul.mubr.bf16.gmra.mrb[64].mxu1 %v6282_v26  ;;  %v1239_v43 = vsel %vm650_vm1, %v6440_v1, %v1238_v9  ;;  %v1257_v28 = vrot.slane %v1255_v14, 1  ;;  %v1341_v6 = vrot.slane %v4310_v49, 1  ;;  %v1342_v9 = vrot.slane %v6142_v59, 1  ;;  %v5420_v14 = vld [vmem:[%s6944_s2 + $0x400] sm:$0xff]   ;;  %v5426_v49 = vld [vmem:[%s6944_s2 + $0x388] sm:$0xff]  }
  0xad   : > { %3343 = vmatprep.mubr.bf16.mxu1 %v6302_v47  ;;  %v1275_v27 = vsel %vm650_vm1, %v6446_v40, %v1274_v17 }
  0xae   : > { %v6455_v54 = vor.u32 %v1257_v28, %v1253_v39  ;;  %v491_v39 = vld [vmem:[#allocation2 + $0x48] sm:$0xee]  ;;  %v4309_v28 = vcombine.low %v490_v57, %v6121_v33  ;;  %v1343_v59 = vsel %vm899_vm0, %v1341_v6, %v1342_v9  ;;  %v5431_v33 = vld [vmem:[%s6944_s2 + $0x450] sm:$0xff]   ;;  %v1339_v57 = vrot.slane %v6157_v13, 1 }
  0xaf   : > { %v5432_v13 = vld [vmem:[%s6944_s2 + $0x410] sm:$0xff]  }
  0xb2   : > { %3441 = vmatmul.mubr.bf16.gmra.mrb[68].mxu0 %v1215_v51  ;;  %v1263_v51 = vsel %vm650_vm1, %v6455_v54, %v1262_v25 }
  0xb3   : > { %3448 = vmatprep.mubr.bf16.mxu0 %v1251_v56  ;;  %v500_v56 = vld [vmem:[#allocation2 + $0x48] sm:$0xff] }
  0xb4   : > { %3344 = vmatmul.mubr.bf16.gmra.mrb[68].mxu1 %v6358_v31  ;;  %v6483_v17 = vcombine.high %v500_v56, %v6475_v60  ;;  %v6511_v6 = vcombine.low %v500_v56, %v6475_v60  ;;  %v5437_v56 = vld [vmem:[%s6944_s2 + $0x458] sm:$0xff]  }
  0xb5   : > { %3351 = vmatprep.mubr.bf16.mxu1 %v6366_v19 }
  0xba   : > { %3449 = vmatmul.mubr.bf16.gmra.mrb[72].mxu0 %v1239_v43  ;;  %v424_v43 = vld [vmem:[%s6261_s11 + $0x28] sm:$0x11]  ;;  %s4223_s11 = sshll.u32 %s6960_s22, 5 }
  0xbb   : > { %3456 = vmatprep.mubr.bf16.mxu0 %v1275_v27  ;;  %431 = vst [vmem:[#allocation2 + $0xe8] sm:$0x11] %v424_v43  ;;  %v5491_v27 = vld [vmem:[#allocation2 + $0x50] sm:$0xff]  ;;  %s358_s26 = sadd.s32 %s4223_s11, %s4222_s20 }
  0xbc   : > { %3352 = vmatmul.mubr.bf16.gmra.mrb[72].mxu1 %v6407_v30  ;;  %v4312_v25 = vcombine.high %v491_v39, %v5491_v27  ;;  %s4224_s29 = sshll.u32 %s358_s26, 2 }
  0xbd   : > { %3359 = vmatprep.mubr.bf16.mxu1 %v6414_v11  ;;  %s6891_s7 = scalar_lea.vmem %s6947_s5, %s4224_s29 }
  0xbe   : > { %v1347_v9 = vrot.slane %v4312_v25, 1 }
  0xc2   : > { %3457 = vmatmul.mubr.bf16.gmra.mrb[76].mxu0 %v1263_v51  ;;  %v5428_v51 = vld [vmem:[%s6944_s2 + $0x408] sm:$0xff]  }
  0xc3   : > { %3594 = vmatprep.mubr.bf16.mxu0 %v6133_v50  ;;  %v5427_v50 = vld [vmem:[%s6944_s2 + $0x448] sm:$0xff]  }
  0xc4   : > { %3360 = vmatmul.mubr.bf16.gmra.mrb[76].mxu1 %v6435_v63 }
  0xc5   : > { %3497 = vmatprep.mubr.bf16.mxu1 %v6347_v22  ;;  %v5418_v22 = vld [vmem:[%s6944_s2 + $0x380] sm:$0xff]  }
  0xca   : > { %3595 = vmatmul.mubr.bf16.vlgmr.msra.gmra.mrb[80].mxu0 %v6146_v7  ;;  %v1338_v7 = vrot.slane %v4309_v28, 1 }
  0xcb   : > { %5119 = vmatpush3.bf16.msra.mxu0 %v5420_v14  ;;  %3602 = vmatprep.mubr.bf16.mxu0 %v6483_v17  ;;  %v5429_v14 = vld [vmem:[%s6944_s2 + $0x3d0] sm:$0xff]  }
  0xcc   : > { %3498 = vmatmul.mubr.bf16.vlgmr.msra.gmra.mrb[80].mxu1 %v6352_v45  ;;  %5120 = vmatprep.subr.bf16.mxu0 %v5427_v50  ;;  %v1348_v45 = vrot.slane %v6161_v58, 1  ;;  %v492_v50 = vld [vmem:[#allocation2 + $0x60] sm:$0xee]  ;;  %v1340_v43 = vsel %vm899_vm0, %v1338_v7, %v1339_v57  ;;  %v5430_v58 = vld [vmem:[%s6944_s2 + $0x390] sm:$0xff]   ;;  %v1354_v7 = vrot.slane %v6196_v41, 1 }
  0xcd   : > { %5055 = vmatpush3.bf16.msra.mxu1 %v5418_v22  ;;  %3505 = vmatprep.mubr.bf16.mxu1 %v1343_v59  ;;  %v4311_v22 = vcombine.low %v491_v39, %v5491_v27  ;;  %v4314_v59 = vcombine.high %v492_v50, %v6163_v5  ;;  %v5438_v39 = vld [vmem:[%s6944_s2 + $0x418] sm:$0xff]   ;;  %v5443_v27 = vld [vmem:[%s6944_s2 + $0x460] sm:$0xff]   ;;  %v4313_v41 = vcombine.low %v492_v50, %v6163_v5  ;;  %v5450_v5 = vld [vmem:[%s6944_s2 + $0x428] sm:$0xff]  }
  0xce   : > { %5056 = vmatprep.subr.bf16.mxu1 %v5425_v48  ;;  %v1349_v28 = vsel %vm899_vm0, %v1347_v9, %v1348_v45  ;;  %v5435_v48 = vld [vmem:[%s6944_s2 + $0x3d8] sm:$0xff]   ;;  %v5441_v57 = vld [vmem:[%s6944_s2 + $0x3e0] sm:$0xff]  }
  0xcf   : > { %5121 = vmatpush3.bf16.msra.mxu0 %v5428_v51  ;;  %v1344_v25 = vrot.slane %v4311_v22, 1  ;;  %v1345_v51 = vrot.slane %v6190_v21, 1  ;;  %v5444_v9 = vld [vmem:[%s6944_s2 + $0x420] sm:$0xff]   ;;  %v5449_v21 = vld [vmem:[%s6944_s2 + $0x468] sm:$0xff]   ;;  %v1350_v50 = vrot.slane %v4313_v41, 1  ;;  %v1351_v22 = vrot.slane %v6201_v34, 1 }
  0xd0   : > { %5122 = vmatprep.subr.bf16.mxu0 %v5431_v33  ;;  %v1353_v33 = vrot.slane %v4314_v59, 1  ;;  %v5453_v59 = vld [vmem:[%s6944_s2 + $0x3f0] sm:$0xff]   ;;  %v5461_v34 = vld [vmem:[%s6944_s2 + $0x478] sm:$0xff]  }
  0xd1   : > { %5057 = vmatpush3.bf16.msra.mxu1 %v5426_v49  ;;  %v493_v49 = vld [vmem:[#allocation2 + $0x78] sm:$0xee]  ;;  %v1346_v45 = vsel %vm899_vm0, %v1344_v25, %v1345_v51  ;;  %v5454_v25 = vld [vmem:[%s6944_s2 + $0x3b0] sm:$0xff]  }
  0xd2   : > { %3603 = vmatmul.mubr.bf16.gmra.mrb[84].mxu0 %v6511_v6  ;;  %5058 = vmatprep.subr.bf16.mxu1 %v5429_v14  ;;  %v5442_v14 = vld [vmem:[%s6944_s2 + $0x3a0] sm:$0xff]  }
  0xd3   : > { %3610 = vmatprep.mubr.bf16.mxu0 %v6174_v44  ;;  %5123 = vmatpush3.bf16.msra.mxu0 %v5432_v13  ;;  %v5436_v44 = vld [vmem:[%s6944_s2 + $0x398] sm:$0xff]   ;;  %v1355_v13 = vsel %vm899_vm0, %v1353_v33, %v1354_v7  ;;  %v1357_v7 = vrot.slane %v6315_v18, 1 }
  0xd4   : > { %3506 = vmatmul.mubr.bf16.gmra.mrb[84].mxu1 %v1340_v43  ;;  %5124 = vmatprep.subr.bf16.mxu0 %v5437_v56  ;;  %v4316_v56 = vcombine.high %v493_v49, %v6223_v52  ;;  %v5447_v43 = vld [vmem:[%s6944_s2 + $0x3e8] sm:$0xff]   ;;  %v5459_v33 = vld [vmem:[%s6944_s2 + $0x3f8] sm:$0xff]  }
  0xd5   : > { %3513 = vmatprep.mubr.bf16.mxu1 %v1349_v28  ;;  %5059 = vmatpush3.bf16.msra.mxu1 %v5430_v58  ;;  %v1360_v28 = vrot.slane %v6251_v36, 1  ;;  %v4315_v36 = vcombine.low %v493_v49, %v6223_v52  ;;  %v5462_v52 = vld [vmem:[%s6944_s2 + $0x438] sm:$0xff]  }
  0xd6   : > { %5060 = vmatprep.subr.bf16.mxu1 %v5435_v48  ;;  %v1359_v58 = vrot.slane %v4316_v56, 1  ;;  %v494_v48 = vld [vmem:[#allocation2 + $0x90] sm:$0xee]  ;;  %v1372_v56 = vrot.slane %v6389_v55, 1 }
  0xd7   : > { %5125 = vmatpush3.bf16.msra.mxu0 %v5438_v39  ;;  %v5456_v39 = vld [vmem:[%s6944_s2 + $0x430] sm:$0xff]  }
  0xd8   : > { %5126 = vmatprep.subr.bf16.mxu0 %v5443_v27  ;;  %v1352_v27 = vsel %vm899_vm0, %v1350_v50, %v1351_v22  ;;  %v1361_v51 = vsel %vm899_vm0, %v1359_v58, %v1360_v28  ;;  %v1369_v50 = vrot.slane %v6416_v23, 1  ;;  %v522_v55 = vld [vmem:[#allocation2 + $0x30] sm:$0xee] }
  0xd9   : > { %5061 = vmatpush3.bf16.msra.mxu1 %v5436_v44  ;;  %v4318_v44 = vcombine.high %v494_v48, %v6272_v24 }
  0xda   : > { %3611 = vmatmul.mubr.bf16.gmra.mrb[88].mxu0 %v6199_v32  ;;  %5062 = vmatprep.subr.bf16.mxu1 %v5441_v57  ;;  %v5455_v32 = vld [vmem:[%s6944_s2 + $0x470] sm:$0xff]   ;;  %v5460_v57 = vld [vmem:[%s6944_s2 + $0x3b8] sm:$0xff]  }
  0xdb   : > { %3618 = vmatprep.mubr.bf16.mxu0 %v6237_v62  ;;  %5127 = vmatpush3.bf16.msra.mxu0 %v5444_v9  ;;  %v5448_v62 = vld [vmem:[%s6944_s2 + $0x3a8] sm:$0xff]   ;;  %v1365_v49 = vrot.slane %v4318_v44, 1  ;;  %v1366_v9 = vrot.slane %v6323_v8, 1  ;;  %v1363_v8 = vrot.slane %v6374_v29, 1 }
  0xdc   : > { %3514 = vmatmul.mubr.bf16.gmra.mrb[88].mxu1 %v1346_v45  ;;  %5128 = vmatprep.subr.bf16.mxu0 %v5449_v21  ;;  %v4317_v45 = vcombine.low %v494_v48, %v6272_v24 }
  0xdd   : > { %3521 = vmatprep.mubr.bf16.mxu1 %v1355_v13  ;;  %5063 = vmatpush3.bf16.msra.mxu1 %v5442_v14  ;;  %v1367_v18 = vsel %vm899_vm0, %v1365_v49, %v1366_v9  ;;  %v523_v9 = vld [vmem:[#allocation2 + $0x48] sm:$0xee] }
  0xde   : > { %5064 = vmatprep.subr.bf16.mxu1 %v5447_v43  ;;  %v1362_v14 = vrot.slane %v4317_v45, 1  ;;  %v496_v43 = vld [vmem:[#allocation2 + $0xc0] sm:$0xee] }
  0xdf   : > { %5129 = vmatpush3.bf16.msra.mxu0 %v5450_v5 }
  0xe0   : > { %5130 = vmatprep.subr.bf16.mxu0 %v5455_v32  ;;  %v1364_v24 = vsel %vm899_vm0, %v1362_v14, %v1363_v8  ;;  %v4322_v32 = vcombine.high %v496_v43, %v6278_v61  ;;  %v4358_v8 = vcombine.high %v523_v9, %v6475_v60 }
  0xe1   : > { %5065 = vmatpush3.bf16.msra.mxu1 %v5448_v62  ;;  %v1378_v62 = vrot.slane %v6425_v42, 1  ;;  %v1555_v42 = vshll.u32 %v6483_v17, 16 }
  0xe2   : > { %3619 = vmatmul.mubr.bf16.gmra.mrb[92].mxu0 %v6282_v26  ;;  %5066 = vmatprep.subr.bf16.mxu1 %v5453_v59  ;;  %v1356_v26 = vrot.slane %v4315_v36, 1  ;;  %v1377_v22 = vrot.slane %v4322_v32, 1 }
  0xe3   : > { %3626 = vmatprep.mubr.bf16.mxu0 %v6302_v47  ;;  %5131 = vmatpush3.bf16.msra.mxu0 %v5456_v39  ;;  %v495_v47 = vld [vmem:[#allocation2 + $0xa8] sm:$0xee] }
  0xe4   : > { %3522 = vmatmul.mubr.bf16.gmra.mrb[92].mxu1 %v1352_v27  ;;  %5132 = vmatprep.subr.bf16.mxu0 %v5461_v34  ;;  %v1358_v21 = vsel %vm899_vm0, %v1356_v26, %v1357_v7  ;;  %v4320_v41 = vcombine.high %v495_v47, %v6337_v35  ;;  %v4319_v5 = vcombine.low %v495_v47, %v6337_v35 }
  0xe5   : > { %3529 = vmatprep.mubr.bf16.mxu1 %v1361_v51  ;;  %5067 = vmatpush3.bf16.msra.mxu1 %v5454_v25  ;;  %v6624_v35 = vcombine.high %v6458_v4, %v6462_v10  ;;  %v1379_v23 = vsel %vm899_vm0, %v1377_v22, %v1378_v62  ;;  %v515_v4 = vld [vmem:[#allocation2 + $0x58] sm:$0x11]  ;;  %v516_v62 = vld [vmem:[#allocation2 + $0x70] sm:$0x11] }
  0xe6   : > { %5068 = vmatprep.subr.bf16.mxu1 %v5459_v33  ;;  %v1371_v13 = vrot.slane %v4320_v41, 1  ;;  %v1368_v29 = vrot.slane %v4319_v5, 1 }
  0xe7   : > { %5133 = vmatpush3.bf16.msra.mxu0 %v5462_v52 }
  0xe8   : > { %v1370_v59 = vsel %vm899_vm0, %v1368_v29, %v1369_v50 }
  0xe9   : > { %5069 = vmatpush3.bf16.msra.mxu1 %v5460_v57  ;;  %v1375_v57 = vrot.slane %v6443_v16, 1  ;;  %v1543_v16 = vshll.u32 %v6511_v6, 16 }
  0xea   : > { %3627 = vmatmul.mubr.bf16.gmra.mrb[96].mxu0 %v6358_v31  ;;  %v1373_v31 = vsel %vm899_vm0, %v1371_v13, %v1372_v56 }
  0xeb   : > { %3634 = vmatprep.mubr.bf16.mxu0 %v6366_v19  ;;  %v514_v19 = vld [vmem:[#allocation2 + $0x40] sm:$0x11] }
  0xec   : > { %3530 = vmatmul.mubr.bf16.gmra.mrb[96].mxu1 %v1358_v21  ;;  %v4340_v58 = vcombine.high %v514_v19, %v514_v19  ;;  %v4339_v49 = vcombine.low %v514_v19, %v514_v19 }
  0xed   : > { %3537 = vmatprep.mubr.bf16.mxu1 %v1367_v18  ;;  %v4342_v18 = vcombine.high %v515_v4, %v515_v4 }
  0xee   : > { %v1536_v34 = vshll.u32 %v4340_v58, 16  ;;  %v1768_v33 = vrot.slane %v4340_v58, 1  ;;  %v1524_v56 = vshll.u32 %v4339_v49, 16  ;;  %v1765_v22 = vrot.slane %v4339_v49, 1 }
  0xef   : > { %v1560_v19 = vshll.u32 %v4342_v18, 16 }
  0xf0   : > { %v1538_v45 = vrot.slane %v1536_v34, 1  ;;  %v4341_v34 = vcombine.low %v515_v4, %v515_v4 }
  0xf2   : > { %3635 = vmatmul.mubr.bf16.gmra.mrb[100].mxu0 %v6407_v30  ;;  %v5492_v30 = vld [vmem:[#allocation2 + $0x38] sm:$0xff]  ;;  %v1539_v32 = vsel %vm650_vm1, %v6159_v0, %v1538_v45  ;;  %v1526_v0 = vrot.slane %v1524_v56, 1  ;;  %v1548_v45 = vshll.u32 %v4341_v34, 16 }
  0xf3   : > { %3642 = vmatprep.mubr.bf16.mxu0 %v6414_v11  ;;  %v4356_v28 = vcombine.high %v522_v55, %v5492_v30  ;;  %v4321_v11 = vcombine.low %v496_v43, %v6278_v61  ;;  %v4355_v41 = vcombine.low %v522_v55, %v5492_v30  ;;  %v1553_v43 = vshrl.u32 %v6483_v17, 16 }
  0xf4   : > { %3538 = vmatmul.mubr.bf16.gmra.mrb[100].mxu1 %v1364_v24  ;;  %v1557_v24 = vrot.slane %v1555_v42, 1  ;;  %v524_v42 = vld [vmem:[#allocation2 + $0x60] sm:$0xee]  ;;  %v1527_v4 = vsel %vm650_vm1, %v6182_v12, %v1526_v0 }
  0xf5   : > { %3545 = vmatprep.mubr.bf16.mxu1 %v1373_v31  ;;  %v1374_v7 = vrot.slane %v4321_v11, 1  ;;  %v1764_v55 = vrot.slane %v4355_v41, 1  ;;  %v1774_v11 = vrot.slane %v4342_v18, 1 }
  0xf7   : > { %v1376_v13 = vsel %vm899_vm0, %v1374_v7, %v1375_v57  ;;  %v1545_v7 = vrot.slane %v1543_v16, 1  ;;  %v5493_v57 = vld [vmem:[#allocation2 + $0x68] sm:$0xff] }
  0xf8   : > { %v4360_v49 = vcombine.high %v524_v42, %v5493_v57 }
  0xfa   : > { %3643 = vmatmul.mubr.bf16.gmra.mrb[104].mxu0 %v6435_v63  ;;  %v1767_v63 = vrot.slane %v4356_v28, 1 }
  0xfb   : > { %3650 = vmatprep.mubr.bf16.mxu0 %v6624_v35 }
  0xfc   : > { %3546 = vmatmul.mubr.bf16.gmra.mrb[104].mxu1 %v1370_v59  ;;  %v1769_v14 = vsel %vm899_vm0, %v1767_v63, %v1768_v33  ;;  %v1773_v59 = vrot.slane %v4358_v8, 1  ;;  %v1766_v63 = vsel %vm899_vm0, %v1764_v55, %v1765_v22  ;;  %v4357_v33 = vcombine.low %v523_v9, %v6475_v60  ;;  %v525_v22 = vld [vmem:[#allocation2 + $0x78] sm:$0xee] }
  0xfd   : > { %v4622_v48 = vpop.f32.mrb[0].mxu0  ;;  %v4646_v39 = vpop.f32.mrb[0].mxu1  ;;  %3553 = vmatprep.mubr.bf16.mxu1 %v1379_v23  ;;  %v1558_v23 = vor.u32 %v1557_v24, %v1553_v43  ;;  %v1771_v9 = vrot.slane %v4341_v34, 1  ;;  %v517_v43 = vld [vmem:[#allocation2 + $0x88] sm:$0x11]  ;;  %v4343_v55 = vcombine.low %v516_v62, %v516_v62 }
  0xfe   : > { %v4623_v27 = vpop.f32.mrb[1].mxu0  ;;  %v4647_v36 = vpop.f32.mrb[1].mxu1  ;;  %v1770_v60 = vrot.slane %v4357_v33, 1 }
  0xff   : > { %v6632_v25 = vadd.f32 %v4623_v27, %v4622_v48  ;;  %v6634_v51 = vadd.f32 %v4647_v36, %v4646_v39  ;;  %v4625_v61 = vpop.f32.mrb[2].mxu0  ;;  %v4649_v44 = vpop.f32.mrb[2].mxu1 }
 0x100   : > { %v4626_v52 = vpop.f32.mrb[3].mxu0  ;;  %v4650_v26 = vpop.f32.mrb[3].mxu1 }
 0x101   : > { %v6637_v47 = vadd.f32 %v4626_v52, %v4625_v61  ;;  %v6639_v21 = vadd.f32 %v4650_v26, %v4649_v44  ;;  %v1562_v61 = vrot.slane %v1560_v19, 1  ;;  %v4344_v44 = vcombine.high %v516_v62, %v516_v62 }
 0x102   : > { %3651 = vmatmul.mubr.bf16.gmra.mrb[108].mxu0 %v6468_v53  ;;  %v1775_v52 = vsel %vm899_vm0, %v1773_v59, %v1774_v11  ;;  %v1541_v26 = vshrl.u32 %v6511_v6, 16  ;;  %v4346_v11 = vcombine.high %v517_v43, %v517_v43 }
 0x103   : > { %3788 = vmatprep.mubr.bf16.mxu0 %v1769_v14  ;;  %v1563_v14 = vsel %vm650_vm1, %v1558_v23, %v1562_v61  ;;  %v1584_v8 = vshll.u32 %v4344_v44, 16  ;;  %v5494_v23 = vld [vmem:[#allocation2 + $0x80] sm:$0xff] }
 0x104   : > { %3554 = vmatmul.mubr.bf16.gmra.mrb[108].mxu1 %v1376_v13  ;;  %v4362_v34 = vcombine.high %v525_v22, %v5494_v23 }
 0x105   : > { %v4628_v5 = vpop.f32.mrb[4].mxu0  ;;  %v4652_v31 = vpop.f32.mrb[4].mxu1  ;;  %3691 = vmatprep.mubr.bf16.mxu1 %v1539_v32  ;;  %v1586_v59 = vrot.slane %v1584_v8, 1 }
 0x106   : > { %v4629_v29 = vpop.f32.mrb[5].mxu0  ;;  %v4653_v50 = vpop.f32.mrb[5].mxu1  ;;  %v1785_v8 = vrot.slane %v4362_v34, 1 }
 0x107   : > { %v6649_v58 = vadd.f32 %v4629_v29, %v4628_v5  ;;  %v6651_v17 = vadd.f32 %v4653_v50, %v4652_v31  ;;  %v4631_v30 = vpop.f32.mrb[6].mxu0  ;;  %v4655_v28 = vpop.f32.mrb[6].mxu1  ;;  %v1779_v5 = vrot.slane %v4360_v49, 1  ;;  %v1780_v31 = vrot.slane %v4344_v44, 1 }
 0x108   : > { %v4632_v48 = vpop.f32.mrb[7].mxu0  ;;  %v4656_v39 = vpop.f32.mrb[7].mxu1  ;;  %v1546_v29 = vor.u32 %v1545_v7, %v1541_v26  ;;  %v1550_v50 = vrot.slane %v1548_v45, 1  ;;  %v1572_v44 = vshll.u32 %v4343_v55, 16  ;;  %v1587_v33 = vsel %vm650_vm1, %v6269_v20, %v1586_v59  ;;  %v518_v26 = vld [vmem:[#allocation2 + $0xa0] sm:$0x11] }
 0x109   : > { %v6653_v27 = vadd.f32 %v4632_v48, %v4631_v30  ;;  %v6655_v36 = vadd.f32 %v4656_v39, %v4655_v28  ;;  %v1772_v48 = vsel %vm899_vm0, %v1770_v60, %v1771_v9  ;;  %v4359_v39 = vcombine.low %v524_v42, %v5493_v57  ;;  %v526_v9 = vld [vmem:[#allocation2 + $0x90] sm:$0xee] }
 0x10a   : > { %3789 = vmatmul.mubr.bf16.vlgmr.msra.gmra.mrb[112].mxu0 %v1766_v63  ;;  %v1781_v0 = vsel %vm899_vm0, %v1779_v5, %v1780_v31  ;;  %v1551_v61 = vsel %vm650_vm1, %v1546_v29, %v1550_v50  ;;  %v1777_v42 = vrot.slane %v4343_v55, 1  ;;  %v1786_v57 = vrot.slane %v4346_v11, 1  ;;  %v5495_v55 = vld [vmem:[#allocation2 + $0x98] sm:$0xff] }
 0x10b   : > { %3796 = vmatprep.mubr.bf16.mxu0 %v1775_v52  ;;  %v1608_v52 = vshll.u32 %v4346_v11, 16  ;;  %v1574_v20 = vrot.slane %v1572_v44, 1  ;;  %v4348_v31 = vcombine.high %v518_v26, %v518_v26  ;;  %v4364_v59 = vcombine.high %v526_v9, %v5495_v55 }
 0x10c   : > { %3692 = vmatmul.mubr.bf16.vlgmr.msra.gmra.mrb[112].mxu1 %v1527_v4  ;;  %v1776_v4 = vrot.slane %v4359_v39, 1  ;;  %v1787_v29 = vsel %vm899_vm0, %v1785_v8, %v1786_v57  ;;  %v6689_v11 = vcombine.low %v518_v26, %v518_v26 }
 0x10d   : > { %v4634_v18 = vpop.f32.mrb[8].mxu0  ;;  %v4658_v41 = vpop.f32.mrb[8].mxu1  ;;  %3699 = vmatprep.mubr.bf16.mxu1 %v1563_v14  ;;  %v1610_v5 = vrot.slane %v1608_v52, 1  ;;  %v1632_v39 = vshll.u32 %v4348_v31, 16  ;;  %v1792_v44 = vrot.slane %v4348_v31, 1 }
 0x10e   : > { %v4635_v13 = vpop.f32.mrb[9].mxu0  ;;  %v4659_v56 = vpop.f32.mrb[9].mxu1 }
 0x10f   : > { %v6664_v6 = vadd.f32 %v4635_v13, %v4634_v18  ;;  %v6666_v24 = vadd.f32 %v4659_v56, %v4658_v41  ;;  %v4637_v16 = vpop.f32.mrb[10].mxu0  ;;  %v4661_v12 = vpop.f32.mrb[10].mxu1  ;;  %v4345_v13 = vcombine.low %v517_v43, %v517_v43  ;;  %v1575_v43 = vsel %vm650_vm1, %v6309_v2, %v1574_v20  ;;  %v527_v2 = vld [vmem:[#allocation2 + $0xa8] sm:$0xee] }
 0x110   : > { %v4638_v32 = vpop.f32.mrb[11].mxu0  ;;  %v4662_v19 = vpop.f32.mrb[11].mxu1  ;;  %v1634_v52 = vrot.slane %v1632_v39, 1 }
 0x111   : > { %v6668_v30 = vadd.f32 %v4638_v32, %v4637_v16  ;;  %v6670_v28 = vadd.f32 %v4662_v19, %v4661_v12  ;;  %v1778_v32 = vsel %vm899_vm0, %v1776_v4, %v1777_v42  ;;  %v4361_v19 = vcombine.low %v525_v22, %v5494_v23 }
 0x112   : > { %3797 = vmatmul.mubr.bf16.gmra.mrb[116].mxu0 %v1772_v48  ;;  %v1596_v50 = vshll.u32 %v4345_v13, 16  ;;  %v1611_v48 = vsel %vm650_vm1, %v6332_v15, %v1610_v5  ;;  %v1783_v34 = vrot.slane %v4345_v13, 1  ;;  %v1791_v23 = vrot.slane %v4364_v59, 1  ;;  %v5496_v13 = vld [vmem:[#allocation2 + $0xb0] sm:$0xff] }
 0x113   : > { %3804 = vmatprep.mubr.bf16.mxu0 %v1781_v0  ;;  %v1782_v0 = vrot.slane %v4361_v19, 1  ;;  %v4363_v42 = vcombine.low %v526_v9, %v5495_v55  ;;  %v1635_v19 = vsel %vm650_vm1, %v6386_v38, %v1634_v52  ;;  %v520_v59 = vld [vmem:[#allocation2 + $0xd0] sm:$0x11] }
 0x114   : > { %3700 = vmatmul.mubr.bf16.gmra.mrb[116].mxu1 %v1551_v61  ;;  %v519_v61 = vld [vmem:[#allocation2 + $0xb8] sm:$0x11]  ;;  %v1598_v22 = vrot.slane %v1596_v50, 1  ;;  %v1793_v8 = vsel %vm899_vm0, %v1791_v23, %v1792_v44 }
 0x115   : > { %v4640_v63 = vpop.f32.mrb[12].mxu0  ;;  %v4664_v62 = vpop.f32.mrb[12].mxu1  ;;  %3707 = vmatprep.mubr.bf16.mxu1 %v1587_v33  ;;  %v4350_v26 = vcombine.high %v519_v61, %v519_v61  ;;  %v1784_v4 = vsel %vm899_vm0, %v1782_v0, %v1783_v34  ;;  %v1788_v55 = vrot.slane %v4363_v42, 1  ;;  %v4349_v39 = vcombine.low %v519_v61, %v519_v61 }
 0x116   : > { %v4641_v7 = vpop.f32.mrb[13].mxu0  ;;  %v4665_v49 = vpop.f32.mrb[13].mxu1 }
 0x117   : > { %v6677_v45 = vadd.f32 %v4641_v7, %v4640_v63  ;;  %v6679_v18 = vadd.f32 %v4665_v49, %v4664_v62  ;;  %v4643_v41 = vpop.f32.mrb[14].mxu0  ;;  %v4667_v14 = vpop.f32.mrb[14].mxu1  ;;  %v1620_v62 = vshll.u32 %v6689_v11, 16 }
 0x118   : > { %v4644_v56 = vpop.f32.mrb[15].mxu0  ;;  %v4668_v60 = vpop.f32.mrb[15].mxu1 }
 0x119   : > { %v6681_v16 = vadd.f32 %v4644_v56, %v4643_v41  ;;  %v6683_v12 = vadd.f32 %v4668_v60, %v4667_v14  ;;  %v1599_v14 = vsel %vm650_vm1, %v6379_v46, %v1598_v22  ;;  %v4366_v56 = vcombine.high %v527_v2, %v5496_v13 }
 0x11a   : > { %3805 = vmatmul.mubr.bf16.gmra.mrb[120].mxu0 %v1778_v32  ;;  %v1622_v31 = vrot.slane %v1620_v62, 1  ;;  %v1789_v46 = vrot.slane %v6689_v11, 1  ;;  %v4352_v11 = vcombine.high %v520_v59, %v520_v59 }
 0x11b   : > { %3812 = vmatprep.mubr.bf16.mxu0 %v1787_v29  ;;  %v1656_v29 = vshll.u32 %v4350_v26, 16 }
 0x11c   : > { %3708 = vmatmul.mubr.bf16.gmra.mrb[120].mxu1 %v1575_v43  ;;  %v1797_v43 = vrot.slane %v4366_v56, 1  ;;  %v1623_v38 = vsel %vm650_vm1, %v6418_v37, %v1622_v31  ;;  %v1680_v56 = vshll.u32 %v4352_v11, 16  ;;  %v1699_v31 = vshll.u32 %v6624_v35, 16 }
 0x11d   : > { %v4750_v63 = vpop.f32.mrb[16].mxu0  ;;  %3715 = vmatprep.mubr.bf16.mxu1 %v1611_v48  ;;  %v4686_v7 = vpop.f32.mrb[16].mxu1  ;;  %v1798_v48 = vrot.slane %v4350_v26, 1  ;;  %v1658_v44 = vrot.slane %v1656_v29, 1  ;;  %v1790_v26 = vsel %vm899_vm0, %v1788_v55, %v1789_v46  ;;  %v4351_v29 = vcombine.low %v520_v59, %v520_v59  ;;  %v6721_v46 = vld [vmem:[#allocation2 + $0xd8] sm:$0xee] }
 0x11e   : > { %v4751_v33 = vpop.f32.mrb[17].mxu0  ;;  %v4687_v57 = vpop.f32.mrb[17].mxu1 }
 0x11f   : > { %v4752_v49 = vadd.f32 %v4751_v33, %v4750_v63  ;;  %v4753_v15 = vpop.f32.mrb[18].mxu0  ;;  %v4688_v60 = vadd.f32 %v4687_v57, %v4686_v7  ;;  %v4689_v20 = vpop.f32.mrb[18].mxu1  ;;  %v4365_v63 = vcombine.low %v527_v2, %v5496_v13  ;;  %v1795_v2 = vrot.slane %v4349_v39, 1 }
 0x120   : > { %v4754_v41 = vpop.f32.mrb[19].mxu0  ;;  %v4690_v32 = vpop.f32.mrb[19].mxu1 }
 0x121   : > { %v4755_v5 = vadd.f32 %v4754_v41, %v4753_v15  ;;  %v3112_v9 = vadd.f32 %v4688_v60, %v6632_v25  ;;  %v4691_v50 = vadd.f32 %v4690_v32, %v4689_v20  ;;  %v6707_v25 = vld [vmem:[#allocation2 + $0xc0] sm:$0xee]  ;;  %v1644_v15 = vshll.u32 %v4349_v39, 16 }
 0x122   : > { %3813 = vmatmul.mubr.bf16.gmra.mrb[124].mxu0 %v1784_v4  ;;  %v5497_v4 = vld [vmem:[#allocation2 + $0xc8] sm:$0xff]  ;;  %v1794_v13 = vrot.slane %v4365_v63, 1 }
 0x123   : > { %3820 = vmatprep.mubr.bf16.mxu0 %v1793_v8  ;;  %v6702_v0 = vadd.f32 %v4752_v49, %v3112_v9  ;;  %v3115_v34 = vadd.f32 %v4691_v50, %v6637_v47  ;;  %v1799_v49 = vsel %vm899_vm0, %v1797_v43, %v1798_v48  ;;  %v4368_v37 = vcombine.high %v6707_v25, %v5497_v4 }
 0x124   : > { %3716 = vmatmul.mubr.bf16.gmra.mrb[124].mxu1 %v1599_v14  ;;  %v1659_v8 = vsel %vm650_vm1, %v6422_v3, %v1658_v44  ;;  %v1646_v3 = vrot.slane %v1644_v15, 1  ;;  %v1682_v48 = vrot.slane %v1680_v56, 1  ;;  %v4367_v59 = vcombine.low %v6707_v25, %v5497_v4 }
 0x125   : > { %v4756_v22 = vpop.f32.mrb[20].mxu0  ;;  %3723 = vmatprep.mubr.bf16.mxu1 %v1635_v19  ;;  %v6709_v62 = vadd.f32 %v4755_v5, %v3115_v34  ;;  %v4692_v33 = vpop.f32.mrb[20].mxu1  ;;  %v521_v5 = vld [vmem:[#allocation2 + $0xe8] sm:$0x11]  ;;  %v1803_v32 = vrot.slane %v4368_v37, 1  ;;  %v1804_v19 = vrot.slane %v4352_v11, 1 }
 0x126   : > { %v4757_v23 = vpop.f32.mrb[21].mxu0  ;;  %v4693_v7 = vpop.f32.mrb[21].mxu1  ;;  %v4354_v39 = vcombine.high %v521_v5, %v521_v5  ;;  %v1668_v11 = vshll.u32 %v4351_v29, 16  ;;  %v1697_v25 = vshrl.u32 %v6624_v35, 16  ;;  %v1701_v15 = vrot.slane %v1699_v31, 1 }
 0x127   : > { %v4758_v52 = vadd.f32 %v4757_v23, %v4756_v22  ;;  %v4759_v61 = vpop.f32.mrb[22].mxu0  ;;  %v4694_v42 = vadd.f32 %v4693_v7, %v4692_v33  ;;  %v4695_v57 = vpop.f32.mrb[22].mxu1  ;;  %v4370_v33 = vcombine.high %v6721_v46, %v6462_v10  ;;  %v1647_v7 = vsel %vm650_vm1, %v6440_v1, %v1646_v3 }
 0x128   : > { %v4760_v47 = vpop.f32.mrb[23].mxu0  ;;  %v4696_v14 = vpop.f32.mrb[23].mxu1  ;;  %v1704_v4 = vshll.u32 %v4354_v39, 16  ;;  %v1687_v1 = vshll.u32 %v6468_v53, 16  ;;  %v4353_v35 = vcombine.low %v521_v5, %v521_v5 }
 0x129   : > { %v4761_v41 = vadd.f32 %v4760_v47, %v4759_v61  ;;  %v3120_v60 = vadd.f32 %v4694_v42, %v6649_v58  ;;  %v4697_v20 = vadd.f32 %v4696_v14, %v4695_v57  ;;  %v1796_v58 = vsel %vm899_vm0, %v1794_v13, %v1795_v2 }
 0x12a   : > { %3821 = vmatmul.mubr.bf16.gmra.mrb[128].mxu0 %v1790_v26  ;;  %v1800_v57 = vrot.slane %v4367_v59, 1  ;;  %v1670_v2 = vrot.slane %v1668_v11, 1  ;;  %v1809_v14 = vrot.slane %v4370_v33, 1 }
 0x12b   : > { %3828 = vmatprep.mubr.bf16.mxu0 %v1799_v49  ;;  %v6718_v9 = vadd.f32 %v4758_v52, %v3120_v60  ;;  %v3123_v50 = vadd.f32 %v4697_v20, %v6653_v27  ;;  %v1805_v27 = vsel %vm899_vm0, %v1803_v32, %v1804_v19  ;;  %v1683_v49 = vsel %vm650_vm1, %v6446_v40, %v1682_v48 }
 0x12c   : > { %3724 = vmatmul.mubr.bf16.gmra.mrb[128].mxu1 %v1623_v38  ;;  %v1702_v20 = vor.u32 %v1701_v15, %v1697_v25 }
 0x12d   : > { %v4762_v55 = vpop.f32.mrb[24].mxu0  ;;  %3731 = vmatprep.mubr.bf16.mxu1 %v1659_v8  ;;  %v6724_v34 = vadd.f32 %v4761_v41, %v3123_v50  ;;  %v1801_v41 = vrot.slane %v4351_v29, 1  ;;  %v1810_v8 = vrot.slane %v4354_v39, 1 }
 0x12e   : > { %v4763_v43 = vpop.f32.mrb[25].mxu0  ;;  %v4698_v22 = vpop.f32.mrb[24].mxu1 }
 0x12f   : > { %v4764_v38 = vadd.f32 %v4763_v43, %v4762_v55  ;;  %v4765_v23 = vpop.f32.mrb[26].mxu0  ;;  %v4699_v44 = vpop.f32.mrb[25].mxu1  ;;  %v1802_v50 = vsel %vm899_vm0, %v1800_v57, %v1801_v41  ;;  %v4369_v55 = vcombine.low %v6721_v46, %v6462_v10  ;;  %v1811_v5 = vsel %vm899_vm0, %v1809_v14, %v1810_v8 }
 0x130   : > { %v4766_v63 = vpop.f32.mrb[27].mxu0  ;;  %v4700_v52 = vadd.f32 %v4699_v44, %v4698_v22  ;;  %v4701_v61 = vpop.f32.mrb[26].mxu1 }
 0x131   : > { %v4767_v26 = vadd.f32 %v4766_v63, %v4765_v23  ;;  %v4702_v47 = vpop.f32.mrb[27].mxu1  ;;  %v1692_v23 = vshll.u32 %v4353_v35, 16  ;;  %v1806_v63 = vrot.slane %v4369_v55, 1 }
 0x132   : > { %3829 = vmatmul.mubr.bf16.gmra.mrb[132].mxu0 %v1796_v58  ;;  %v3128_v37 = vadd.f32 %v4700_v52, %v6664_v6  ;;  %v4703_v42 = vadd.f32 %v4702_v47, %v4701_v61  ;;  %v1706_v6 = vrot.slane %v1704_v4, 1  ;;  %v1685_v58 = vshrl.u32 %v6468_v53, 16 }
 0x133   : > { %3836 = vmatprep.mubr.bf16.mxu0 %v1805_v27  ;;  %v1807_v27 = vrot.slane %v4353_v35, 1  ;;  %v1694_v52 = vrot.slane %v1692_v23, 1 }
 0x134   : > { %3732 = vmatmul.mubr.bf16.gmra.mrb[132].mxu1 %v1647_v7  ;;  %v6737_v13 = vadd.f32 %v4764_v38, %v3128_v37  ;;  %v3131_v40 = vadd.f32 %v4703_v42, %v6668_v30  ;;  %v1671_v30 = vsel %vm650_vm1, %v6455_v54, %v1670_v2  ;;  %v1689_v38 = vrot.slane %v1687_v1, 1 }
 0x135   : > { %v4768_v56 = vpop.f32.mrb[28].mxu0  ;;  %3739 = vmatprep.mubr.bf16.mxu1 %v1683_v49  ;;  %v1707_v44 = vsel %vm650_vm1, %v1702_v20, %v1706_v6 }
 0x136   : > { %v4769_v60 = vpop.f32.mrb[29].mxu0  ;;  %v6740_v31 = vadd.f32 %v4767_v26, %v3131_v40  ;;  %v4704_v32 = vpop.f32.mrb[28].mxu1  ;;  %v1690_v33 = vor.u32 %v1689_v38, %v1685_v58 }
 0x137   : > { %v4770_v19 = vadd.f32 %v4769_v60, %v4768_v56  ;;  %v4771_v29 = vpop.f32.mrb[30].mxu0  ;;  %v4705_v3 = vpop.f32.mrb[29].mxu1 }
 0x138   : > { %v4772_v43 = vpop.f32.mrb[31].mxu0  ;;  %v4706_v48 = vadd.f32 %v4705_v3, %v4704_v32  ;;  %v4707_v39 = vpop.f32.mrb[30].mxu1  ;;  %v1695_v57 = vsel %vm650_vm1, %v1690_v33, %v1694_v52 }
 0x139   : > { %v4773_v22 = vadd.f32 %v4772_v43, %v4771_v29  ;;  %v4708_v59 = vpop.f32.mrb[31].mxu1 }
 0x13a   : > { %3837 = vmatmul.mubr.bf16.gmra.mrb[136].mxu0 %v1802_v50  ;;  %v3136_v10 = vadd.f32 %v4706_v48, %v6677_v45  ;;  %v4709_v46 = vadd.f32 %v4708_v59, %v4707_v39  ;;  %v1808_v45 = vsel %vm899_vm0, %v1806_v63, %v1807_v27 }
 0x13b   : > { %3844 = vmatprep.mubr.bf16.mxu0 %v1811_v5 }
 0x13c   : > { %3740 = vmatmul.mubr.bf16.gmra.mrb[136].mxu1 %v1671_v30  ;;  %v6751_v54 = vadd.f32 %v4770_v19, %v3136_v10  ;;  %v3139_v53 = vadd.f32 %v4709_v46, %v6681_v16 }
 0x13d   : > { %v4774_v11 = vpop.f32.mrb[32].mxu0  ;;  %3747 = vmatprep.mubr.bf16.mxu1 %v1707_v44 }
 0x13e   : > { %v4775_v61 = vpop.f32.mrb[33].mxu0  ;;  %v6754_v26 = vadd.f32 %v4773_v22, %v3139_v53  ;;  %v4710_v7 = vpop.f32.mrb[32].mxu1 }
 0x13f   : > { %v4776_v47 = vadd.f32 %v4775_v61, %v4774_v11  ;;  %v4777_v49 = vpop.f32.mrb[34].mxu0  ;;  %v4711_v25 = vpop.f32.mrb[33].mxu1 }
 0x140   : > { %v4778_v15 = vpop.f32.mrb[35].mxu0  ;;  %v4712_v4 = vadd.f32 %v4711_v25, %v4710_v7  ;;  %v4713_v37 = vpop.f32.mrb[34].mxu1 }
 0x141   : > { %v4779_v42 = vadd.f32 %v4778_v15, %v4777_v49  ;;  %v4714_v16 = vpop.f32.mrb[35].mxu1 }
 0x142   : > { %3845 = vmatmul.mubr.bf16.gmra.mrb[140].mxu0 %v1808_v45  ;;  %v3144_v41 = vadd.f32 %v4712_v4, %v6634_v51  ;;  %v4715_v2 = vadd.f32 %v4714_v16, %v4713_v37 }
 0x144   : > { %3748 = vmatmul.mubr.bf16.gmra.mrb[140].mxu1 %v1695_v57  ;;  %v6759_v14 = vadd.f32 %v4776_v47, %v3144_v41  ;;  %v3147_v8 = vadd.f32 %v4715_v2, %v6639_v21 }
 0x145   : > { %v4780_v1 = vpop.f32.mrb[36].mxu0 }
 0x146   : > { %v4781_v40 = vpop.f32.mrb[37].mxu0  ;;  %v6762_v56 = vadd.f32 %v4779_v42, %v3147_v8  ;;  %v4716_v35 = vpop.f32.mrb[36].mxu1 }
 0x147   : > { %v4782_v60 = vadd.f32 %v4781_v40, %v4780_v1  ;;  %v4783_v20 = vpop.f32.mrb[38].mxu0  ;;  %v4717_v6 = vpop.f32.mrb[37].mxu1 }
 0x148   : > { %v4784_v32 = vpop.f32.mrb[39].mxu0  ;;  %v4718_v19 = vadd.f32 %v4717_v6, %v4716_v35  ;;  %v4719_v29 = vpop.f32.mrb[38].mxu1 }
 0x149   : > { %v4785_v50 = vadd.f32 %v4784_v32, %v4783_v20  ;;  %v4720_v55 = vpop.f32.mrb[39].mxu1 }
 0x14a   : > { %v3152_v51 = vadd.f32 %v4718_v19, %v6651_v17  ;;  %v4721_v3 = vadd.f32 %v4720_v55, %v4719_v29 }
 0x14c   : > { %v6765_v43 = vadd.f32 %v4782_v60, %v3152_v51  ;;  %v3155_v21 = vadd.f32 %v4721_v3, %v6655_v36 }
 0x14d   : > { %v4786_v30 = vpop.f32.mrb[40].mxu0 }
 0x14e   : > { %v4787_v5 = vpop.f32.mrb[41].mxu0  ;;  %v6768_v58 = vadd.f32 %v4785_v50, %v3155_v21  ;;  %v4722_v48 = vpop.f32.mrb[40].mxu1 }
 0x14f   : > { %v4788_v39 = vadd.f32 %v4787_v5, %v4786_v30  ;;  %v4789_v22 = vpop.f32.mrb[42].mxu0  ;;  %v4723_v38 = vpop.f32.mrb[41].mxu1 }
 0x150   : > { %v4790_v23 = vpop.f32.mrb[43].mxu0  ;;  %v4724_v59 = vadd.f32 %v4723_v38, %v4722_v48  ;;  %v4725_v44 = vpop.f32.mrb[42].mxu1 }
 0x151   : > { %v4791_v10 = vadd.f32 %v4790_v23, %v4789_v22  ;;  %v4726_v46 = vpop.f32.mrb[43].mxu1 }
 0x152   : > { %v3160_v17 = vadd.f32 %v4724_v59, %v6666_v24  ;;  %v4727_v63 = vadd.f32 %v4726_v46, %v4725_v44 }
 0x154   : > { %v6771_v27 = vadd.f32 %v4788_v39, %v3160_v17  ;;  %v3163_v36 = vadd.f32 %v4727_v63, %v6670_v28 }
 0x155   : > { %v4792_v53 = vpop.f32.mrb[44].mxu0 }
 0x156   : > { %v4793_v11 = vpop.f32.mrb[45].mxu0  ;;  %v6774_v33 = vadd.f32 %v4791_v10, %v3163_v36  ;;  %v4728_v52 = vpop.f32.mrb[44].mxu1 }
 0x157   : > { %v4794_v61 = vadd.f32 %v4793_v11, %v4792_v53  ;;  %v4795_v7 = vpop.f32.mrb[46].mxu0  ;;  %v4729_v47 = vpop.f32.mrb[45].mxu1 }
 0x158   : > { %v4796_v49 = vpop.f32.mrb[47].mxu0  ;;  %v4730_v45 = vadd.f32 %v4729_v47, %v4728_v52  ;;  %v4731_v25 = vpop.f32.mrb[46].mxu1 }
 0x159   : > { %v4797_v15 = vadd.f32 %v4796_v49, %v4795_v7  ;;  %v4732_v4 = vpop.f32.mrb[47].mxu1 }
 0x15a   : > { %v3168_v24 = vadd.f32 %v4730_v45, %v6679_v18  ;;  %v4733_v37 = vadd.f32 %v4732_v4, %v4731_v25 }
 0x15c   : > { %v6777_v42 = vadd.f32 %v4794_v61, %v3168_v24  ;;  %v3171_v28 = vadd.f32 %v4733_v37, %v6683_v12 }
 0x15d   : > { %v4878_v57 = vpop.f32.mrb[48].mxu0 }
 0x15e   : > { %v4879_v16 = vpop.f32.mrb[49].mxu0  ;;  %v6780_v41 = vadd.f32 %v4797_v15, %v3171_v28 }
 0x15f   : > { %v4814_v2 = vpop.f32.mrb[48].mxu1  ;;  %v4880_v8 = vadd.f32 %v4879_v16, %v4878_v57  ;;  %v4881_v1 = vpop.f32.mrb[50].mxu0 }
 0x160   : > { %v4815_v40 = vpop.f32.mrb[49].mxu1  ;;  %v4882_v35 = vpop.f32.mrb[51].mxu0 }
 0x161   : > { %v4816_v60 = vadd.f32 %v4815_v40, %v4814_v2  ;;  %v4817_v20 = vpop.f32.mrb[50].mxu1  ;;  %v4883_v6 = vadd.f32 %v4882_v35, %v4881_v1 }
 0x162   : > { %v4818_v32 = vpop.f32.mrb[51].mxu1 }
 0x163   : > { %v3306_v18 = vadd.f32 %v4816_v60, %v6702_v0  ;;  %v4819_v19 = vadd.f32 %v4818_v32, %v4817_v20 }
 0x165   : > { %v6783_v29 = vadd.f32 %v4880_v8, %v3306_v18  ;;  %v3309_v12 = vadd.f32 %v4819_v19, %v6709_v62  ;;  %v4884_v50 = vpop.f32.mrb[52].mxu0 }
 0x166   : > { %v4885_v55 = vpop.f32.mrb[53].mxu0 }
 0x167   : > { %v6786_v51 = vadd.f32 %v4883_v6, %v3309_v12  ;;  %v4820_v3 = vpop.f32.mrb[52].mxu1  ;;  %v4886_v21 = vadd.f32 %v4885_v55, %v4884_v50  ;;  %v4887_v30 = vpop.f32.mrb[54].mxu0 }
 0x168   : > { %v4821_v5 = vpop.f32.mrb[53].mxu1  ;;  %v4888_v48 = vpop.f32.mrb[55].mxu0 }
 0x169   : > { %v4822_v39 = vadd.f32 %v4821_v5, %v4820_v3  ;;  %v4823_v22 = vpop.f32.mrb[54].mxu1  ;;  %v4889_v38 = vadd.f32 %v4888_v48, %v4887_v30 }
 0x16a   : > { %v4824_v23 = vpop.f32.mrb[55].mxu1 }
 0x16b   : > { %v3314_v0 = vadd.f32 %v4822_v39, %v6718_v9  ;;  %v4825_v59 = vadd.f32 %v4824_v23, %v4823_v22 }
 0x16d   : > { %v6789_v44 = vadd.f32 %v4886_v21, %v3314_v0  ;;  %v3317_v62 = vadd.f32 %v4825_v59, %v6724_v34  ;;  %v4890_v10 = vpop.f32.mrb[56].mxu0 }
 0x16e   : > { %v4891_v46 = vpop.f32.mrb[57].mxu0 }
 0x16f   : > { %v6792_v17 = vadd.f32 %v4889_v38, %v3317_v62  ;;  %v4826_v63 = vpop.f32.mrb[56].mxu1  ;;  %v4892_v36 = vadd.f32 %v4891_v46, %v4890_v10  ;;  %v4893_v53 = vpop.f32.mrb[58].mxu0 }
 0x170   : > { %v4827_v11 = vpop.f32.mrb[57].mxu1  ;;  %v4894_v52 = vpop.f32.mrb[59].mxu0 }
 0x171   : > { %v4828_v61 = vadd.f32 %v4827_v11, %v4826_v63  ;;  %v4829_v7 = vpop.f32.mrb[58].mxu1  ;;  %v4895_v47 = vadd.f32 %v4894_v52, %v4893_v53 }
 0x172   : > { %v4830_v49 = vpop.f32.mrb[59].mxu1 }
 0x173   : > { %v3322_v9 = vadd.f32 %v4828_v61, %v6737_v13  ;;  %v4831_v45 = vadd.f32 %v4830_v49, %v4829_v7 }
 0x175   : > { %v6795_v25 = vadd.f32 %v4892_v36, %v3322_v9  ;;  %v3325_v34 = vadd.f32 %v4831_v45, %v6740_v31  ;;  %v4896_v15 = vpop.f32.mrb[60].mxu0 }
 0x176   : > { %v4897_v4 = vpop.f32.mrb[61].mxu0 }
 0x177   : > { %v6798_v24 = vadd.f32 %v4895_v47, %v3325_v34  ;;  %v4832_v37 = vpop.f32.mrb[60].mxu1  ;;  %v4898_v28 = vadd.f32 %v4897_v4, %v4896_v15  ;;  %v4899_v57 = vpop.f32.mrb[62].mxu0 }
 0x178   : > { %v4833_v16 = vpop.f32.mrb[61].mxu1  ;;  %v4900_v2 = vpop.f32.mrb[63].mxu0 }
 0x179   : > { %v4834_v8 = vadd.f32 %v4833_v16, %v4832_v37  ;;  %v4835_v1 = vpop.f32.mrb[62].mxu1  ;;  %v4901_v40 = vadd.f32 %v4900_v2, %v4899_v57 }
 0x17a   : > { %v4836_v35 = vpop.f32.mrb[63].mxu1 }
 0x17b   : > { %v3330_v13 = vadd.f32 %v4834_v8, %v6751_v54  ;;  %v4837_v60 = vadd.f32 %v4836_v35, %v4835_v1 }
 0x17d   : > { %v6801_v20 = vadd.f32 %v4898_v28, %v3330_v13  ;;  %v3333_v31 = vadd.f32 %v4837_v60, %v6754_v26  ;;  %v4902_v6 = vpop.f32.mrb[64].mxu0 }
 0x17e   : > { %v4903_v32 = vpop.f32.mrb[65].mxu0 }
 0x17f   : > { %v6804_v18 = vadd.f32 %v4901_v40, %v3333_v31  ;;  %v4838_v19 = vpop.f32.mrb[64].mxu1  ;;  %v4904_v12 = vadd.f32 %v4903_v32, %v4902_v6  ;;  %v4905_v50 = vpop.f32.mrb[66].mxu0 }
 0x180   : > { %v4839_v55 = vpop.f32.mrb[65].mxu1  ;;  %v4906_v3 = vpop.f32.mrb[67].mxu0 }
 0x181   : > { %v4840_v21 = vadd.f32 %v4839_v55, %v4838_v19  ;;  %v4841_v30 = vpop.f32.mrb[66].mxu1  ;;  %v4907_v5 = vadd.f32 %v4906_v3, %v4905_v50 }
 0x182   : > { %v4842_v48 = vpop.f32.mrb[67].mxu1 }
 0x183   : > { %v3338_v54 = vadd.f32 %v4840_v21, %v6759_v14  ;;  %v4843_v39 = vadd.f32 %v4842_v48, %v4841_v30 }
 0x185   : > { %v6807_v22 = vadd.f32 %v4904_v12, %v3338_v54  ;;  %v3341_v26 = vadd.f32 %v4843_v39, %v6762_v56  ;;  %v4908_v38 = vpop.f32.mrb[68].mxu0 }
 0x186   : > { %v4909_v23 = vpop.f32.mrb[69].mxu0 }
 0x187   : > { %v6810_v0 = vadd.f32 %v4907_v5, %v3341_v26  ;;  %v4844_v59 = vpop.f32.mrb[68].mxu1  ;;  %v4910_v62 = vadd.f32 %v4909_v23, %v4908_v38  ;;  %v4911_v10 = vpop.f32.mrb[70].mxu0 }
 0x188   : > { %v4845_v46 = vpop.f32.mrb[69].mxu1  ;;  %v4912_v63 = vpop.f32.mrb[71].mxu0 }
 0x189   : > { %v4846_v36 = vadd.f32 %v4845_v46, %v4844_v59  ;;  %v4847_v53 = vpop.f32.mrb[70].mxu1  ;;  %v4913_v11 = vadd.f32 %v4912_v63, %v4911_v10 }
 0x18a   : > { %v4848_v52 = vpop.f32.mrb[71].mxu1 }
 0x18b   : > { %v3346_v14 = vadd.f32 %v4846_v36, %v6765_v43  ;;  %v4849_v61 = vadd.f32 %v4848_v52, %v4847_v53 }
 0x18d   : > { %v6813_v7 = vadd.f32 %v4910_v62, %v3346_v14  ;;  %v3349_v56 = vadd.f32 %v4849_v61, %v6768_v58  ;;  %v4914_v47 = vpop.f32.mrb[72].mxu0 }
 0x18e   : > { %v4915_v49 = vpop.f32.mrb[73].mxu0 }
 0x18f   : > { %v6816_v9 = vadd.f32 %v4913_v11, %v3349_v56  ;;  %v4850_v45 = vpop.f32.mrb[72].mxu1  ;;  %v4916_v34 = vadd.f32 %v4915_v49, %v4914_v47  ;;  %v4917_v15 = vpop.f32.mrb[74].mxu0 }
 0x190   : > { %v4851_v4 = vpop.f32.mrb[73].mxu1  ;;  %v4918_v37 = vpop.f32.mrb[75].mxu0 }
 0x191   : > { %v4852_v28 = vadd.f32 %v4851_v4, %v4850_v45  ;;  %v4853_v57 = vpop.f32.mrb[74].mxu1  ;;  %v4919_v16 = vadd.f32 %v4918_v37, %v4917_v15 }
 0x192   : > { %v4854_v2 = vpop.f32.mrb[75].mxu1 }
 0x193   : > { %v3354_v43 = vadd.f32 %v4852_v28, %v6771_v27  ;;  %v4855_v8 = vadd.f32 %v4854_v2, %v4853_v57 }
 0x195   : > { %v6819_v1 = vadd.f32 %v4916_v34, %v3354_v43  ;;  %v3357_v58 = vadd.f32 %v4855_v8, %v6774_v33  ;;  %v4920_v40 = vpop.f32.mrb[76].mxu0 }
 0x196   : > { %v4921_v35 = vpop.f32.mrb[77].mxu0 }
 0x197   : > { %v6822_v13 = vadd.f32 %v4919_v16, %v3357_v58  ;;  %v4856_v60 = vpop.f32.mrb[76].mxu1  ;;  %v4922_v31 = vadd.f32 %v4921_v35, %v4920_v40  ;;  %v4923_v6 = vpop.f32.mrb[78].mxu0 }
 0x198   : > { %v4857_v32 = vpop.f32.mrb[77].mxu1  ;;  %v4924_v19 = vpop.f32.mrb[79].mxu0 }
 0x199   : > { %v4858_v12 = vadd.f32 %v4857_v32, %v4856_v60  ;;  %v4859_v50 = vpop.f32.mrb[78].mxu1  ;;  %v4925_v55 = vadd.f32 %v4924_v19, %v4923_v6 }
 0x19a   : > { %v4860_v3 = vpop.f32.mrb[79].mxu1 }
 0x19b   : > { %v3362_v27 = vadd.f32 %v4858_v12, %v6777_v42  ;;  %v4861_v21 = vadd.f32 %v4860_v3, %v4859_v50 }
 0x19d   : > { %v6825_v30 = vadd.f32 %v4922_v31, %v3362_v27  ;;  %v3365_v33 = vadd.f32 %v4861_v21, %v6780_v41  ;;  %v5006_v5 = vpop.f32.mrb[80].mxu0 }
 0x19e   : > { %v5007_v48 = vpop.f32.mrb[81].mxu0 }
 0x19f   : > { %v6828_v54 = vadd.f32 %v4925_v55, %v3365_v33  ;;  %v4942_v39 = vpop.f32.mrb[80].mxu1  ;;  %v5008_v26 = vadd.f32 %v5007_v48, %v5006_v5  ;;  %v5009_v38 = vpop.f32.mrb[82].mxu0 }
 0x1a0   : > { %v4943_v23 = vpop.f32.mrb[81].mxu1  ;;  %v5010_v59 = vpop.f32.mrb[83].mxu0 }
 0x1a1   : > { %v4944_v62 = vadd.f32 %v4943_v23, %v4942_v39  ;;  %v4945_v10 = vpop.f32.mrb[82].mxu1  ;;  %v5011_v46 = vadd.f32 %v5010_v59, %v5009_v38 }
 0x1a2   : > { %v4946_v63 = vpop.f32.mrb[83].mxu1 }
 0x1a3   : > { %v3500_v42 = vadd.f32 %v4944_v62, %v6783_v29  ;;  %v4947_v36 = vadd.f32 %v4946_v63, %v4945_v10 }
 0x1a5   : > { %v6831_v53 = vadd.f32 %v5008_v26, %v3500_v42  ;;  %v3503_v41 = vadd.f32 %v4947_v36, %v6786_v51  ;;  %v5012_v11 = vpop.f32.mrb[84].mxu0 }
 0x1a6   : > { %v5013_v52 = vpop.f32.mrb[85].mxu0 }
 0x1a7   : > { %v6834_v14 = vadd.f32 %v5011_v46, %v3503_v41  ;;  %v4948_v61 = vpop.f32.mrb[84].mxu1  ;;  %v5014_v56 = vadd.f32 %v5013_v52, %v5012_v11  ;;  %v5015_v47 = vpop.f32.mrb[86].mxu0 }
 0x1a8   : > { %v4949_v49 = vpop.f32.mrb[85].mxu1  ;;  %v5016_v45 = vpop.f32.mrb[87].mxu0 }
 0x1a9   : > { %v4950_v34 = vadd.f32 %v4949_v49, %v4948_v61  ;;  %v4951_v15 = vpop.f32.mrb[86].mxu1  ;;  %v5017_v4 = vadd.f32 %v5016_v45, %v5015_v47 }
 0x1aa   : > { %v4952_v37 = vpop.f32.mrb[87].mxu1 }
 0x1ab   : > { %v3508_v29 = vadd.f32 %v4950_v34, %v6789_v44  ;;  %v4953_v28 = vadd.f32 %v4952_v37, %v4951_v15 }
 0x1ad   : > { %v6837_v57 = vadd.f32 %v5014_v56, %v3508_v29  ;;  %v3511_v51 = vadd.f32 %v4953_v28, %v6792_v17  ;;  %v5018_v16 = vpop.f32.mrb[88].mxu0 }
 0x1ae   : > { %v5019_v2 = vpop.f32.mrb[89].mxu0 }
 0x1af   : > { %v6840_v43 = vadd.f32 %v5017_v4, %v3511_v51  ;;  %v4954_v8 = vpop.f32.mrb[88].mxu1  ;;  %v5020_v58 = vadd.f32 %v5019_v2, %v5018_v16  ;;  %v5021_v40 = vpop.f32.mrb[90].mxu0 }
 0x1b0   : > { %v4955_v35 = vpop.f32.mrb[89].mxu1  ;;  %v5022_v60 = vpop.f32.mrb[91].mxu0 }
 0x1b1   : > { %v4956_v31 = vadd.f32 %v4955_v35, %v4954_v8  ;;  %v4957_v6 = vpop.f32.mrb[90].mxu1  ;;  %v5023_v32 = vadd.f32 %v5022_v60, %v5021_v40 }
 0x1b2   : > { %v4958_v19 = vpop.f32.mrb[91].mxu1 }
 0x1b3   : > { %v3516_v44 = vadd.f32 %v4956_v31, %v6795_v25  ;;  %v4959_v12 = vadd.f32 %v4958_v19, %v4957_v6 }
 0x1b5   : > { %v6843_v50 = vadd.f32 %v5020_v58, %v3516_v44  ;;  %v3519_v17 = vadd.f32 %v4959_v12, %v6798_v24  ;;  %v5024_v55 = vpop.f32.mrb[92].mxu0 }
 0x1b6   : > { %v5025_v3 = vpop.f32.mrb[93].mxu0 }
 0x1b7   : > { %v6846_v27 = vadd.f32 %v5023_v32, %v3519_v17  ;;  %v4960_v21 = vpop.f32.mrb[92].mxu1  ;;  %v5026_v33 = vadd.f32 %v5025_v3, %v5024_v55  ;;  %v5027_v5 = vpop.f32.mrb[94].mxu0 }
 0x1b8   : > { %v4961_v48 = vpop.f32.mrb[93].mxu1  ;;  %v5028_v39 = vpop.f32.mrb[95].mxu0 }
 0x1b9   : > { %v4962_v26 = vadd.f32 %v4961_v48, %v4960_v21  ;;  %v4963_v38 = vpop.f32.mrb[94].mxu1  ;;  %v5029_v23 = vadd.f32 %v5028_v39, %v5027_v5 }
 0x1ba   : > { %v4964_v59 = vpop.f32.mrb[95].mxu1 }
 0x1bb   : > { %v3524_v25 = vadd.f32 %v4962_v26, %v6801_v20  ;;  %v4965_v62 = vadd.f32 %v4964_v59, %v4963_v38 }
 0x1bd   : > { %v6849_v10 = vadd.f32 %v5026_v33, %v3524_v25  ;;  %v3527_v24 = vadd.f32 %v4965_v62, %v6804_v18  ;;  %v5030_v46 = vpop.f32.mrb[96].mxu0 }
 0x1be   : > { %v5031_v63 = vpop.f32.mrb[97].mxu0 }
 0x1bf   : > { %v6852_v42 = vadd.f32 %v5029_v23, %v3527_v24  ;;  %v4966_v36 = vpop.f32.mrb[96].mxu1  ;;  %v5032_v41 = vadd.f32 %v5031_v63, %v5030_v46  ;;  %v5033_v11 = vpop.f32.mrb[98].mxu0 }
 0x1c0   : > { %v4967_v52 = vpop.f32.mrb[97].mxu1  ;;  %v5034_v61 = vpop.f32.mrb[99].mxu0 }
 0x1c1   : > { %v4968_v56 = vadd.f32 %v4967_v52, %v4966_v36  ;;  %v4969_v47 = vpop.f32.mrb[98].mxu1  ;;  %v5035_v49 = vadd.f32 %v5034_v61, %v5033_v11 }
 0x1c2   : > { %v4970_v45 = vpop.f32.mrb[99].mxu1 }
 0x1c3   : > { %v3532_v20 = vadd.f32 %v4968_v56, %v6807_v22  ;;  %v4971_v34 = vadd.f32 %v4970_v45, %v4969_v47 }
 0x1c5   : > { %v6855_v15 = vadd.f32 %v5032_v41, %v3532_v20  ;;  %v3535_v18 = vadd.f32 %v4971_v34, %v6810_v0  ;;  %v5036_v4 = vpop.f32.mrb[100].mxu0 }
 0x1c6   : > { %v5037_v37 = vpop.f32.mrb[101].mxu0 }
 0x1c7   : > { %v6858_v29 = vadd.f32 %v5035_v49, %v3535_v18  ;;  %v4972_v28 = vpop.f32.mrb[100].mxu1  ;;  %v5038_v51 = vadd.f32 %v5037_v37, %v5036_v4  ;;  %v5039_v16 = vpop.f32.mrb[102].mxu0 }
 0x1c8   : > { %v4973_v2 = vpop.f32.mrb[101].mxu1  ;;  %v5040_v8 = vpop.f32.mrb[103].mxu0 }
 0x1c9   : > { %v4974_v58 = vadd.f32 %v4973_v2, %v4972_v28  ;;  %v4975_v40 = vpop.f32.mrb[102].mxu1  ;;  %v5041_v35 = vadd.f32 %v5040_v8, %v5039_v16 }
 0x1ca   : > { %v4976_v60 = vpop.f32.mrb[103].mxu1 }
 0x1cb   : > { %v3540_v22 = vadd.f32 %v4974_v58, %v6813_v7  ;;  %v4977_v31 = vadd.f32 %v4976_v60, %v4975_v40 }
 0x1cd   : > { %v6861_v6 = vadd.f32 %v5038_v51, %v3540_v22  ;;  %v3543_v0 = vadd.f32 %v4977_v31, %v6816_v9  ;;  %v5042_v32 = vpop.f32.mrb[104].mxu0 }
 0x1ce   : > { %v5043_v19 = vpop.f32.mrb[105].mxu0 }
 0x1cf   : > { %v6864_v44 = vadd.f32 %v5041_v35, %v3543_v0  ;;  %v4978_v12 = vpop.f32.mrb[104].mxu1  ;;  %v5044_v17 = vadd.f32 %v5043_v19, %v5042_v32  ;;  %v5045_v55 = vpop.f32.mrb[106].mxu0 }
 0x1d0   : > { %v4979_v3 = vpop.f32.mrb[105].mxu1  ;;  %v5046_v21 = vpop.f32.mrb[107].mxu0 }
 0x1d1   : > { %v4980_v33 = vadd.f32 %v4979_v3, %v4978_v12  ;;  %v4981_v5 = vpop.f32.mrb[106].mxu1  ;;  %v5047_v48 = vadd.f32 %v5046_v21, %v5045_v55 }
 0x1d2   : > { %v4982_v39 = vpop.f32.mrb[107].mxu1 }
 0x1d3   : > { %v3548_v7 = vadd.f32 %v4980_v33, %v6819_v1  ;;  %v4983_v26 = vadd.f32 %v4982_v39, %v4981_v5 }
 0x1d5   : > { %v6867_v38 = vadd.f32 %v5044_v17, %v3548_v7  ;;  %v3551_v9 = vadd.f32 %v4983_v26, %v6822_v13  ;;  %v5048_v23 = vpop.f32.mrb[108].mxu0 }
 0x1d6   : > { %v5049_v59 = vpop.f32.mrb[109].mxu0 }
 0x1d7   : > { %v6870_v25 = vadd.f32 %v5047_v48, %v3551_v9  ;;  %v4984_v62 = vpop.f32.mrb[108].mxu1  ;;  %v5050_v24 = vadd.f32 %v5049_v59, %v5048_v23  ;;  %v5051_v46 = vpop.f32.mrb[110].mxu0 }
 0x1d8   : > { %v4985_v63 = vpop.f32.mrb[109].mxu1  ;;  %v5052_v36 = vpop.f32.mrb[111].mxu0 }
 0x1d9   : > { %v4986_v41 = vadd.f32 %v4985_v63, %v4984_v62  ;;  %v4987_v11 = vpop.f32.mrb[110].mxu1  ;;  %v5053_v1 = vadd.f32 %v5052_v36, %v5051_v46 }
 0x1da   : > { %v4988_v52 = vpop.f32.mrb[111].mxu1 }
 0x1db   : > { %v3556_v61 = vadd.f32 %v4986_v41, %v6825_v30  ;;  %v4989_v13 = vadd.f32 %v4988_v52, %v4987_v11  ;;  %v6882_v30 = vstv %s5609_s28 }
 0x1dc   : > { %vm3862_vm2 = vcmp.lt.s32.totalorder %v6882_v30, 16  ;;  %v3855_v55 = vadd.s32 1, %v6882_v30 }
 0x1dd   : > { %v6875_v56 = vadd.f32 %v5050_v24, %v3556_v61  ;;  %v3559_v47 = vadd.f32 %v4989_v13, %v6828_v54  ;;  %v5134_v49 = vpop.f32.mrb[112].mxu0 }
 0x1de   : > { %v5135_v45 = vpop.f32.mrb[113].mxu0  ;;  %vm3863_vm3 = vcmp.lt.s32.totalorder %v3855_v55, 16 }
 0x1df   : > { %v6878_v20 = vadd.f32 %v5053_v1, %v3559_v47  ;;  %v5070_v34 = vpop.f32.mrb[112].mxu1  ;;  %v5136_v18 = vadd.f32 %v5135_v45, %v5134_v49  ;;  %v5137_v4 = vpop.f32.mrb[114].mxu0 }
 0x1e0   : > { %v5071_v37 = vpop.f32.mrb[113].mxu1  ;;  %v5138_v28 = vpop.f32.mrb[115].mxu0 }
 0x1e1   : > { %v5072_v51 = vadd.f32 %v5071_v37, %v5070_v34  ;;  %v5073_v16 = vpop.f32.mrb[114].mxu1  ;;  %v5139_v2 = vadd.f32 %v5138_v28, %v5137_v4 }
 0x1e2   : > { %v5074_v8 = vpop.f32.mrb[115].mxu1 }
 0x1e3   : > { %v3694_v58 = vadd.f32 %v5072_v51, %v6831_v53  ;;  %v5075_v54 = vadd.f32 %v5074_v8, %v5073_v16 }
 0x1e5   : > { %v3791_v40 = vadd.f32 %v5136_v18, %v3694_v58  ;;  %v3697_v35 = vadd.f32 %v5075_v54, %v6834_v14  ;;  %v5140_v60 = vpop.f32.mrb[116].mxu0 }
 0x1e6   : > { %v5141_v22 = vpop.f32.mrb[117].mxu0 }
 0x1e7   : > { %v3886_v31 = vsel %vm3862_vm2, %v3791_v40, 0.0  ;;  %v3794_v0 = vadd.f32 %v5139_v2, %v3697_v35  ;;  %v5076_v32 = vpop.f32.mrb[116].mxu1  ;;  %v5142_v19 = vadd.f32 %v5141_v22, %v5140_v60  ;;  %v5143_v12 = vpop.f32.mrb[118].mxu0 }
 0x1e8   : > { %v5077_v17 = vpop.f32.mrb[117].mxu1  ;;  %v5144_v3 = vpop.f32.mrb[119].mxu0  ;;  %v4004_v5 = vmul.f32 %v3886_v31, %v3886_v31 }
 0x1e9   : > { %v3887_v53 = vsel %vm3862_vm2, %v3794_v0, 0.0  ;;  %v5078_v14 = vadd.f32 %v5077_v17, %v5076_v32  ;;  %v5079_v21 = vpop.f32.mrb[118].mxu1  ;;  %v5145_v33 = vadd.f32 %v5144_v3, %v5143_v12 }
 0x1ea   : > { %v4560_v48 = vpack.c.bf16 %v3887_v53, %v3886_v31  ;;  %v3982_v39 = vadd.f32 %v3887_v53, %v3886_v31  ;;  %v4005_v7 = vmul.f32 %v3887_v53, %v3887_v53  ;;  %v5080_v26 = vpop.f32.mrb[119].mxu1 }
 0x1eb   : > { %v3702_v9 = vadd.f32 %v5078_v14, %v6837_v57  ;;  %v5081_v23 = vadd.f32 %v5080_v26, %v5079_v21  ;;  %v3856_v57 = vadd.s32 2, %v6882_v30 }
 0x1ec   : > { %4561 = vst [vmem:[%s6891_s7] sm:$0xff] %v4560_v48   ;;  %v4020_v59 = vadd.f32 %v4005_v7, %v4004_v5 }
 0x1ed   : > { %v3799_v62 = vadd.f32 %v5142_v19, %v3702_v9  ;;  %v3705_v24 = vadd.f32 %v5081_v23, %v6840_v43  ;;  %v5146_v46 = vpop.f32.mrb[120].mxu0  ;;  %vm3864_vm4 = vcmp.lt.s32.totalorder %v3856_v57, 16 }
 0x1ee   : > { %v5147_v63 = vpop.f32.mrb[121].mxu0 }
 0x1ef   : > { %v3888_v36 = vsel %vm3863_vm3, %v3799_v62, 0.0  ;;  %v3802_v41 = vadd.f32 %v5145_v33, %v3705_v24  ;;  %v5082_v11 = vpop.f32.mrb[120].mxu1  ;;  %v5148_v1 = vadd.f32 %v5147_v63, %v5146_v46  ;;  %v5149_v52 = vpop.f32.mrb[122].mxu0 }
 0x1f0   : > { %v3983_v61 = vadd.f32 %v3982_v39, %v3888_v36  ;;  %v4006_v13 = vmul.f32 %v3888_v36, %v3888_v36  ;;  %v5083_v47 = vpop.f32.mrb[121].mxu1  ;;  %v5150_v49 = vpop.f32.mrb[123].mxu0 }
 0x1f1   : > { %v3889_v45 = vsel %vm3863_vm3, %v3802_v41, 0.0  ;;  %v5084_v34 = vadd.f32 %v5083_v47, %v5082_v11  ;;  %v5085_v18 = vpop.f32.mrb[122].mxu1  ;;  %v5151_v4 = vadd.f32 %v5150_v49, %v5149_v52 }
 0x1f2   : > { %v4021_v37 = vadd.f32 %v4020_v59, %v4006_v13  ;;  %v4565_v43 = vpack.c.bf16 %v3889_v45, %v3888_v36  ;;  %v3984_v28 = vadd.f32 %v3983_v61, %v3889_v45  ;;  %v4007_v51 = vmul.f32 %v3889_v45, %v3889_v45  ;;  %v5086_v16 = vpop.f32.mrb[123].mxu1 }
 0x1f3   : > { %v3710_v2 = vadd.f32 %v5084_v34, %v6843_v50  ;;  %v5087_v8 = vadd.f32 %v5086_v16, %v5085_v18  ;;  %v3857_v50 = vadd.s32 3, %v6882_v30 }
 0x1f4   : > { %4599 = vst [vmem:[%s6891_s7 + $0x8] sm:$0xff] %v4565_v43   ;;  %v4022_v58 = vadd.f32 %v4021_v37, %v4007_v51 }
 0x1f5   : > { %v3807_v54 = vadd.f32 %v5148_v1, %v3710_v2  ;;  %v3713_v40 = vadd.f32 %v5087_v8, %v6846_v27  ;;  %v5152_v35 = vpop.f32.mrb[124].mxu0  ;;  %vm3865_vm5 = vcmp.lt.s32.totalorder %v3857_v50, 16 }
 0x1f6   : > { %v5153_v60 = vpop.f32.mrb[125].mxu0 }
 0x1f7   : > { %v3890_v22 = vsel %vm3864_vm4, %v3807_v54, 0.0  ;;  %v3810_v31 = vadd.f32 %v5151_v4, %v3713_v40  ;;  %v5088_v0 = vpop.f32.mrb[124].mxu1  ;;  %v5154_v32 = vadd.f32 %v5153_v60, %v5152_v35  ;;  %v5155_v19 = vpop.f32.mrb[126].mxu0 }
 0x1f8   : > { %v3985_v12 = vadd.f32 %v3984_v28, %v3890_v22  ;;  %v4008_v17 = vmul.f32 %v3890_v22, %v3890_v22  ;;  %v5089_v55 = vpop.f32.mrb[125].mxu1  ;;  %v5156_v3 = vpop.f32.mrb[127].mxu0 }
 0x1f9   : > { %v3891_v53 = vsel %vm3864_vm4, %v3810_v31, 0.0  ;;  %v5090_v14 = vadd.f32 %v5089_v55, %v5088_v0  ;;  %v5091_v21 = vpop.f32.mrb[126].mxu1  ;;  %v5157_v33 = vadd.f32 %v5156_v3, %v5155_v19 }
 0x1fa   : > { %v4023_v5 = vadd.f32 %v4022_v58, %v4008_v17  ;;  %v4570_v27 = vpack.c.bf16 %v3891_v53, %v3890_v22  ;;  %v3986_v48 = vadd.f32 %v3985_v12, %v3891_v53  ;;  %v4009_v39 = vmul.f32 %v3891_v53, %v3891_v53  ;;  %v5092_v7 = vpop.f32.mrb[127].mxu1 }
 0x1fb   : > { %v3718_v26 = vadd.f32 %v5090_v14, %v6849_v10  ;;  %v5093_v9 = vadd.f32 %v5092_v7, %v5091_v21  ;;  %v3858_v10 = vadd.s32 4, %v6882_v30 }
 0x1fc   : > { %4600 = vst [vmem:[%s6891_s7 + $0x10] sm:$0xff] %v4570_v27   ;;  %v4024_v23 = vadd.f32 %v4023_v5, %v4009_v39 }
 0x1fd   : > { %v3815_v59 = vadd.f32 %v5154_v32, %v3718_v26  ;;  %v3721_v62 = vadd.f32 %v5093_v9, %v6852_v42  ;;  %v5158_v24 = vpop.f32.mrb[128].mxu0  ;;  %vm3866_vm6 = vcmp.lt.s32.totalorder %v3858_v10, 16 }
 0x1fe   : > { %v5159_v46 = vpop.f32.mrb[129].mxu0 }
 0x1ff   : > { %v3892_v63 = vsel %vm3865_vm5, %v3815_v59, 0.0  ;;  %v3818_v36 = vadd.f32 %v5157_v33, %v3721_v62  ;;  %v5094_v41 = vpop.f32.mrb[128].mxu1  ;;  %v5160_v11 = vadd.f32 %v5159_v46, %v5158_v24  ;;  %v5161_v1 = vpop.f32.mrb[130].mxu0 }
 0x200   : > { %v3987_v52 = vadd.f32 %v3986_v48, %v3892_v63  ;;  %v4010_v61 = vmul.f32 %v3892_v63, %v3892_v63  ;;  %v5095_v13 = vpop.f32.mrb[129].mxu1  ;;  %v5162_v47 = vpop.f32.mrb[131].mxu0 }
 0x201   : > { %v3893_v57 = vsel %vm3865_vm5, %v3818_v36, 0.0  ;;  %v5096_v49 = vadd.f32 %v5095_v13, %v5094_v41  ;;  %v5097_v45 = vpop.f32.mrb[130].mxu1  ;;  %v5163_v34 = vadd.f32 %v5162_v47, %v5161_v1 }
 0x202   : > { %v4025_v18 = vadd.f32 %v4024_v23, %v4010_v61  ;;  %v4575_v42 = vpack.c.bf16 %v3893_v57, %v3892_v63  ;;  %v3988_v4 = vadd.f32 %v3987_v52, %v3893_v57  ;;  %v4011_v37 = vmul.f32 %v3893_v57, %v3893_v57  ;;  %v5098_v43 = vpop.f32.mrb[131].mxu1 }
 0x203   : > { %v3726_v28 = vadd.f32 %v5096_v49, %v6855_v15  ;;  %v5099_v51 = vadd.f32 %v5098_v43, %v5097_v45  ;;  %v3859_v15 = vadd.s32 5, %v6882_v30 }
 0x204   : > { %4601 = vst [vmem:[%s6891_s7 + $0x18] sm:$0xff] %v4575_v42   ;;  %v4026_v16 = vadd.f32 %v4025_v18, %v4011_v37 }
 0x205   : > { %v3823_v2 = vadd.f32 %v5160_v11, %v3726_v28  ;;  %v3729_v8 = vadd.f32 %v5099_v51, %v6858_v29  ;;  %v5164_v58 = vpop.f32.mrb[132].mxu0  ;;  %vm3867_vm7 = vcmp.lt.s32.totalorder %v3859_v15, 16 }
 0x206   : > { %v5165_v54 = vpop.f32.mrb[133].mxu0 }
 0x207   : > { %v3894_v40 = vsel %vm3866_vm6, %v3823_v2, 0.0  ;;  %v3826_v35 = vadd.f32 %v5163_v34, %v3729_v8  ;;  %v5100_v60 = vpop.f32.mrb[132].mxu1  ;;  %v5166_v22 = vadd.f32 %v5165_v54, %v5164_v58  ;;  %v5167_v31 = vpop.f32.mrb[134].mxu0 }
 0x208   : > { %v3989_v0 = vadd.f32 %v3988_v4, %v3894_v40  ;;  %v4012_v32 = vmul.f32 %v3894_v40, %v3894_v40  ;;  %v5101_v19 = vpop.f32.mrb[133].mxu1  ;;  %v5168_v12 = vpop.f32.mrb[135].mxu0 }
 0x209   : > { %v3895_v17 = vsel %vm3866_vm6, %v3826_v35, 0.0  ;;  %v5102_v55 = vadd.f32 %v5101_v19, %v5100_v60  ;;  %v5103_v50 = vpop.f32.mrb[134].mxu1  ;;  %v5169_v3 = vadd.f32 %v5168_v12, %v5167_v31 }
 0x20a   : > { %v4027_v53 = vadd.f32 %v4026_v16, %v4012_v32  ;;  %v4580_v29 = vpack.c.bf16 %v3895_v17, %v3894_v40  ;;  %v3990_v14 = vadd.f32 %v3989_v0, %v3895_v17  ;;  %v4013_v21 = vmul.f32 %v3895_v17, %v3895_v17  ;;  %v5104_v33 = vpop.f32.mrb[135].mxu1 }
 0x20b   : > { %v3734_v5 = vadd.f32 %v5102_v55, %v6861_v6  ;;  %v5105_v27 = vadd.f32 %v5104_v33, %v5103_v50  ;;  %v3860_v6 = vadd.s32 6, %v6882_v30 }
 0x20c   : > { %4602 = vst [vmem:[%s6891_s7 + $0x20] sm:$0xff] %v4580_v29   ;;  %v4028_v48 = vadd.f32 %v4027_v53, %v4013_v21 }
 0x20d   : > { %v3831_v39 = vadd.f32 %v5166_v22, %v3734_v5  ;;  %v3737_v7 = vadd.f32 %v5105_v27, %v6864_v44  ;;  %v5170_v26 = vpop.f32.mrb[136].mxu0  ;;  %vm3868_vm8 = vcmp.lt.s32.totalorder %v3860_v6, 16 }
 0x20e   : > { %v5171_v9 = vpop.f32.mrb[137].mxu0 }
 0x20f   : > { %v3896_v23 = vsel %vm3867_vm7, %v3831_v39, 0.0  ;;  %v3834_v59 = vadd.f32 %v5169_v3, %v3737_v7  ;;  %v5106_v62 = vpop.f32.mrb[136].mxu1  ;;  %v5172_v24 = vadd.f32 %v5171_v9, %v5170_v26  ;;  %v5173_v46 = vpop.f32.mrb[138].mxu0 }
 0x210   : > { %v3991_v63 = vadd.f32 %v3990_v14, %v3896_v23  ;;  %v4014_v36 = vmul.f32 %v3896_v23, %v3896_v23  ;;  %v5107_v41 = vpop.f32.mrb[137].mxu1  ;;  %v5174_v11 = vpop.f32.mrb[139].mxu0 }
 0x211   : > { %v3897_v1 = vsel %vm3867_vm7, %v3834_v59, 0.0  ;;  %v5108_v52 = vadd.f32 %v5107_v41, %v5106_v62  ;;  %v5109_v61 = vpop.f32.mrb[138].mxu1  ;;  %v5175_v13 = vadd.f32 %v5174_v11, %v5173_v46 }
 0x212   : > { %v4029_v10 = vadd.f32 %v4028_v48, %v4014_v36  ;;  %v4585_v44 = vpack.c.bf16 %v3897_v1, %v3896_v23  ;;  %v3992_v47 = vadd.f32 %v3991_v63, %v3897_v1  ;;  %v4015_v57 = vmul.f32 %v3897_v1, %v3897_v1  ;;  %v5110_v49 = vpop.f32.mrb[139].mxu1 }
 0x213   : > { %v3742_v45 = vadd.f32 %v5108_v52, %v6867_v38  ;;  %v5111_v34 = vadd.f32 %v5110_v49, %v5109_v61  ;;  %v3861_v38 = vadd.s32 7, %v6882_v30 }
 0x214   : > { %4603 = vst [vmem:[%s6891_s7 + $0x28] sm:$0xff] %v4585_v44   ;;  %v4030_v18 = vadd.f32 %v4029_v10, %v4015_v57 }
 0x215   : > { %v3839_v42 = vadd.f32 %v5172_v24, %v3742_v45  ;;  %v3745_v4 = vadd.f32 %v5111_v34, %v6870_v25  ;;  %v5176_v37 = vpop.f32.mrb[140].mxu0  ;;  %vm3869_vm9 = vcmp.lt.s32.totalorder %v3861_v38, 16 }
 0x216   : > { %v5177_v43 = vpop.f32.mrb[141].mxu0 }
 0x217   : > { %v3898_v28 = vsel %vm3868_vm8, %v3839_v42, 0.0  ;;  %v3842_v51 = vadd.f32 %v5175_v13, %v3745_v4  ;;  %v5112_v16 = vpop.f32.mrb[140].mxu1  ;;  %v5178_v2 = vadd.f32 %v5177_v43, %v5176_v37  ;;  %v5179_v8 = vpop.f32.mrb[142].mxu0 }
 0x218   : > { %v3993_v58 = vadd.f32 %v3992_v47, %v3898_v28  ;;  %v4016_v54 = vmul.f32 %v3898_v28, %v3898_v28  ;;  %v5113_v40 = vpop.f32.mrb[141].mxu1  ;;  %v5180_v35 = vpop.f32.mrb[143].mxu0 }
 0x219   : > { %v3899_v60 = vsel %vm3868_vm8, %v3842_v51, 0.0  ;;  %v5114_v22 = vadd.f32 %v5113_v40, %v5112_v16  ;;  %v5115_v31 = vpop.f32.mrb[142].mxu1  ;;  %v5181_v0 = vadd.f32 %v5180_v35, %v5179_v8 }
 0x21a   : > { %v4031_v25 = vadd.f32 %v4030_v18, %v4016_v54  ;;  %v4590_v32 = vpack.c.bf16 %v3899_v60, %v3898_v28  ;;  %v3994_v19 = vadd.f32 %v3993_v58, %v3899_v60  ;;  %v4017_v15 = vmul.f32 %v3899_v60, %v3899_v60  ;;  %v5116_v12 = vpop.f32.mrb[143].mxu1 }
 0x21b   : > { %v3750_v17 = vadd.f32 %v5114_v22, %v6875_v56  ;;  %v5117_v55 = vadd.f32 %v5116_v12, %v5115_v31 }
 0x21c   : > { %4604 = vst [vmem:[%s6891_s7 + $0x30] sm:$0xff] %v4590_v32   ;;  %v4032_v50 = vadd.f32 %v4031_v25, %v4017_v15 }
 0x21d   : > { %v3847_v30 = vadd.f32 %v5178_v2, %v3750_v17  ;;  %v3753_v3 = vadd.f32 %v5117_v55, %v6878_v20 }
 0x21f   : > { %v3900_v53 = vsel %vm3869_vm9, %v3847_v30, 0.0  ;;  %v3850_v29 = vadd.f32 %v5181_v0, %v3753_v3 }
 0x220   : > { %v3995_v14 = vadd.f32 %v3994_v19, %v3900_v53  ;;  %v4018_v21 = vmul.f32 %v3900_v53, %v3900_v53 }
 0x221   : > { %v3901_v33 = vsel %vm3869_vm9, %v3850_v29, 0.0 }
 0x222   : > { %v4033_v5 = vadd.f32 %v4032_v50, %v4018_v21  ;;  %v4595_v27 = vpack.c.bf16 %v3901_v33, %v3900_v53  ;;  %v3996_v48 = vadd.f32 %v3995_v14, %v3901_v33  ;;  %v4019_v56 = vmul.f32 %v3901_v33, %v3901_v33 }
 0x224   : > { %4605 = vst [vmem:[%s6891_s7 + $0x38] sm:$0xff] %v4595_v27   ;;  %v3997_v39 = vrot.slane %v3996_v48, 4  ;;  %v4034_v7 = vadd.f32 %v4033_v5, %v4019_v56 }
 0x226   : > { %v3998_v26 = vadd.f32 %v3997_v39, %v3996_v48  ;;  %v4035_v9 = vrot.slane %v4034_v7, 4 }
 0x228   : > { %v3999_v23 = vrot.slane %v3998_v26, 2  ;;  %v4036_v20 = vadd.f32 %v4035_v9, %v4034_v7 }
 0x22a   : > { %v4000_v59 = vadd.f32 %v3999_v23, %v3998_v26  ;;  %v4037_v62 = vrot.slane %v4036_v20, 2 }
 0x22c   : > { %v4001_v24 = vrot.slane %v4000_v59, 1  ;;  %v4038_v46 = vadd.f32 %v4037_v62, %v4036_v20 }
 0x22e   : > { %v4002_v63 = vadd.f32 %v4001_v24, %v4000_v59  ;;  %v4039_v36 = vrot.slane %v4038_v46, 1 }
 0x230   : > { %4003 = vst [vmem:[%s369_s27] sm:$0x1] %v4002_v63  ;;  %v4040_v41 = vadd.f32 %v4039_v36, %v4038_v46 }
 0x232   : > { %4041 = vst [vmem:[%s369_s27 + $0x1] sm:$0x1] %v4040_v41 }
 0x233 PF: > { %s17_s25 = sadd.s32 1, %s5536_s25   ;;  %s6949_s21 = smov %s5528_s23 }
 0x234   : > { %p14_p10 = scmp.ge.s32.totalorder %s17_s25, 6   ;;  %s6950_s22 = smov %s5532_s24 }
 0x235   : > { %s6951_s23 = smov %s6954_s3  ;;  %s6952_s24 = smov %s6958_s4 }
 0x236   :  { %16 = sbr.rel (!%p14_p10) target bundleno = 3 (0x3), region = 88 }

</bundles_post_ra>
